<compile_context>
chip_gen: v7x
topology: tpu7x:2x2x1
jax: 0.10.0
libtpu: 0.0.40
codegen_flags: <defaults>
</compile_context>

<pallas_src>
import math
from functools import partial

import jax
import jax.numpy as jnp
from jax import lax
from jax.experimental import pallas as pl
from jax.experimental.pallas import tpu as pltpu


def _round_up(x, m):
    return ((x + m - 1) // m) * m


def _vmem_limit_bytes(working_set_bytes):
    cap = 64 << 20
    try:
        info = pltpu.get_tpu_info()
        cap = int(getattr(info, "vmem_capacity_bytes", cap)) or (64 << 20)
    except Exception:
        pass
    limit = min(max(2 * int(working_set_bytes), 32 << 20), int(0.9 * cap))
    # never clamp below the actual double-buffered working set
    limit = max(limit, int(1.25 * working_set_bytes))
    return int(limit)


# ---------------------------------------------------------------------------
# Fused linear kernel:  y = [SiLU]( [RMSNorm](x) @ W + b ) [+ residual]
# Grid (M/tm, N/tn, K/tk), f32 VMEM accumulator, init/finalize via pl.when.
# ---------------------------------------------------------------------------

def _fused_linear_kernel(*refs, nk, act, has_res, has_norm, d_real, eps):
    idx = 0
    x_ref = refs[idx]; idx += 1
    w_ref = refs[idx]; idx += 1
    b_ref = refs[idx]; idx += 1
    res_ref = None
    nw_ref = None
    if has_res:
        res_ref = refs[idx]; idx += 1
    if has_norm:
        nw_ref = refs[idx]; idx += 1
    o_ref = refs[idx]; idx += 1
    acc_ref = refs[idx]; idx += 1
    norm_ref = refs[idx] if has_norm else None

    n = pl.program_id(1)
    k = pl.program_id(2)

    @pl.when(k == 0)
    def _():
        acc_ref[...] = jnp.zeros_like(acc_ref)

    x = x_ref[...]
    if has_norm:
        # RMSNorm fused into the matmul (wrapper guarantees nk == 1, whole K
        # row resident).  The rsqrt scale is computed once per M-tile at the
        # first N-tile and cached in VMEM scratch (reused for all other N).
        @pl.when(n == 0)
        def _():
            xf = x.astype(jnp.float32)
            ms = jnp.sum(xf * xf, axis=-1, keepdims=True) * (1.0 / d_real)
            norm_ref[...] = lax.rsqrt(ms + eps)
        xn = (x.astype(jnp.float32) * norm_ref[...]
              * nw_ref[...].astype(jnp.float32))
        x = xn.astype(x_ref.dtype)

    acc_ref[...] += jnp.dot(x, w_ref[...], preferred_element_type=jnp.float32)

    @pl.when(k == nk - 1)
    def _():
        y = acc_ref[...] + b_ref[...].astype(jnp.float32)
        if act == "silu":
            y = y * jax.nn.sigmoid(y)
        if has_res:
            y = y + res_ref[...].astype(jnp.float32)
        o_ref[...] = y.astype(o_ref.dtype)


def fused_linear(x, w, b, *, act=None, residual=None, norm_w=None,
                 eps=1e-6, out_dtype=jnp.bfloat16):
    """x: [M,K] bf16 @ w: [K,N] bf16 + b[N] f32, optional fused RMSNorm(x),
    SiLU and residual add. Tiled + double-buffered by BlockSpec."""
    M, K = x.shape
    Kw, N = w.shape
    assert K == Kw
    has_norm = norm_w is not None
    has_res = residual is not None

    # Tile selection: larger tiles for v5e/v6e (128 MiB VMEM); when the fused
    # norm forces tk = K, keep the double-buffered K x tn weight tile inside
    # v7x's smaller budget by shrinking tn for large K.
    tm = 512 if M >= 512 else _round_up(M, 16)
    if has_norm:
        tk = _round_up(K, 128)          # whole row resident for the fused norm
        tn = 512 if N >= 512 else _round_up(N, 128)
        if tk >= 2048:
            tn = min(tn, 256)
    else:
        tk = 1024 if K >= 1024 else _round_up(K, 128)
        tn = 1024 if N >= 1024 else _round_up(N, 128)

    Mp, Np, Kp = _round_up(M, tm), _round_up(N, tn), _round_up(K, tk)
    nm, nn, nk = Mp // tm, Np // tn, Kp // tk

    xp = x if (M, K) == (Mp, Kp) else jnp.pad(x, ((0, Mp - M), (0, Kp - K)))
    wp = w if (K, N) == (Kp, Np) else jnp.pad(w, ((0, Kp - K), (0, Np - N)))
    bp = (b if N == Np else jnp.pad(b, (0, Np - N))).reshape(1, Np).astype(jnp.float32)

    inputs = [xp, wp, bp]
    in_specs = [
        pl.BlockSpec((tm, tk), lambda m, n, k: (m, k)),
        pl.BlockSpec((tk, tn), lambda m, n, k: (k, n)),
        pl.BlockSpec((1, tn), lambda m, n, k: (0, n)),
    ]
    if has_res:
        rp = residual if (M, N) == (Mp, Np) else jnp.pad(
            residual, ((0, Mp - M), (0, Np - N)))
        inputs.append(rp)
        in_specs.append(pl.BlockSpec((tm, tn), lambda m, n, k: (m, n)))
    if has_norm:
        nwp = norm_w if K == Kp else jnp.pad(norm_w, (0, Kp - K))
        inputs.append(nwp.reshape(1, Kp).astype(jnp.float32))
        in_specs.append(pl.BlockSpec((1, tk), lambda m, n, k: (0, k)))

    item = jnp.dtype(x.dtype).itemsize
    out_item = jnp.dtype(out_dtype).itemsize
    working = (2 * (tm * tk + tk * tn) * item            # double-buffered x, w
               + 2 * tn * 4                              # bias
               + (2 * tm * tn * item if has_res else 0)
               + (2 * tk * 4 if has_norm else 0)
               + tm * tn * 4 + tm * 4                    # accumulator + norm scratch
               + 2 * tm * tn * out_item)                 # output

    scratch = [pltpu.VMEM((tm, tn), jnp.float32)]
    if has_norm:
        scratch.append(pltpu.VMEM((tm, 1), jnp.float32))

    # n must stay sequential per m-tile when the norm scale is cached.
    sem = (("parallel", "arbitrary", "arbitrary") if has_norm
           else ("parallel", "parallel", "arbitrary"))

    cost = pl.CostEstimate(
        flops=int(2 * Mp * Np * Kp),
        transcendentals=int(Mp * Np if act == "silu" else 0),
        bytes_accessed=int((Mp * Kp + Kp * Np) * item + Mp * Np * out_item))

    out = pl.pallas_call(
        partial(_fused_linear_kernel, nk=nk, act=act, has_res=has_res,
                has_norm=has_norm, d_real=float(K), eps=eps),
        grid=(nm, nn, nk),
        out_shape=jax.ShapeDtypeStruct((Mp, Np), out_dtype),
        in_specs=in_specs,
        out_specs=pl.BlockSpec((tm, tn), lambda m, n, k: (m, n)),
        scratch_shapes=scratch,
        compiler_params=pltpu.CompilerParams(
            dimension_semantics=sem,
            vmem_limit_bytes=_vmem_limit_bytes(working)),
        cost_estimate=cost,
    )(*inputs)
    if (Mp, Np) != (M, N):
        out = out[:M, :N]
    return out


def fused_linear3d(x, w, b, *, act=None, residual=None, norm_w=None,
                   eps=1e-6, out_dtype=jnp.bfloat16):
    B, S, Din = x.shape
    res2d = (residual.reshape(B * S, residual.shape[-1])
             if residual is not None else None)
    y = fused_linear(x.reshape(B * S, Din), w, b, act=act, residual=res2d,
                     norm_w=norm_w, eps=eps, out_dtype=out_dtype)
    return y.reshape(B, S, -1)


# ---------------------------------------------------------------------------
# Multi-head attention: grid (B, kv-tiles); all heads per program, online
# softmax over kv tiles, in-kernel causal mask, key-only pad mask.
# ---------------------------------------------------------------------------

def _mha_kernel(q_ref, kv_ref, mask_ref, o_ref, m_sc, l_sc, acc_sc, *,
                num_heads, head_dim, q_off, k_off, v_off, causal):
    kvb = pl.program_id(1)
    nkv = pl.num_programs(1)
    Sq = q_ref.shape[1]
    tkv = kv_ref.shape[1]

    @pl.when(kvb == 0)
    def _():
        m_sc[...] = jnp.full_like(m_sc, -1e30)
        l_sc[...] = jnp.zeros_like(l_sc)
        acc_sc[...] = jnp.zeros_like(acc_sc)

    q_all = q_ref[0]                      # (Sq, Wq) bf16; scale folded into W_q
    kv_all = kv_ref[0]                    # (tkv, Wkv) bf16
    kmask = mask_ref[0] > 0.0             # (1, tkv) key pad mask

    if causal:
        q_pos = lax.broadcasted_iota(jnp.int32, (Sq, tkv), 0)
        kv_pos = kvb * tkv + lax.broadcasted_iota(jnp.int32, (Sq, tkv), 1)
        valid = jnp.logical_and(kmask, kv_pos <= q_pos)
    else:
        valid = jnp.broadcast_to(kmask, (Sq, tkv))

    for h in range(num_heads):
        q_h = q_all[:, q_off + h * head_dim: q_off + (h + 1) * head_dim]
        k_h = kv_all[:, k_off + h * head_dim: k_off + (h + 1) * head_dim]
        v_h = kv_all[:, v_off + h * head_dim: v_off + (h + 1) * head_dim]
        # contract the last dims directly -> no materialised K transpose
        s = lax.dot_general(q_h, k_h, (((1,), (1,)), ((), ())),
                            preferred_element_type=jnp.float32)
        s = jnp.where(valid, s, -1e30)
        m_prev = m_sc[h]
        m_new = jnp.maximum(m_prev, jnp.max(s, axis=-1, keepdims=True))
        alpha = jnp.exp(m_prev - m_new)
        p = jnp.where(valid, jnp.exp(s - m_new), 0.0)
        l_sc[h] = alpha * l_sc[h] + jnp.sum(p, axis=-1, keepdims=True)
        acc_sc[h] = alpha * acc_sc[h] + jnp.dot(
            p.astype(kv_all.dtype), v_h, preferred_element_type=jnp.float32)
        m_sc[h] = m_new

    @pl.when(kvb == nkv - 1)
    def _():
        outs = []
        for h in range(num_heads):
            inv = pl.reciprocal(jnp.maximum(l_sc[h], 1e-30), approx=True)
            outs.append(acc_sc[h] * inv)
        o_ref[0] = jnp.concatenate(outs, axis=-1).astype(o_ref.dtype)


def mha_attention(q_src, kv_src, key_mask, *, num_heads, head_dim,
                  q_off, k_off, v_off, causal, kv_block=512):
    """q_src: [B,Sq,Wq] (q heads start at lane q_off), kv_src: [B,Sk,Wkv]
    (k/v heads start at k_off/v_off), key_mask: [B,1,Sk]."""
    B, Sq, Wq = q_src.shape
    Sk, Wkv = kv_src.shape[1], kv_src.shape[2]
    D = num_heads * head_dim

    if Sk <= kv_block:
        tkv = Sk
    else:
        tkv = kv_block
        Skp = _round_up(Sk, tkv)
        if Skp != Sk:
            kv_src = jnp.pad(kv_src, ((0, 0), (0, Skp - Sk), (0, 0)))
            key_mask = jnp.pad(key_mask, ((0, 0), (0, 0), (0, Skp - Sk)))
            Sk = Skp
    nkv = Sk // tkv
    key_mask = key_mask.astype(jnp.float32)

    cost = pl.CostEstimate(
        flops=int(4 * B * num_heads * Sq * Sk * head_dim),
        transcendentals=int(B * num_heads * Sq * Sk),
        bytes_accessed=int(q_src.size * 2 + kv_src.size * 2
                           + key_mask.size * 4 + B * Sq * D * 2))

    return pl.pallas_call(
        partial(_mha_kernel, num_heads=num_heads, head_dim=head_dim,
                q_off=q_off, k_off=k_off, v_off=v_off, causal=causal),
        grid=(B, nkv),
        out_shape=jax.ShapeDtypeStruct((B, Sq, D), jnp.bfloat16),
        in_specs=[
            pl.BlockSpec((1, Sq, Wq), lambda b, kv: (b, 0, 0)),
            pl.BlockSpec((1, tkv, Wkv), lambda b, kv: (b, kv, 0)),
            pl.BlockSpec((1, 1, tkv), lambda b, kv: (b, 0, kv)),
        ],
        out_specs=pl.BlockSpec((1, Sq, D), lambda b, kv: (b, 0, 0)),
        scratch_shapes=[
            pltpu.VMEM((num_heads, Sq, 1), jnp.float32),         # m
            pltpu.VMEM((num_heads, Sq, 1), jnp.float32),         # l
            pltpu.VMEM((num_heads, Sq, head_dim), jnp.float32),  # acc
        ],
        compiler_params=pltpu.CompilerParams(
            dimension_semantics=("parallel", "arbitrary")),
        cost_estimate=cost,
    )(q_src, kv_src, key_mask)


# ---------------------------------------------------------------------------
# Model glue (plain JAX around the Pallas kernels)
# ---------------------------------------------------------------------------

def _dense(key, din, dout, scale=0.02):
    w = scale * jax.random.normal(key, (din, dout), jnp.float32)
    b = jnp.zeros((dout,), jnp.float32)
    return w, b


def init_params(key, *, d_model, d_ff, num_heads, num_layers, vocab_size,
                tag_vocab, imp_vocab, seq_len, patch_dim):
    head_dim = d_model // num_heads
    attn_scale = 1.0 / math.sqrt(head_dim)
    keys = iter(jax.random.split(key, 64 + 16 * num_layers))

    def dense_bf16(din, dout):
        w, b = _dense(next(keys), din, dout)
        return w.astype(jnp.bfloat16), b

    p = {}
    # synthetic visual backbone: patch projection -> 1024 channels per image
    p["vis_w"], p["vis_b"] = dense_bf16(patch_dim, 1024)
    p["vis_lin_w"], p["vis_lin_b"] = dense_bf16(2048, d_model)
    p["tag_lin_w"], p["tag_lin_b"] = dense_bf16(768, d_model)
    p["imp_lin_w"], p["imp_lin_b"] = dense_bf16(768, d_model)
    # synthetic tag / impression encoders: 768-d embedding tables
    p["tag_emb"] = 0.02 * jax.random.normal(next(keys), (tag_vocab, 768), jnp.float32)
    p["imp_emb"] = 0.02 * jax.random.normal(next(keys), (imp_vocab, 768), jnp.float32)
    # report text input embedding
    p["tok_emb"] = 0.02 * jax.random.normal(next(keys), (vocab_size, d_model), jnp.float32)
    p["pos_emb"] = 0.02 * jax.random.normal(next(keys), (seq_len, d_model), jnp.float32)

    layers = []
    for _ in range(num_layers):
        lp = {"ln1": jnp.ones((d_model,), jnp.float32),
              "ln2": jnp.ones((d_model,), jnp.float32),
              "ln3": jnp.ones((d_model,), jnp.float32)}
        wq, bq = _dense(next(keys), d_model, d_model)
        wk, bk = _dense(next(keys), d_model, d_model)
        wv, bv = _dense(next(keys), d_model, d_model)
        # 1/sqrt(head_dim) folded into the Q projection -> no scale multiply
        # on the attention critical path.
        wq, bq = wq * attn_scale, bq * attn_scale
        lp["self_wqkv"] = jnp.concatenate([wq, wk, wv], 1).astype(jnp.bfloat16)
        lp["self_bqkv"] = jnp.concatenate([bq, bk, bv], 0)
        lp["self_wo"], lp["self_bo"] = dense_bf16(d_model, d_model)

        wq, bq = _dense(next(keys), d_model, d_model)
        lp["cross_wq"] = (wq * attn_scale).astype(jnp.bfloat16)
        lp["cross_bq"] = bq * attn_scale
        wk, bk = _dense(next(keys), d_model, d_model)
        wv, bv = _dense(next(keys), d_model, d_model)
        lp["cross_wkv"] = jnp.concatenate([wk, wv], 1).astype(jnp.bfloat16)
        lp["cross_bkv"] = jnp.concatenate([bk, bv], 0)
        lp["cross_wo"], lp["cross_bo"] = dense_bf16(d_model, d_model)

        lp["w1"], lp["b1"] = dense_bf16(d_model, d_ff)
        lp["w2"], lp["b2"] = dense_bf16(d_ff, d_model)
        layers.append(lp)
    p["layers"] = layers
    p["final_ln"] = jnp.ones((d_model,), jnp.float32)
    p["logits_w"], p["logits_b"] = dense_bf16(d_model, vocab_size)
    return p


def visual_feature_extractor(image, w, b, patch=8):
    """NCHW image -> [B, (H/ps)*(W/ps), 1024] via patchify + Pallas matmul."""
    B, C, H, W = image.shape
    ph, pw = H // patch, W // patch
    x = image.reshape(B, C, ph, patch, pw, patch)
    x = x.transpose(0, 2, 4, 1, 3, 5).reshape(B, ph * pw, C * patch * patch)
    return fused_linear3d(x.astype(jnp.bfloat16), w, b)


def fg_model_forward(params, image1, image2, tags_input_ids, tags_attention_mask,
                     impression_input_ids, impression_attention_mask,
                     report_input_ids, pad_mask, *, num_heads, d_model):
    # visual branch
    f1 = visual_feature_extractor(image1, params["vis_w"], params["vis_b"])
    f2 = visual_feature_extractor(image2, params["vis_w"], params["vis_b"])
    img_vis = jnp.concatenate([f1, f2], axis=-1)                    # [B, hw, 2048]
    img_vis = fused_linear3d(img_vis, params["vis_lin_w"], params["vis_lin_b"],
                             act="silu")

    # tag / impression branches (synthetic encoders = embedding lookups)
    tag_e = jnp.take(params["tag_emb"], tags_input_ids, axis=0).astype(jnp.bfloat16)
    tag_e = fused_linear3d(tag_e, params["tag_lin_w"], params["tag_lin_b"], act="silu")
    imp_e = jnp.take(params["imp_emb"], impression_input_ids, axis=0).astype(jnp.bfloat16)
    imp_e = fused_linear3d(imp_e, params["imp_lin_w"], params["imp_lin_b"], act="silu")

    memory = jnp.concatenate([img_vis, tag_e, imp_e], axis=1)

    B, S = report_input_ids.shape
    assert pad_mask.shape[2] == S, "pad_mask and report seq_len must be equal."

    # key-only masks; the causal part is generated in-kernel via iota so no
    # [B,S,S] f32 tensor is ever materialised or streamed from HBM.
    self_key_mask = pad_mask.astype(jnp.float32)                    # [B,1,S]
    img_seq_len = img_vis.shape[1]
    img_mask = jnp.ones((B, img_seq_len), jnp.int32)
    combined = jnp.concatenate(
        [img_mask, tags_attention_mask.astype(jnp.int32),
         impression_attention_mask.astype(jnp.int32)], axis=1)      # [B, Smem]
    cross_key_mask = combined[:, None, :].astype(jnp.float32)       # [B,1,Smem]

    # report embeddings
    rep = jnp.take(params["tok_emb"], report_input_ids, axis=0) * math.sqrt(d_model)
    rep = (rep + params["pos_emb"][None, :S, :]).astype(jnp.bfloat16)

    head_dim = d_model // num_heads
    x = rep
    for lp in params["layers"]:
        # self-attention: fused RMSNorm + QKV, heads kept packed in [B,S,3D];
        # no host-side split/transposes between the two pallas_calls.
        qkv = fused_linear3d(x, lp["self_wqkv"], lp["self_bqkv"], norm_w=lp["ln1"])
        o = mha_attention(qkv, qkv, self_key_mask, num_heads=num_heads,
                          head_dim=head_dim, q_off=0, k_off=d_model,
                          v_off=2 * d_model, causal=True)
        x = fused_linear3d(o, lp["self_wo"], lp["self_bo"], residual=x)

        # cross-attention: fused KV from memory, key-only pad mask
        q = fused_linear3d(x, lp["cross_wq"], lp["cross_bq"], norm_w=lp["ln2"])
        kv = fused_linear3d(memory, lp["cross_wkv"], lp["cross_bkv"])
        o = mha_attention(q, kv, cross_key_mask, num_heads=num_heads,
                          head_dim=head_dim, q_off=0, k_off=0, v_off=d_model,
                          causal=False)
        x = fused_linear3d(o, lp["cross_wo"], lp["cross_bo"], residual=x)

        # FFN: fused RMSNorm + up-proj + SiLU, residual fused in the down-proj
        ff = fused_linear3d(x, lp["w1"], lp["b1"], act="silu", norm_w=lp["ln3"])
        x = fused_linear3d(ff, lp["w2"], lp["b2"], residual=x)

    # fused final RMSNorm + logits projection, f32 output
    Bx, Sx, Dx = x.shape
    logits = fused_linear(x.reshape(Bx * Sx, Dx), params["logits_w"],
                          params["logits_b"], norm_w=params["final_ln"],
                          out_dtype=jnp.float32)
    return logits.reshape(Bx, Sx, -1)


# ---------------------------------------------------------------------------
# main
# ---------------------------------------------------------------------------

if __name__ == "__main__":
    B, C, Himg, Wimg = 2, 3, 16, 16
    patch = 8
    tag_seq, imp_seq, seq_len = 6, 5, 8
    d_model, d_ff, num_heads, num_layers = 64, 128, 4, 2
    vocab_size, tag_vocab, imp_vocab = 128, 50, 60

    key = jax.random.PRNGKey(0)
    kp, k1, k2, k3, k4, k5 = jax.random.split(key, 6)

    params = init_params(
        kp, d_model=d_model, d_ff=d_ff, num_heads=num_heads,
        num_layers=num_layers, vocab_size=vocab_size, tag_vocab=tag_vocab,
        imp_vocab=imp_vocab, seq_len=seq_len, patch_dim=C * patch * patch)

    image1 = jax.random.normal(k1, (B, C, Himg, Wimg), jnp.float32)
    image2 = jax.random.normal(k2, (B, C, Himg, Wimg), jnp.float32)
    tags_input_ids = jax.random.randint(k3, (B, tag_seq), 0, tag_vocab)
    tags_attention_mask = jnp.ones((B, tag_seq), jnp.int32).at[:, -1].set(0)
    impression_input_ids = jax.random.randint(k4, (B, imp_seq), 0, imp_vocab)
    impression_attention_mask = jnp.ones((B, imp_seq), jnp.int32).at[:, -1].set(0)
    report_input_ids = jax.random.randint(k5, (B, seq_len), 0, vocab_size)
    pad_mask = jnp.ones((B, 1, seq_len), jnp.int32).at[:, :, -2:].set(0)

    fwd = jax.jit(partial(fg_model_forward, num_heads=num_heads, d_model=d_model))
    logits = fwd(params, image1, image2, tags_input_ids, tags_attention_mask,
                 impression_input_ids, impression_attention_mask,
                 report_input_ids, pad_mask)
    jax.block_until_ready(logits)
    assert logits.shape == (B, seq_len, vocab_size)
    assert bool(jnp.all(jnp.isfinite(logits)))
    print("KERNEL_OK")
</pallas_src>

<mosaic_0001>
module attributes {stable_mosaic.version = 11 : i64} {
  func.func @_fused_linear_kernel(%arg0: i32, %arg1: i32, %arg2: i32, %arg3: memref<16x128xbf16, #tpu.memory_space<vmem>>, %arg4: memref<128x256xbf16, #tpu.memory_space<vmem>>, %arg5: memref<1x256xf32, #tpu.memory_space<vmem>>, %arg6: memref<1x128xf32, #tpu.memory_space<vmem>>, %arg7: memref<16x256xbf16, #tpu.memory_space<vmem>>, %arg8: memref<16x256xf32, #tpu.memory_space<vmem>>, %arg9: memref<16x1xf32, #tpu.memory_space<vmem>>) attributes {dimension_semantics = [#tpu.dimension_semantics<parallel>, #tpu.dimension_semantics<arbitrary>, #tpu.dimension_semantics<arbitrary>], iteration_bounds = array<i64: 1, 1, 1>, scalar_prefetch = 0 : i64, scratch_operands = 2 : i64, tpu.core_type = #tpu.core_type<tc>, window_params = [{transform_indices = @transform_0, window_bounds = array<i64: 16, 128>}, {transform_indices = @transform_1, window_bounds = array<i64: 128, 256>}, {transform_indices = @transform_2, window_bounds = array<i64: 1, 256>}, {transform_indices = @transform_3, window_bounds = array<i64: 1, 128>}, {transform_indices = @transform_4, window_bounds = array<i64: 16, 256>}]} {
    %c0_i32 = arith.constant 0 : i32
    %0 = arith.cmpi eq, %arg2, %c0_i32 : i32
    %1 = arith.extui %0 : i1 to i32
    %c0_i32_0 = arith.constant 0 : i32
    %2 = arith.cmpi ne, %1, %c0_i32_0 : i32
    scf.if %2 {
      %cst_16 = arith.constant 0.000000e+00 : f32
      %23 = vector.broadcast %cst_16 : f32 to vector<16x256xf32>
      %c0_17 = arith.constant 0 : index
      %c0_18 = arith.constant 0 : index
      %24 = vector.load %arg8[%c0_17, %c0_18] : memref<16x256xf32, #tpu.memory_space<vmem>>, vector<16x256xf32>
      tpu.vector_store %arg8[%c0_17, %c0_18], %23 {strides = array<i32>} : memref<16x256xf32, #tpu.memory_space<vmem>>, vector<16x256xf32>,
    } else {
    }
    %c0 = arith.constant 0 : index
    %c0_1 = arith.constant 0 : index
    %3 = vector.load %arg3[%c0, %c0_1] : memref<16x128xbf16, #tpu.memory_space<vmem>>, vector<16x128xbf16>
    %c0_i32_2 = arith.constant 0 : i32
    %4 = arith.cmpi eq, %arg1, %c0_i32_2 : i32
    %5 = arith.extui %4 : i1 to i32
    %c0_i32_3 = arith.constant 0 : i32
    %6 = arith.cmpi ne, %5, %c0_i32_3 : i32
    scf.if %6 {
      %23 = arith.extf %3 : vector<16x128xbf16> to vector<16x128xf32>
      %24 = arith.mulf %23, %23 : vector<16x128xf32>
      %cst_16 = arith.constant dense<0.000000e+00> : vector<16xf32>
      %25 = vector.multi_reduction <add>, %24, %cst_16 [1] : vector<16x128xf32> to vector<16xf32>
      %26 = vector.shape_cast %25 : vector<16xf32> to vector<16x1xf32>
      %cst_17 = arith.constant 1.562500e-02 : f32
      %27 = vector.broadcast %cst_17 : f32 to vector<16x1xf32>
      %28 = arith.mulf %26, %27 : vector<16x1xf32>
      %cst_18 = arith.constant 9.99999997E-7 : f32
      %29 = vector.broadcast %cst_18 : f32 to vector<16x1xf32>
      %30 = arith.addf %28, %29 : vector<16x1xf32>
      %31 = math.rsqrt %30 : vector<16x1xf32>
      %c0_19 = arith.constant 0 : index
      %c0_20 = arith.constant 0 : index
      %32 = vector.load %arg9[%c0_19, %c0_20] : memref<16x1xf32, #tpu.memory_space<vmem>>, vector<16x1xf32>
      tpu.vector_store %arg9[%c0_19, %c0_20], %31 {strides = array<i32>} : memref<16x1xf32, #tpu.memory_space<vmem>>, vector<16x1xf32>,
    } else {
    }
    %7 = arith.extf %3 : vector<16x128xbf16> to vector<16x128xf32>
    %c0_4 = arith.constant 0 : index
    %c0_5 = arith.constant 0 : index
    %8 = vector.load %arg9[%c0_4, %c0_5] : memref<16x1xf32, #tpu.memory_space<vmem>>, vector<16x1xf32>
    %9 = vector.broadcast %8 : vector<16x1xf32> to vector<16x128xf32>
    %10 = arith.mulf %7, %9 : vector<16x128xf32>
    %c0_6 = arith.constant 0 : index
    %c0_7 = arith.constant 0 : index
    %11 = vector.load %arg6[%c0_6, %c0_7] : memref<1x128xf32, #tpu.memory_space<vmem>>, vector<1x128xf32>
    %12 = vector.broadcast %11 : vector<1x128xf32> to vector<16x128xf32>
    %13 = arith.mulf %10, %12 : vector<16x128xf32>
    %14 = arith.truncf %13 : vector<16x128xf32> to vector<16x128xbf16>
    %c0_8 = arith.constant 0 : index
    %c0_9 = arith.constant 0 : index
    %15 = vector.load %arg8[%c0_8, %c0_9] : memref<16x256xf32, #tpu.memory_space<vmem>>, vector<16x256xf32>
    %c0_10 = arith.constant 0 : index
    %c0_11 = arith.constant 0 : index
    %16 = vector.load %arg4[%c0_10, %c0_11] : memref<128x256xbf16, #tpu.memory_space<vmem>>, vector<128x256xbf16>
    %cst = arith.constant dense<0.000000e+00> : vector<16x256xf32>
    %17 = tpu.matmul %14, %16, %cst {dimension_numbers = #tpu.dot_dimension_numbers<[1], [0], [0], [1], [0, 0, 1, 1], [], []>} : vector<16x128xbf16>, vector<128x256xbf16>, vector<16x256xf32> -> vector<16x256xf32>
    %18 = arith.addf %15, %17 : vector<16x256xf32>
    %c0_12 = arith.constant 0 : index
    %c0_13 = arith.constant 0 : index
    %19 = vector.load %arg8[%c0_12, %c0_13] : memref<16x256xf32, #tpu.memory_space<vmem>>, vector<16x256xf32>
    tpu.vector_store %arg8[%c0_12, %c0_13], %18 {strides = array<i32>} : memref<16x256xf32, #tpu.memory_space<vmem>>, vector<16x256xf32>,
    %c0_i32_14 = arith.constant 0 : i32
    %20 = arith.cmpi eq, %arg2, %c0_i32_14 : i32
    %21 = arith.extui %20 : i1 to i32
    %c0_i32_15 = arith.constant 0 : i32
    %22 = arith.cmpi ne, %21, %c0_i32_15 : i32
    scf.if %22 {
      %c0_16 = arith.constant 0 : index
      %c0_17 = arith.constant 0 : index
      %23 = vector.load %arg8[%c0_16, %c0_17] : memref<16x256xf32, #tpu.memory_space<vmem>>, vector<16x256xf32>
      %c0_18 = arith.constant 0 : index
      %c0_19 = arith.constant 0 : index
      %24 = vector.load %arg5[%c0_18, %c0_19] : memref<1x256xf32, #tpu.memory_space<vmem>>, vector<1x256xf32>
      %25 = vector.broadcast %24 : vector<1x256xf32> to vector<16x256xf32>
      %26 = arith.addf %23, %25 : vector<16x256xf32>
      %27 = arith.truncf %26 : vector<16x256xf32> to vector<16x256xbf16>
      %c0_20 = arith.constant 0 : index
      %c0_21 = arith.constant 0 : index
      %28 = vector.load %arg7[%c0_20, %c0_21] : memref<16x256xbf16, #tpu.memory_space<vmem>>, vector<16x256xbf16>
      tpu.vector_store %arg7[%c0_20, %c0_21], %27 {strides = array<i32>} : memref<16x256xbf16, #tpu.memory_space<vmem>>, vector<16x256xbf16>,
    } else {
    }
    return
  }
  func.func @transform_0(%arg0: i32, %arg1: i32, %arg2: i32) -> (i32, i32) {
    %c0_i32 = arith.constant 0 : i32
    return %arg0, %arg2 : i32, i32
  }
  func.func @transform_1(%arg0: i32, %arg1: i32, %arg2: i32) -> (i32, i32) {
    %c0_i32 = arith.constant 0 : i32
    return %arg2, %arg1 : i32, i32
  }
  func.func @transform_2(%arg0: i32, %arg1: i32, %arg2: i32) -> (i32, i32) {
    %c0_i32 = arith.constant 0 : i32
    %c0_i32_0 = arith.constant 0 : i32
    return %c0_i32, %arg1 : i32, i32
  }
  func.func @transform_3(%arg0: i32, %arg1: i32, %arg2: i32) -> (i32, i32) {
    %c0_i32 = arith.constant 0 : i32
    %c0_i32_0 = arith.constant 0 : i32
    return %c0_i32, %arg2 : i32, i32
  }
  func.func @transform_4(%arg0: i32, %arg1: i32, %arg2: i32) -> (i32, i32) {
    %c0_i32 = arith.constant 0 : i32
    return %arg0, %arg1 : i32, i32
  }
}

module attributes {stable_mosaic.version = 11 : i64} {
  func.func @_fused_linear_kernel(%arg0: i32, %arg1: i32, %arg2: i32, %arg3: memref<16x128xbf16, #tpu.memory_space<vmem>>, %arg4: memref<128x128xbf16, #tpu.memory_space<vmem>>, %arg5: memref<1x128xf32, #tpu.memory_space<vmem>>, %arg6: memref<16x128xbf16, #tpu.memory_space<vmem>>, %arg7: memref<16x128xbf16, #tpu.memory_space<vmem>>, %arg8: memref<16x128xf32, #tpu.memory_space<vmem>>) attributes {dimension_semantics = [#tpu.dimension_semantics<parallel>, #tpu.dimension_semantics<parallel>, #tpu.dimension_semantics<arbitrary>], iteration_bounds = array<i64: 1, 1, 1>, scalar_prefetch = 0 : i64, scratch_operands = 1 : i64, tpu.core_type = #tpu.core_type<tc>, window_params = [{transform_indices = @transform_0, window_bounds = array<i64: 16, 128>}, {transform_indices = @transform_1, window_bounds = array<i64: 128, 128>}, {transform_indices = @transform_2, window_bounds = array<i64: 1, 128>}, {transform_indices = @transform_3, window_bounds = array<i64: 16, 128>}, {transform_indices = @transform_4, window_bounds = array<i64: 16, 128>}]} {
    %c0_i32 = arith.constant 0 : i32
    %0 = arith.cmpi eq, %arg2, %c0_i32 : i32
    %1 = arith.extui %0 : i1 to i32
    %c0_i32_0 = arith.constant 0 : i32
    %2 = arith.cmpi ne, %1, %c0_i32_0 : i32
    scf.if %2 {
      %cst_10 = arith.constant 0.000000e+00 : f32
      %12 = vector.broadcast %cst_10 : f32 to vector<16x128xf32>
      %c0_11 = arith.constant 0 : index
      %c0_12 = arith.constant 0 : index
      %13 = vector.load %arg8[%c0_11, %c0_12] : memref<16x128xf32, #tpu.memory_space<vmem>>, vector<16x128xf32>
      tpu.vector_store %arg8[%c0_11, %c0_12], %12 {strides = array<i32>} : memref<16x128xf32, #tpu.memory_space<vmem>>, vector<16x128xf32>,
    } else {
    }
    %c0 = arith.constant 0 : index
    %c0_1 = arith.constant 0 : index
    %3 = vector.load %arg3[%c0, %c0_1] : memref<16x128xbf16, #tpu.memory_space<vmem>>, vector<16x128xbf16>
    %c0_2 = arith.constant 0 : index
    %c0_3 = arith.constant 0 : index
    %4 = vector.load %arg8[%c0_2, %c0_3] : memref<16x128xf32, #tpu.memory_space<vmem>>, vector<16x128xf32>
    %c0_4 = arith.constant 0 : index
    %c0_5 = arith.constant 0 : index
    %5 = vector.load %arg4[%c0_4, %c0_5] : memref<128x128xbf16, #tpu.memory_space<vmem>>, vector<128x128xbf16>
    %cst = arith.constant dense<0.000000e+00> : vector<16x128xf32>
    %6 = tpu.matmul %3, %5, %cst {dimension_numbers = #tpu.dot_dimension_numbers<[1], [0], [0], [1], [0, 0, 1, 1], [], []>} : vector<16x128xbf16>, vector<128x128xbf16>, vector<16x128xf32> -> vector<16x128xf32>
    %7 = arith.addf %4, %6 : vector<16x128xf32>
    %c0_6 = arith.constant 0 : index
    %c0_7 = arith.constant 0 : index
    %8 = vector.load %arg8[%c0_6, %c0_7] : memref<16x128xf32, #tpu.memory_space<vmem>>, vector<16x128xf32>
    tpu.vector_store %arg8[%c0_6, %c0_7], %7 {strides = array<i32>} : memref<16x128xf32, #tpu.memory_space<vmem>>, vector<16x128xf32>,
    %c0_i32_8 = arith.constant 0 : i32
    %9 = arith.cmpi eq, %arg2, %c0_i32_8 : i32
    %10 = arith.extui %9 : i1 to i32
    %c0_i32_9 = arith.constant 0 : i32
    %11 = arith.cmpi ne, %10, %c0_i32_9 : i32
    scf.if %11 {
      %c0_10 = arith.constant 0 : index
      %c0_11 = arith.constant 0 : index
      %12 = vector.load %arg8[%c0_10, %c0_11] : memref<16x128xf32, #tpu.memory_space<vmem>>, vector<16x128xf32>
      %c0_12 = arith.constant 0 : index
      %c0_13 = arith.constant 0 : index
      %13 = vector.load %arg5[%c0_12, %c0_13] : memref<1x128xf32, #tpu.memory_space<vmem>>, vector<1x128xf32>
      %14 = vector.broadcast %13 : vector<1x128xf32> to vector<16x128xf32>
      %15 = arith.addf %12, %14 : vector<16x128xf32>
      %c0_14 = arith.constant 0 : index
      %c0_15 = arith.constant 0 : index
      %16 = vector.load %arg6[%c0_14, %c0_15] : memref<16x128xbf16, #tpu.memory_space<vmem>>, vector<16x128xbf16>
      %17 = arith.extf %16 : vector<16x128xbf16> to vector<16x128xf32>
      %18 = arith.addf %15, %17 : vector<16x128xf32>
      %19 = arith.truncf %18 : vector<16x128xf32> to vector<16x128xbf16>
      %c0_16 = arith.constant 0 : index
      %c0_17 = arith.constant 0 : index
      %20 = vector.load %arg7[%c0_16, %c0_17] : memref<16x128xbf16, #tpu.memory_space<vmem>>, vector<16x128xbf16>
      tpu.vector_store %arg7[%c0_16, %c0_17], %19 {strides = array<i32>} : memref<16x128xbf16, #tpu.memory_space<vmem>>, vector<16x128xbf16>,
    } else {
    }
    return
  }
  func.func @transform_0(%arg0: i32, %arg1: i32, %arg2: i32) -> (i32, i32) {
    %c0_i32 = arith.constant 0 : i32
    return %arg0, %arg2 : i32, i32
  }
  func.func @transform_1(%arg0: i32, %arg1: i32, %arg2: i32) -> (i32, i32) {
    %c0_i32 = arith.constant 0 : i32
    return %arg2, %arg1 : i32, i32
  }
  func.func @transform_2(%arg0: i32, %arg1: i32, %arg2: i32) -> (i32, i32) {
    %c0_i32 = arith.constant 0 : i32
    %c0_i32_0 = arith.constant 0 : i32
    return %c0_i32, %arg1 : i32, i32
  }
  func.func @transform_3(%arg0: i32, %arg1: i32, %arg2: i32) -> (i32, i32) {
    %c0_i32 = arith.constant 0 : i32
    return %arg0, %arg1 : i32, i32
  }
  func.func @transform_4(%arg0: i32, %arg1: i32, %arg2: i32) -> (i32, i32) {
    %c0_i32 = arith.constant 0 : i32
    return %arg0, %arg1 : i32, i32
  }
}

module attributes {stable_mosaic.version = 11 : i64} {
  func.func @_mha_kernel(%arg0: i32, %arg1: i32, %arg2: memref<1x8x192xbf16, #tpu.memory_space<vmem>>, %arg3: memref<1x8x192xbf16, #tpu.memory_space<vmem>>, %arg4: memref<1x1x8xf32, #tpu.memory_space<vmem>>, %arg5: memref<1x8x64xbf16, #tpu.memory_space<vmem>>, %arg6: memref<4x8x1xf32, #tpu.memory_space<vmem>>, %arg7: memref<4x8x1xf32, #tpu.memory_space<vmem>>, %arg8: memref<4x8x16xf32, #tpu.memory_space<vmem>>) attributes {dimension_semantics = [#tpu.dimension_semantics<parallel>, #tpu.dimension_semantics<arbitrary>], iteration_bounds = array<i64: 2, 1>, scalar_prefetch = 0 : i64, scratch_operands = 3 : i64, tpu.core_type = #tpu.core_type<tc>, window_params = [{transform_indices = @transform_0, window_bounds = array<i64: 1, 8, 192>}, {transform_indices = @transform_1, window_bounds = array<i64: 1, 8, 192>}, {transform_indices = @transform_2, window_bounds = array<i64: 1, 1, 8>}, {transform_indices = @transform_3, window_bounds = array<i64: 1, 8, 64>}]} {
    %c0_i32 = arith.constant 0 : i32
    %0 = arith.cmpi eq, %arg1, %c0_i32 : i32
    %1 = arith.extui %0 : i1 to i32
    %c0_i32_0 = arith.constant 0 : i32
    %2 = arith.cmpi ne, %1, %c0_i32_0 : i32
    scf.if %2 {
      %cst_104 = arith.constant -1.000000e+30 : f32
      %182 = vector.broadcast %cst_104 : f32 to vector<4x8x1xf32>
      %c0_105 = arith.constant 0 : index
      %c0_106 = arith.constant 0 : index
      %c0_107 = arith.constant 0 : index
      %183 = vector.load %arg6[%c0_105, %c0_106, %c0_107] : memref<4x8x1xf32, #tpu.memory_space<vmem>>, vector<4x8x1xf32>
      tpu.vector_store %arg6[%c0_105, %c0_106, %c0_107], %182 {strides = array<i32>} : memref<4x8x1xf32, #tpu.memory_space<vmem>>, vector<4x8x1xf32>,
      %cst_108 = arith.constant 0.000000e+00 : f32
      %184 = vector.broadcast %cst_108 : f32 to vector<4x8x1xf32>
      %c0_109 = arith.constant 0 : index
      %c0_110 = arith.constant 0 : index
      %c0_111 = arith.constant 0 : index
      %185 = vector.load %arg7[%c0_109, %c0_110, %c0_111] : memref<4x8x1xf32, #tpu.memory_space<vmem>>, vector<4x8x1xf32>
      tpu.vector_store %arg7[%c0_109, %c0_110, %c0_111], %184 {strides = array<i32>} : memref<4x8x1xf32, #tpu.memory_space<vmem>>, vector<4x8x1xf32>,
      %cst_112 = arith.constant 0.000000e+00 : f32
      %186 = vector.broadcast %cst_112 : f32 to vector<4x8x16xf32>
      %c0_113 = arith.constant 0 : index
      %c0_114 = arith.constant 0 : index
      %c0_115 = arith.constant 0 : index
      %187 = vector.load %arg8[%c0_113, %c0_114, %c0_115] : memref<4x8x16xf32, #tpu.memory_space<vmem>>, vector<4x8x16xf32>
      tpu.vector_store %arg8[%c0_113, %c0_114, %c0_115], %186 {strides = array<i32>} : memref<4x8x16xf32, #tpu.memory_space<vmem>>, vector<4x8x16xf32>,
    } else {
    }
    %c0 = arith.constant 0 : index
    %c0_1 = arith.constant 0 : index
    %c0_2 = arith.constant 0 : index
    %3 = vector.load %arg2[%c0, %c0_1, %c0_2] : memref<1x8x192xbf16, #tpu.memory_space<vmem>>, vector<1x8x192xbf16>
    %4 = vector.shape_cast %3 : vector<1x8x192xbf16> to vector<8x192xbf16>
    %c0_3 = arith.constant 0 : index
    %c0_4 = arith.constant 0 : index
    %c0_5 = arith.constant 0 : index
    %5 = vector.load %arg3[%c0_3, %c0_4, %c0_5] : memref<1x8x192xbf16, #tpu.memory_space<vmem>>, vector<1x8x192xbf16>
    %6 = vector.shape_cast %5 : vector<1x8x192xbf16> to vector<8x192xbf16>
    %c0_6 = arith.constant 0 : index
    %c0_7 = arith.constant 0 : index
    %c0_8 = arith.constant 0 : index
    %7 = vector.load %arg4[%c0_6, %c0_7, %c0_8] : memref<1x1x8xf32, #tpu.memory_space<vmem>>, vector<1x1x8xf32>
    %8 = vector.shape_cast %7 : vector<1x1x8xf32> to vector<1x8xf32>
    %cst = arith.constant 0.000000e+00 : f32
    %9 = vector.broadcast %cst : f32 to vector<1x8xf32>
    %10 = arith.cmpf ogt, %8, %9 : vector<1x8xf32>
    %11 = tpu.iota {dimensions = array<i32: 0>} : vector<8x8xi32>
    %c8_i32 = arith.constant 8 : i32
    %12 = arith.muli %arg1, %c8_i32 : i32
    %13 = tpu.iota {dimensions = array<i32: 1>} : vector<8x8xi32>
    %14 = vector.broadcast %12 : i32 to vector<8x8xi32>
    %15 = arith.addi %14, %13 : vector<8x8xi32>
    %16 = arith.cmpi sle, %15, %11 : vector<8x8xi32>
    %17 = vector.broadcast %10 : vector<1x8xi1> to vector<8x8xi1>
    %18 = arith.andi %17, %16 : vector<8x8xi1>
    %19 = vector.extract_strided_slice %4 {offsets = [0, 0], sizes = [8, 16], strides = [1, 1]} : vector<8x192xbf16> to vector<8x16xbf16>
    %20 = vector.extract_strided_slice %6 {offsets = [0, 64], sizes = [8, 16], strides = [1, 1]} : vector<8x192xbf16> to vector<8x16xbf16>
    %21 = vector.extract_strided_slice %6 {offsets = [0, 128], sizes = [8, 16], strides = [1, 1]} : vector<8x192xbf16> to vector<8x16xbf16>
    %cst_9 = arith.constant dense<0.000000e+00> : vector<8x8xf32>
    %22 = tpu.matmul %19, %20, %cst_9 {dimension_numbers = #tpu.dot_dimension_numbers<[1], [1], [0], [0], [0, 0, 1, 0], [], []>} : vector<8x16xbf16>, vector<8x16xbf16>, vector<8x8xf32> -> vector<8x8xf32>
    %cst_10 = arith.constant -1.000000e+30 : f32
    %23 = vector.broadcast %cst_10 : f32 to vector<8x8xf32>
    %24 = arith.select %18, %22, %23 : vector<8x8xi1>, vector<8x8xf32>
    %c0_11 = arith.constant 0 : index
    %c0_12 = arith.constant 0 : index
    %c0_13 = arith.constant 0 : index
    %25 = vector.load %arg6[%c0_11, %c0_12, %c0_13] : memref<4x8x1xf32, #tpu.memory_space<vmem>>, vector<1x8x1xf32>
    %26 = vector.shape_cast %25 : vector<1x8x1xf32> to vector<8x1xf32>
    %cst_14 = arith.constant dense<0xFF800000> : vector<8xf32>
    %27 = vector.multi_reduction <maximumf>, %24, %cst_14 [1] : vector<8x8xf32> to vector<8xf32>
    %28 = vector.shape_cast %27 : vector<8xf32> to vector<8x1xf32>
    %29 = arith.maximumf %26, %28 : vector<8x1xf32>
    %30 = arith.subf %26, %29 : vector<8x1xf32>
    %31 = math.exp %30 : vector<8x1xf32>
    %32 = vector.broadcast %29 : vector<8x1xf32> to vector<8x8xf32>
    %33 = arith.subf %24, %32 : vector<8x8xf32>
    %34 = math.exp %33 : vector<8x8xf32>
    %cst_15 = arith.constant 0.000000e+00 : f32
    %35 = vector.broadcast %cst_15 : f32 to vector<8x8xf32>
    %36 = arith.select %18, %34, %35 : vector<8x8xi1>, vector<8x8xf32>
    %c0_16 = arith.constant 0 : index
    %c0_17 = arith.constant 0 : index
    %c0_18 = arith.constant 0 : index
    %37 = vector.load %arg7[%c0_16, %c0_17, %c0_18] : memref<4x8x1xf32, #tpu.memory_space<vmem>>, vector<1x8x1xf32>
    %38 = vector.shape_cast %37 : vector<1x8x1xf32> to vector<8x1xf32>
    %39 = arith.mulf %31, %38 : vector<8x1xf32>
    %cst_19 = arith.constant dense<0.000000e+00> : vector<8xf32>
    %40 = vector.multi_reduction <add>, %36, %cst_19 [1] : vector<8x8xf32> to vector<8xf32>
    %41 = vector.shape_cast %40 : vector<8xf32> to vector<8x1xf32>
    %42 = arith.addf %39, %41 : vector<8x1xf32>
    %c0_20 = arith.constant 0 : index
    %c0_21 = arith.constant 0 : index
    %c0_22 = arith.constant 0 : index
    %43 = vector.load %arg7[%c0_20, %c0_21, %c0_22] : memref<4x8x1xf32, #tpu.memory_space<vmem>>, vector<1x8x1xf32>
    %44 = vector.shape_cast %43 : vector<1x8x1xf32> to vector<8x1xf32>
    %45 = vector.shape_cast %42 : vector<8x1xf32> to vector<1x8x1xf32>
    tpu.vector_store %arg7[%c0_20, %c0_21, %c0_22], %45 {strides = array<i32>} : memref<4x8x1xf32, #tpu.memory_space<vmem>>, vector<1x8x1xf32>,
    %c0_23 = arith.constant 0 : index
    %c0_24 = arith.constant 0 : index
    %c0_25 = arith.constant 0 : index
    %46 = vector.load %arg8[%c0_23, %c0_24, %c0_25] : memref<4x8x16xf32, #tpu.memory_space<vmem>>, vector<1x8x16xf32>
    %47 = vector.shape_cast %46 : vector<1x8x16xf32> to vector<8x16xf32>
    %48 = vector.broadcast %31 : vector<8x1xf32> to vector<8x16xf32>
    %49 = arith.mulf %48, %47 : vector<8x16xf32>
    %50 = arith.truncf %36 : vector<8x8xf32> to vector<8x8xbf16>
    %cst_26 = arith.constant dense<0.000000e+00> : vector<8x16xf32>
    %51 = tpu.matmul %50, %21, %cst_26 {dimension_numbers = #tpu.dot_dimension_numbers<[1], [0], [0], [1], [0, 0, 1, 1], [], []>} : vector<8x8xbf16>, vector<8x16xbf16>, vector<8x16xf32> -> vector<8x16xf32>
    %52 = arith.addf %49, %51 : vector<8x16xf32>
    %c0_27 = arith.constant 0 : index
    %c0_28 = arith.constant 0 : index
    %c0_29 = arith.constant 0 : index
    %53 = vector.load %arg8[%c0_27, %c0_28, %c0_29] : memref<4x8x16xf32, #tpu.memory_space<vmem>>, vector<1x8x16xf32>
    %54 = vector.shape_cast %53 : vector<1x8x16xf32> to vector<8x16xf32>
    %55 = vector.shape_cast %52 : vector<8x16xf32> to vector<1x8x16xf32>
    tpu.vector_store %arg8[%c0_27, %c0_28, %c0_29], %55 {strides = array<i32>} : memref<4x8x16xf32, #tpu.memory_space<vmem>>, vector<1x8x16xf32>,
    %c0_30 = arith.constant 0 : index
    %c0_31 = arith.constant 0 : index
    %c0_32 = arith.constant 0 : index
    %56 = vector.load %arg6[%c0_30, %c0_31, %c0_32] : memref<4x8x1xf32, #tpu.memory_space<vmem>>, vector<1x8x1xf32>
    %57 = vector.shape_cast %56 : vector<1x8x1xf32> to vector<8x1xf32>
    %58 = vector.shape_cast %29 : vector<8x1xf32> to vector<1x8x1xf32>
    tpu.vector_store %arg6[%c0_30, %c0_31, %c0_32], %58 {strides = array<i32>} : memref<4x8x1xf32, #tpu.memory_space<vmem>>, vector<1x8x1xf32>,
    %59 = vector.extract_strided_slice %4 {offsets = [0, 16], sizes = [8, 16], strides = [1, 1]} : vector<8x192xbf16> to vector<8x16xbf16>
    %60 = vector.extract_strided_slice %6 {offsets = [0, 80], sizes = [8, 16], strides = [1, 1]} : vector<8x192xbf16> to vector<8x16xbf16>
    %61 = vector.extract_strided_slice %6 {offsets = [0, 144], sizes = [8, 16], strides = [1, 1]} : vector<8x192xbf16> to vector<8x16xbf16>
    %cst_33 = arith.constant dense<0.000000e+00> : vector<8x8xf32>
    %62 = tpu.matmul %59, %60, %cst_33 {dimension_numbers = #tpu.dot_dimension_numbers<[1], [1], [0], [0], [0, 0, 1, 0], [], []>} : vector<8x16xbf16>, vector<8x16xbf16>, vector<8x8xf32> -> vector<8x8xf32>
    %cst_34 = arith.constant -1.000000e+30 : f32
    %63 = vector.broadcast %cst_34 : f32 to vector<8x8xf32>
    %64 = arith.select %18, %62, %63 : vector<8x8xi1>, vector<8x8xf32>
    %c1 = arith.constant 1 : index
    %c0_35 = arith.constant 0 : index
    %c0_36 = arith.constant 0 : index
    %65 = vector.load %arg6[%c1, %c0_35, %c0_36] : memref<4x8x1xf32, #tpu.memory_space<vmem>>, vector<1x8x1xf32>
    %66 = vector.shape_cast %65 : vector<1x8x1xf32> to vector<8x1xf32>
    %cst_37 = arith.constant dense<0xFF800000> : vector<8xf32>
    %67 = vector.multi_reduction <maximumf>, %64, %cst_37 [1] : vector<8x8xf32> to vector<8xf32>
    %68 = vector.shape_cast %67 : vector<8xf32> to vector<8x1xf32>
    %69 = arith.maximumf %66, %68 : vector<8x1xf32>
    %70 = arith.subf %66, %69 : vector<8x1xf32>
    %71 = math.exp %70 : vector<8x1xf32>
    %72 = vector.broadcast %69 : vector<8x1xf32> to vector<8x8xf32>
    %73 = arith.subf %64, %72 : vector<8x8xf32>
    %74 = math.exp %73 : vector<8x8xf32>
    %cst_38 = arith.constant 0.000000e+00 : f32
    %75 = vector.broadcast %cst_38 : f32 to vector<8x8xf32>
    %76 = arith.select %18, %74, %75 : vector<8x8xi1>, vector<8x8xf32>
    %c1_39 = arith.constant 1 : index
    %c0_40 = arith.constant 0 : index
    %c0_41 = arith.constant 0 : index
    %77 = vector.load %arg7[%c1_39, %c0_40, %c0_41] : memref<4x8x1xf32, #tpu.memory_space<vmem>>, vector<1x8x1xf32>
    %78 = vector.shape_cast %77 : vector<1x8x1xf32> to vector<8x1xf32>
    %79 = arith.mulf %71, %78 : vector<8x1xf32>
    %cst_42 = arith.constant dense<0.000000e+00> : vector<8xf32>
    %80 = vector.multi_reduction <add>, %76, %cst_42 [1] : vector<8x8xf32> to vector<8xf32>
    %81 = vector.shape_cast %80 : vector<8xf32> to vector<8x1xf32>
    %82 = arith.addf %79, %81 : vector<8x1xf32>
    %c1_43 = arith.constant 1 : index
    %c0_44 = arith.constant 0 : index
    %c0_45 = arith.constant 0 : index
    %83 = vector.load %arg7[%c1_43, %c0_44, %c0_45] : memref<4x8x1xf32, #tpu.memory_space<vmem>>, vector<1x8x1xf32>
    %84 = vector.shape_cast %83 : vector<1x8x1xf32> to vector<8x1xf32>
    %85 = vector.shape_cast %82 : vector<8x1xf32> to vector<1x8x1xf32>
    tpu.vector_store %arg7[%c1_43, %c0_44, %c0_45], %85 {strides = array<i32>} : memref<4x8x1xf32, #tpu.memory_space<vmem>>, vector<1x8x1xf32>,
    %c1_46 = arith.constant 1 : index
    %c0_47 = arith.constant 0 : index
    %c0_48 = arith.constant 0 : index
    %86 = vector.load %arg8[%c1_46, %c0_47, %c0_48] : memref<4x8x16xf32, #tpu.memory_space<vmem>>, vector<1x8x16xf32>
    %87 = vector.shape_cast %86 : vector<1x8x16xf32> to vector<8x16xf32>
    %88 = vector.broadcast %71 : vector<8x1xf32> to vector<8x16xf32>
    %89 = arith.mulf %88, %87 : vector<8x16xf32>
    %90 = arith.truncf %76 : vector<8x8xf32> to vector<8x8xbf16>
    %cst_49 = arith.constant dense<0.000000e+00> : vector<8x16xf32>
    %91 = tpu.matmul %90, %61, %cst_49 {dimension_numbers = #tpu.dot_dimension_numbers<[1], [0], [0], [1], [0, 0, 1, 1], [], []>} : vector<8x8xbf16>, vector<8x16xbf16>, vector<8x16xf32> -> vector<8x16xf32>
    %92 = arith.addf %89, %91 : vector<8x16xf32>
    %c1_50 = arith.constant 1 : index
    %c0_51 = arith.constant 0 : index
    %c0_52 = arith.constant 0 : index
    %93 = vector.load %arg8[%c1_50, %c0_51, %c0_52] : memref<4x8x16xf32, #tpu.memory_space<vmem>>, vector<1x8x16xf32>
    %94 = vector.shape_cast %93 : vector<1x8x16xf32> to vector<8x16xf32>
    %95 = vector.shape_cast %92 : vector<8x16xf32> to vector<1x8x16xf32>
    tpu.vector_store %arg8[%c1_50, %c0_51, %c0_52], %95 {strides = array<i32>} : memref<4x8x16xf32, #tpu.memory_space<vmem>>, vector<1x8x16xf32>,
    %c1_53 = arith.constant 1 : index
    %c0_54 = arith.constant 0 : index
    %c0_55 = arith.constant 0 : index
    %96 = vector.load %arg6[%c1_53, %c0_54, %c0_55] : memref<4x8x1xf32, #tpu.memory_space<vmem>>, vector<1x8x1xf32>
    %97 = vector.shape_cast %96 : vector<1x8x1xf32> to vector<8x1xf32>
    %98 = vector.shape_cast %69 : vector<8x1xf32> to vector<1x8x1xf32>
    tpu.vector_store %arg6[%c1_53, %c0_54, %c0_55], %98 {strides = array<i32>} : memref<4x8x1xf32, #tpu.memory_space<vmem>>, vector<1x8x1xf32>,
    %99 = vector.extract_strided_slice %4 {offsets = [0, 32], sizes = [8, 16], strides = [1, 1]} : vector<8x192xbf16> to vector<8x16xbf16>
    %100 = vector.extract_strided_slice %6 {offsets = [0, 96], sizes = [8, 16], strides = [1, 1]} : vector<8x192xbf16> to vector<8x16xbf16>
    %101 = vector.extract_strided_slice %6 {offsets = [0, 160], sizes = [8, 16], strides = [1, 1]} : vector<8x192xbf16> to vector<8x16xbf16>
    %cst_56 = arith.constant dense<0.000000e+00> : vector<8x8xf32>
    %102 = tpu.matmul %99, %100, %cst_56 {dimension_numbers = #tpu.dot_dimension_numbers<[1], [1], [0], [0], [0, 0, 1, 0], [], []>} : vector<8x16xbf16>, vector<8x16xbf16>, vector<8x8xf32> -> vector<8x8xf32>
    %cst_57 = arith.constant -1.000000e+30 : f32
    %103 = vector.broadcast %cst_57 : f32 to vector<8x8xf32>
    %104 = arith.select %18, %102, %103 : vector<8x8xi1>, vector<8x8xf32>
    %c2 = arith.constant 2 : index
    %c0_58 = arith.constant 0 : index
    %c0_59 = arith.constant 0 : index
    %105 = vector.load %arg6[%c2, %c0_58, %c0_59] : memref<4x8x1xf32, #tpu.memory_space<vmem>>, vector<1x8x1xf32>
    %106 = vector.shape_cast %105 : vector<1x8x1xf32> to vector<8x1xf32>
    %cst_60 = arith.constant dense<0xFF800000> : vector<8xf32>
    %107 = vector.multi_reduction <maximumf>, %104, %cst_60 [1] : vector<8x8xf32> to vector<8xf32>
    %108 = vector.shape_cast %107 : vector<8xf32> to vector<8x1xf32>
    %109 = arith.maximumf %106, %108 : vector<8x1xf32>
    %110 = arith.subf %106, %109 : vector<8x1xf32>
    %111 = math.exp %110 : vector<8x1xf32>
    %112 = vector.broadcast %109 : vector<8x1xf32> to vector<8x8xf32>
    %113 = arith.subf %104, %112 : vector<8x8xf32>
    %114 = math.exp %113 : vector<8x8xf32>
    %cst_61 = arith.constant 0.000000e+00 : f32
    %115 = vector.broadcast %cst_61 : f32 to vector<8x8xf32>
    %116 = arith.select %18, %114, %115 : vector<8x8xi1>, vector<8x8xf32>
    %c2_62 = arith.constant 2 : index
    %c0_63 = arith.constant 0 : index
    %c0_64 = arith.constant 0 : index
    %117 = vector.load %arg7[%c2_62, %c0_63, %c0_64] : memref<4x8x1xf32, #tpu.memory_space<vmem>>, vector<1x8x1xf32>
    %118 = vector.shape_cast %117 : vector<1x8x1xf32> to vector<8x1xf32>
    %119 = arith.mulf %111, %118 : vector<8x1xf32>
    %cst_65 = arith.constant dense<0.000000e+00> : vector<8xf32>
    %120 = vector.multi_reduction <add>, %116, %cst_65 [1] : vector<8x8xf32> to vector<8xf32>
    %121 = vector.shape_cast %120 : vector<8xf32> to vector<8x1xf32>
    %122 = arith.addf %119, %121 : vector<8x1xf32>
    %c2_66 = arith.constant 2 : index
    %c0_67 = arith.constant 0 : index
    %c0_68 = arith.constant 0 : index
    %123 = vector.load %arg7[%c2_66, %c0_67, %c0_68] : memref<4x8x1xf32, #tpu.memory_space<vmem>>, vector<1x8x1xf32>
    %124 = vector.shape_cast %123 : vector<1x8x1xf32> to vector<8x1xf32>
    %125 = vector.shape_cast %122 : vector<8x1xf32> to vector<1x8x1xf32>
    tpu.vector_store %arg7[%c2_66, %c0_67, %c0_68], %125 {strides = array<i32>} : memref<4x8x1xf32, #tpu.memory_space<vmem>>, vector<1x8x1xf32>,
    %c2_69 = arith.constant 2 : index
    %c0_70 = arith.constant 0 : index
    %c0_71 = arith.constant 0 : index
    %126 = vector.load %arg8[%c2_69, %c0_70, %c0_71] : memref<4x8x16xf32, #tpu.memory_space<vmem>>, vector<1x8x16xf32>
    %127 = vector.shape_cast %126 : vector<1x8x16xf32> to vector<8x16xf32>
    %128 = vector.broadcast %111 : vector<8x1xf32> to vector<8x16xf32>
    %129 = arith.mulf %128, %127 : vector<8x16xf32>
    %130 = arith.truncf %116 : vector<8x8xf32> to vector<8x8xbf16>
    %cst_72 = arith.constant dense<0.000000e+00> : vector<8x16xf32>
    %131 = tpu.matmul %130, %101, %cst_72 {dimension_numbers = #tpu.dot_dimension_numbers<[1], [0], [0], [1], [0, 0, 1, 1], [], []>} : vector<8x8xbf16>, vector<8x16xbf16>, vector<8x16xf32> -> vector<8x16xf32>
    %132 = arith.addf %129, %131 : vector<8x16xf32>
    %c2_73 = arith.constant 2 : index
    %c0_74 = arith.constant 0 : index
    %c0_75 = arith.constant 0 : index
    %133 = vector.load %arg8[%c2_73, %c0_74, %c0_75] : memref<4x8x16xf32, #tpu.memory_space<vmem>>, vector<1x8x16xf32>
    %134 = vector.shape_cast %133 : vector<1x8x16xf32> to vector<8x16xf32>
    %135 = vector.shape_cast %132 : vector<8x16xf32> to vector<1x8x16xf32>
    tpu.vector_store %arg8[%c2_73, %c0_74, %c0_75], %135 {strides = array<i32>} : memref<4x8x16xf32, #tpu.memory_space<vmem>>, vector<1x8x16xf32>,
    %c2_76 = arith.constant 2 : index
    %c0_77 = arith.constant 0 : index
    %c0_78 = arith.constant 0 : index
    %136 = vector.load %arg6[%c2_76, %c0_77, %c0_78] : memref<4x8x1xf32, #tpu.memory_space<vmem>>, vector<1x8x1xf32>
    %137 = vector.shape_cast %136 : vector<1x8x1xf32> to vector<8x1xf32>
    %138 = vector.shape_cast %109 : vector<8x1xf32> to vector<1x8x1xf32>
    tpu.vector_store %arg6[%c2_76, %c0_77, %c0_78], %138 {strides = array<i32>} : memref<4x8x1xf32, #tpu.memory_space<vmem>>, vector<1x8x1xf32>,
    %139 = vector.extract_strided_slice %4 {offsets = [0, 48], sizes = [8, 16], strides = [1, 1]} : vector<8x192xbf16> to vector<8x16xbf16>
    %140 = vector.extract_strided_slice %6 {offsets = [0, 112], sizes = [8, 16], strides = [1, 1]} : vector<8x192xbf16> to vector<8x16xbf16>
    %141 = vector.extract_strided_slice %6 {offsets = [0, 176], sizes = [8, 16], strides = [1, 1]} : vector<8x192xbf16> to vector<8x16xbf16>
    %cst_79 = arith.constant dense<0.000000e+00> : vector<8x8xf32>
    %142 = tpu.matmul %139, %140, %cst_79 {dimension_numbers = #tpu.dot_dimension_numbers<[1], [1], [0], [0], [0, 0, 1, 0], [], []>} : vector<8x16xbf16>, vector<8x16xbf16>, vector<8x8xf32> -> vector<8x8xf32>
    %cst_80 = arith.constant -1.000000e+30 : f32
    %143 = vector.broadcast %cst_80 : f32 to vector<8x8xf32>
    %144 = arith.select %18, %142, %143 : vector<8x8xi1>, vector<8x8xf32>
    %c3 = arith.constant 3 : index
    %c0_81 = arith.constant 0 : index
    %c0_82 = arith.constant 0 : index
    %145 = vector.load %arg6[%c3, %c0_81, %c0_82] : memref<4x8x1xf32, #tpu.memory_space<vmem>>, vector<1x8x1xf32>
    %146 = vector.shape_cast %145 : vector<1x8x1xf32> to vector<8x1xf32>
    %cst_83 = arith.constant dense<0xFF800000> : vector<8xf32>
    %147 = vector.multi_reduction <maximumf>, %144, %cst_83 [1] : vector<8x8xf32> to vector<8xf32>
    %148 = vector.shape_cast %147 : vector<8xf32> to vector<8x1xf32>
    %149 = arith.maximumf %146, %148 : vector<8x1xf32>
    %150 = arith.subf %146, %149 : vector<8x1xf32>
    %151 = math.exp %150 : vector<8x1xf32>
    %152 = vector.broadcast %149 : vector<8x1xf32> to vector<8x8xf32>
    %153 = arith.subf %144, %152 : vector<8x8xf32>
    %154 = math.exp %153 : vector<8x8xf32>
    %cst_84 = arith.constant 0.000000e+00 : f32
    %155 = vector.broadcast %cst_84 : f32 to vector<8x8xf32>
    %156 = arith.select %18, %154, %155 : vector<8x8xi1>, vector<8x8xf32>
    %c3_85 = arith.constant 3 : index
    %c0_86 = arith.constant 0 : index
    %c0_87 = arith.constant 0 : index
    %157 = vector.load %arg7[%c3_85, %c0_86, %c0_87] : memref<4x8x1xf32, #tpu.memory_space<vmem>>, vector<1x8x1xf32>
    %158 = vector.shape_cast %157 : vector<1x8x1xf32> to vector<8x1xf32>
    %159 = arith.mulf %151, %158 : vector<8x1xf32>
    %cst_88 = arith.constant dense<0.000000e+00> : vector<8xf32>
    %160 = vector.multi_reduction <add>, %156, %cst_88 [1] : vector<8x8xf32> to vector<8xf32>
    %161 = vector.shape_cast %160 : vector<8xf32> to vector<8x1xf32>
    %162 = arith.addf %159, %161 : vector<8x1xf32>
    %c3_89 = arith.constant 3 : index
    %c0_90 = arith.constant 0 : index
    %c0_91 = arith.constant 0 : index
    %163 = vector.load %arg7[%c3_89, %c0_90, %c0_91] : memref<4x8x1xf32, #tpu.memory_space<vmem>>, vector<1x8x1xf32>
    %164 = vector.shape_cast %163 : vector<1x8x1xf32> to vector<8x1xf32>
    %165 = vector.shape_cast %162 : vector<8x1xf32> to vector<1x8x1xf32>
    tpu.vector_store %arg7[%c3_89, %c0_90, %c0_91], %165 {strides = array<i32>} : memref<4x8x1xf32, #tpu.memory_space<vmem>>, vector<1x8x1xf32>,
    %c3_92 = arith.constant 3 : index
    %c0_93 = arith.constant 0 : index
    %c0_94 = arith.constant 0 : index
    %166 = vector.load %arg8[%c3_92, %c0_93, %c0_94] : memref<4x8x16xf32, #tpu.memory_space<vmem>>, vector<1x8x16xf32>
    %167 = vector.shape_cast %166 : vector<1x8x16xf32> to vector<8x16xf32>
    %168 = vector.broadcast %151 : vector<8x1xf32> to vector<8x16xf32>
    %169 = arith.mulf %168, %167 : vector<8x16xf32>
    %170 = arith.truncf %156 : vector<8x8xf32> to vector<8x8xbf16>
    %cst_95 = arith.constant dense<0.000000e+00> : vector<8x16xf32>
    %171 = tpu.matmul %170, %141, %cst_95 {dimension_numbers = #tpu.dot_dimension_numbers<[1], [0], [0], [1], [0, 0, 1, 1], [], []>} : vector<8x8xbf16>, vector<8x16xbf16>, vector<8x16xf32> -> vector<8x16xf32>
    %172 = arith.addf %169, %171 : vector<8x16xf32>
    %c3_96 = arith.constant 3 : index
    %c0_97 = arith.constant 0 : index
    %c0_98 = arith.constant 0 : index
    %173 = vector.load %arg8[%c3_96, %c0_97, %c0_98] : memref<4x8x16xf32, #tpu.memory_space<vmem>>, vector<1x8x16xf32>
    %174 = vector.shape_cast %173 : vector<1x8x16xf32> to vector<8x16xf32>
    %175 = vector.shape_cast %172 : vector<8x16xf32> to vector<1x8x16xf32>
    tpu.vector_store %arg8[%c3_96, %c0_97, %c0_98], %175 {strides = array<i32>} : memref<4x8x16xf32, #tpu.memory_space<vmem>>, vector<1x8x16xf32>,
    %c3_99 = arith.constant 3 : index
    %c0_100 = arith.constant 0 : index
    %c0_101 = arith.constant 0 : index
    %176 = vector.load %arg6[%c3_99, %c0_100, %c0_101] : memref<4x8x1xf32, #tpu.memory_space<vmem>>, vector<1x8x1xf32>
    %177 = vector.shape_cast %176 : vector<1x8x1xf32> to vector<8x1xf32>
    %178 = vector.shape_cast %149 : vector<8x1xf32> to vector<1x8x1xf32>
    tpu.vector_store %arg6[%c3_99, %c0_100, %c0_101], %178 {strides = array<i32>} : memref<4x8x1xf32, #tpu.memory_space<vmem>>, vector<1x8x1xf32>,
    %c0_i32_102 = arith.constant 0 : i32
    %179 = arith.cmpi eq, %arg1, %c0_i32_102 : i32
    %180 = arith.extui %179 : i1 to i32
    %c0_i32_103 = arith.constant 0 : i32
    %181 = arith.cmpi ne, %180, %c0_i32_103 : i32
    scf.if %181 {
      %c0_104 = arith.constant 0 : index
      %c0_105 = arith.constant 0 : index
      %c0_106 = arith.constant 0 : index
      %182 = vector.load %arg7[%c0_104, %c0_105, %c0_106] : memref<4x8x1xf32, #tpu.memory_space<vmem>>, vector<1x8x1xf32>
      %183 = vector.shape_cast %182 : vector<1x8x1xf32> to vector<8x1xf32>
      %cst_107 = arith.constant 1.000000e-30 : f32
      %184 = vector.broadcast %cst_107 : f32 to vector<8x1xf32>
      %185 = arith.maximumf %183, %184 : vector<8x1xf32>
      %186 = tpu.reciprocal %185 {approx = true} : vector<8x1xf32> -> vector<8x1xf32>
      %c0_108 = arith.constant 0 : index
      %c0_109 = arith.constant 0 : index
      %c0_110 = arith.constant 0 : index
      %187 = vector.load %arg8[%c0_108, %c0_109, %c0_110] : memref<4x8x16xf32, #tpu.memory_space<vmem>>, vector<1x8x16xf32>
      %188 = vector.shape_cast %187 : vector<1x8x16xf32> to vector<8x16xf32>
      %189 = vector.broadcast %186 : vector<8x1xf32> to vector<8x16xf32>
      %190 = arith.mulf %188, %189 : vector<8x16xf32>
      %c1_111 = arith.constant 1 : index
      %c0_112 = arith.constant 0 : index
      %c0_113 = arith.constant 0 : index
      %191 = vector.load %arg7[%c1_111, %c0_112, %c0_113] : memref<4x8x1xf32, #tpu.memory_space<vmem>>, vector<1x8x1xf32>
      %192 = vector.shape_cast %191 : vector<1x8x1xf32> to vector<8x1xf32>
      %cst_114 = arith.constant 1.000000e-30 : f32
      %193 = vector.broadcast %cst_114 : f32 to vector<8x1xf32>
      %194 = arith.maximumf %192, %193 : vector<8x1xf32>
      %195 = tpu.reciprocal %194 {approx = true} : vector<8x1xf32> -> vector<8x1xf32>
      %c1_115 = arith.constant 1 : index
      %c0_116 = arith.constant 0 : index
      %c0_117 = arith.constant 0 : index
      %196 = vector.load %arg8[%c1_115, %c0_116, %c0_117] : memref<4x8x16xf32, #tpu.memory_space<vmem>>, vector<1x8x16xf32>
      %197 = vector.shape_cast %196 : vector<1x8x16xf32> to vector<8x16xf32>
      %198 = vector.broadcast %195 : vector<8x1xf32> to vector<8x16xf32>
      %199 = arith.mulf %197, %198 : vector<8x16xf32>
      %c2_118 = arith.constant 2 : index
      %c0_119 = arith.constant 0 : index
      %c0_120 = arith.constant 0 : index
      %200 = vector.load %arg7[%c2_118, %c0_119, %c0_120] : memref<4x8x1xf32, #tpu.memory_space<vmem>>, vector<1x8x1xf32>
      %201 = vector.shape_cast %200 : vector<1x8x1xf32> to vector<8x1xf32>
      %cst_121 = arith.constant 1.000000e-30 : f32
      %202 = vector.broadcast %cst_121 : f32 to vector<8x1xf32>
      %203 = arith.maximumf %201, %202 : vector<8x1xf32>
      %204 = tpu.reciprocal %203 {approx = true} : vector<8x1xf32> -> vector<8x1xf32>
      %c2_122 = arith.constant 2 : index
      %c0_123 = arith.constant 0 : index
      %c0_124 = arith.constant 0 : index
      %205 = vector.load %arg8[%c2_122, %c0_123, %c0_124] : memref<4x8x16xf32, #tpu.memory_space<vmem>>, vector<1x8x16xf32>
      %206 = vector.shape_cast %205 : vector<1x8x16xf32> to vector<8x16xf32>
      %207 = vector.broadcast %204 : vector<8x1xf32> to vector<8x16xf32>
      %208 = arith.mulf %206, %207 : vector<8x16xf32>
      %c3_125 = arith.constant 3 : index
      %c0_126 = arith.constant 0 : index
      %c0_127 = arith.constant 0 : index
      %209 = vector.load %arg7[%c3_125, %c0_126, %c0_127] : memref<4x8x1xf32, #tpu.memory_space<vmem>>, vector<1x8x1xf32>
      %210 = vector.shape_cast %209 : vector<1x8x1xf32> to vector<8x1xf32>
      %cst_128 = arith.constant 1.000000e-30 : f32
      %211 = vector.broadcast %cst_128 : f32 to vector<8x1xf32>
      %212 = arith.maximumf %210, %211 : vector<8x1xf32>
      %213 = tpu.reciprocal %212 {approx = true} : vector<8x1xf32> -> vector<8x1xf32>
      %c3_129 = arith.constant 3 : index
      %c0_130 = arith.constant 0 : index
      %c0_131 = arith.constant 0 : index
      %214 = vector.load %arg8[%c3_129, %c0_130, %c0_131] : memref<4x8x16xf32, #tpu.memory_space<vmem>>, vector<1x8x16xf32>
      %215 = vector.shape_cast %214 : vector<1x8x16xf32> to vector<8x16xf32>
      %216 = vector.broadcast %213 : vector<8x1xf32> to vector<8x16xf32>
      %217 = arith.mulf %215, %216 : vector<8x16xf32>
      %218 = tpu.concatenate %190, %199, %208, %217 in 1 : vector<8x16xf32>, vector<8x16xf32>, vector<8x16xf32>, vector<8x16xf32> -> vector<8x64xf32>
      %219 = arith.truncf %218 : vector<8x64xf32> to vector<8x64xbf16>
      %c0_132 = arith.constant 0 : index
      %c0_133 = arith.constant 0 : index
      %c0_134 = arith.constant 0 : index
      %220 = vector.load %arg5[%c0_132, %c0_133, %c0_134] : memref<1x8x64xbf16, #tpu.memory_space<vmem>>, vector<1x8x64xbf16>
      %221 = vector.shape_cast %220 : vector<1x8x64xbf16> to vector<8x64xbf16>
      %222 = vector.shape_cast %219 : vector<8x64xbf16> to vector<1x8x64xbf16>
      tpu.vector_store %arg5[%c0_132, %c0_133, %c0_134], %222 {strides = array<i32>} : memref<1x8x64xbf16, #tpu.memory_space<vmem>>, vector<1x8x64xbf16>,
    } else {
    }
    return
  }
  func.func @transform_0(%arg0: i32, %arg1: i32) -> (i32, i32, i32) {
    %c0_i32 = arith.constant 0 : i32
    %c0_i32_0 = arith.constant 0 : i32
    %c0_i32_1 = arith.constant 0 : i32
    return %arg0, %c0_i32, %c0_i32_0 : i32, i32, i32
  }
  func.func @transform_1(%arg0: i32, %arg1: i32) -> (i32, i32, i32) {
    %c0_i32 = arith.constant 0 : i32
    %c0_i32_0 = arith.constant 0 : i32
    return %arg0, %arg1, %c0_i32 : i32, i32, i32
  }
  func.func @transform_2(%arg0: i32, %arg1: i32) -> (i32, i32, i32) {
    %c0_i32 = arith.constant 0 : i32
    %c0_i32_0 = arith.constant 0 : i32
    return %arg0, %c0_i32, %arg1 : i32, i32, i32
  }
  func.func @transform_3(%arg0: i32, %arg1: i32) -> (i32, i32, i32) {
    %c0_i32 = arith.constant 0 : i32
    %c0_i32_0 = arith.constant 0 : i32
    %c0_i32_1 = arith.constant 0 : i32
    return %arg0, %c0_i32, %c0_i32_0 : i32, i32, i32
  }
}

module attributes {stable_mosaic.version = 11 : i64} {
  func.func @_fused_linear_kernel(%arg0: i32, %arg1: i32, %arg2: i32, %arg3: memref<16x128xbf16, #tpu.memory_space<vmem>>, %arg4: memref<128x128xbf16, #tpu.memory_space<vmem>>, %arg5: memref<1x128xf32, #tpu.memory_space<vmem>>, %arg6: memref<1x128xf32, #tpu.memory_space<vmem>>, %arg7: memref<16x128xbf16, #tpu.memory_space<vmem>>, %arg8: memref<16x128xf32, #tpu.memory_space<vmem>>, %arg9: memref<16x1xf32, #tpu.memory_space<vmem>>) attributes {dimension_semantics = [#tpu.dimension_semantics<parallel>, #tpu.dimension_semantics<arbitrary>, #tpu.dimension_semantics<arbitrary>], iteration_bounds = array<i64: 1, 1, 1>, scalar_prefetch = 0 : i64, scratch_operands = 2 : i64, tpu.core_type = #tpu.core_type<tc>, window_params = [{transform_indices = @transform_0, window_bounds = array<i64: 16, 128>}, {transform_indices = @transform_1, window_bounds = array<i64: 128, 128>}, {transform_indices = @transform_2, window_bounds = array<i64: 1, 128>}, {transform_indices = @transform_3, window_bounds = array<i64: 1, 128>}, {transform_indices = @transform_4, window_bounds = array<i64: 16, 128>}]} {
    %c0_i32 = arith.constant 0 : i32
    %0 = arith.cmpi eq, %arg2, %c0_i32 : i32
    %1 = arith.extui %0 : i1 to i32
    %c0_i32_0 = arith.constant 0 : i32
    %2 = arith.cmpi ne, %1, %c0_i32_0 : i32
    scf.if %2 {
      %cst_16 = arith.constant 0.000000e+00 : f32
      %23 = vector.broadcast %cst_16 : f32 to vector<16x128xf32>
      %c0_17 = arith.constant 0 : index
      %c0_18 = arith.constant 0 : index
      %24 = vector.load %arg8[%c0_17, %c0_18] : memref<16x128xf32, #tpu.memory_space<vmem>>, vector<16x128xf32>
      tpu.vector_store %arg8[%c0_17, %c0_18], %23 {strides = array<i32>} : memref<16x128xf32, #tpu.memory_space<vmem>>, vector<16x128xf32>,
    } else {
    }
    %c0 = arith.constant 0 : index
    %c0_1 = arith.constant 0 : index
    %3 = vector.load %arg3[%c0, %c0_1] : memref<16x128xbf16, #tpu.memory_space<vmem>>, vector<16x128xbf16>
    %c0_i32_2 = arith.constant 0 : i32
    %4 = arith.cmpi eq, %arg1, %c0_i32_2 : i32
    %5 = arith.extui %4 : i1 to i32
    %c0_i32_3 = arith.constant 0 : i32
    %6 = arith.cmpi ne, %5, %c0_i32_3 : i32
    scf.if %6 {
      %23 = arith.extf %3 : vector<16x128xbf16> to vector<16x128xf32>
      %24 = arith.mulf %23, %23 : vector<16x128xf32>
      %cst_16 = arith.constant dense<0.000000e+00> : vector<16xf32>
      %25 = vector.multi_reduction <add>, %24, %cst_16 [1] : vector<16x128xf32> to vector<16xf32>
      %26 = vector.shape_cast %25 : vector<16xf32> to vector<16x1xf32>
      %cst_17 = arith.constant 1.562500e-02 : f32
      %27 = vector.broadcast %cst_17 : f32 to vector<16x1xf32>
      %28 = arith.mulf %26, %27 : vector<16x1xf32>
      %cst_18 = arith.constant 9.99999997E-7 : f32
      %29 = vector.broadcast %cst_18 : f32 to vector<16x1xf32>
      %30 = arith.addf %28, %29 : vector<16x1xf32>
      %31 = math.rsqrt %30 : vector<16x1xf32>
      %c0_19 = arith.constant 0 : index
      %c0_20 = arith.constant 0 : index
      %32 = vector.load %arg9[%c0_19, %c0_20] : memref<16x1xf32, #tpu.memory_space<vmem>>, vector<16x1xf32>
      tpu.vector_store %arg9[%c0_19, %c0_20], %31 {strides = array<i32>} : memref<16x1xf32, #tpu.memory_space<vmem>>, vector<16x1xf32>,
    } else {
    }
    %7 = arith.extf %3 : vector<16x128xbf16> to vector<16x128xf32>
    %c0_4 = arith.constant 0 : index
    %c0_5 = arith.constant 0 : index
    %8 = vector.load %arg9[%c0_4, %c0_5] : memref<16x1xf32, #tpu.memory_space<vmem>>, vector<16x1xf32>
    %9 = vector.broadcast %8 : vector<16x1xf32> to vector<16x128xf32>
    %10 = arith.mulf %7, %9 : vector<16x128xf32>
    %c0_6 = arith.constant 0 : index
    %c0_7 = arith.constant 0 : index
    %11 = vector.load %arg6[%c0_6, %c0_7] : memref<1x128xf32, #tpu.memory_space<vmem>>, vector<1x128xf32>
    %12 = vector.broadcast %11 : vector<1x128xf32> to vector<16x128xf32>
    %13 = arith.mulf %10, %12 : vector<16x128xf32>
    %14 = arith.truncf %13 : vector<16x128xf32> to vector<16x128xbf16>
    %c0_8 = arith.constant 0 : index
    %c0_9 = arith.constant 0 : index
    %15 = vector.load %arg8[%c0_8, %c0_9] : memref<16x128xf32, #tpu.memory_space<vmem>>, vector<16x128xf32>
    %c0_10 = arith.constant 0 : index
    %c0_11 = arith.constant 0 : index
    %16 = vector.load %arg4[%c0_10, %c0_11] : memref<128x128xbf16, #tpu.memory_space<vmem>>, vector<128x128xbf16>
    %cst = arith.constant dense<0.000000e+00> : vector<16x128xf32>
    %17 = tpu.matmul %14, %16, %cst {dimension_numbers = #tpu.dot_dimension_numbers<[1], [0], [0], [1], [0, 0, 1, 1], [], []>} : vector<16x128xbf16>, vector<128x128xbf16>, vector<16x128xf32> -> vector<16x128xf32>
    %18 = arith.addf %15, %17 : vector<16x128xf32>
    %c0_12 = arith.constant 0 : index
    %c0_13 = arith.constant 0 : index
    %19 = vector.load %arg8[%c0_12, %c0_13] : memref<16x128xf32, #tpu.memory_space<vmem>>, vector<16x128xf32>
    tpu.vector_store %arg8[%c0_12, %c0_13], %18 {strides = array<i32>} : memref<16x128xf32, #tpu.memory_space<vmem>>, vector<16x128xf32>,
    %c0_i32_14 = arith.constant 0 : i32
    %20 = arith.cmpi eq, %arg2, %c0_i32_14 : i32
    %21 = arith.extui %20 : i1 to i32
    %c0_i32_15 = arith.constant 0 : i32
    %22 = arith.cmpi ne, %21, %c0_i32_15 : i32
    scf.if %22 {
      %c0_16 = arith.constant 0 : index
      %c0_17 = arith.constant 0 : index
      %23 = vector.load %arg8[%c0_16, %c0_17] : memref<16x128xf32, #tpu.memory_space<vmem>>, vector<16x128xf32>
      %c0_18 = arith.constant 0 : index
      %c0_19 = arith.constant 0 : index
      %24 = vector.load %arg5[%c0_18, %c0_19] : memref<1x128xf32, #tpu.memory_space<vmem>>, vector<1x128xf32>
      %25 = vector.broadcast %24 : vector<1x128xf32> to vector<16x128xf32>
      %26 = arith.addf %23, %25 : vector<16x128xf32>
      %27 = arith.truncf %26 : vector<16x128xf32> to vector<16x128xbf16>
      %c0_20 = arith.constant 0 : index
      %c0_21 = arith.constant 0 : index
      %28 = vector.load %arg7[%c0_20, %c0_21] : memref<16x128xbf16, #tpu.memory_space<vmem>>, vector<16x128xbf16>
      tpu.vector_store %arg7[%c0_20, %c0_21], %27 {strides = array<i32>} : memref<16x128xbf16, #tpu.memory_space<vmem>>, vector<16x128xbf16>,
    } else {
    }
    return
  }
  func.func @transform_0(%arg0: i32, %arg1: i32, %arg2: i32) -> (i32, i32) {
    %c0_i32 = arith.constant 0 : i32
    return %arg0, %arg2 : i32, i32
  }
  func.func @transform_1(%arg0: i32, %arg1: i32, %arg2: i32) -> (i32, i32) {
    %c0_i32 = arith.constant 0 : i32
    return %arg2, %arg1 : i32, i32
  }
  func.func @transform_2(%arg0: i32, %arg1: i32, %arg2: i32) -> (i32, i32) {
    %c0_i32 = arith.constant 0 : i32
    %c0_i32_0 = arith.constant 0 : i32
    return %c0_i32, %arg1 : i32, i32
  }
  func.func @transform_3(%arg0: i32, %arg1: i32, %arg2: i32) -> (i32, i32) {
    %c0_i32 = arith.constant 0 : i32
    %c0_i32_0 = arith.constant 0 : i32
    return %c0_i32, %arg2 : i32, i32
  }
  func.func @transform_4(%arg0: i32, %arg1: i32, %arg2: i32) -> (i32, i32) {
    %c0_i32 = arith.constant 0 : i32
    return %arg0, %arg1 : i32, i32
  }
}

module attributes {stable_mosaic.version = 11 : i64} {
  func.func @_fused_linear_kernel(%arg0: i32, %arg1: i32, %arg2: i32, %arg3: memref<16x256xbf16, #tpu.memory_space<vmem>>, %arg4: memref<256x1024xbf16, #tpu.memory_space<vmem>>, %arg5: memref<1x1024xf32, #tpu.memory_space<vmem>>, %arg6: memref<16x1024xbf16, #tpu.memory_space<vmem>>, %arg7: memref<16x1024xf32, #tpu.memory_space<vmem>>) attributes {dimension_semantics = [#tpu.dimension_semantics<parallel>, #tpu.dimension_semantics<parallel>, #tpu.dimension_semantics<arbitrary>], iteration_bounds = array<i64: 1, 1, 1>, scalar_prefetch = 0 : i64, scratch_operands = 1 : i64, tpu.core_type = #tpu.core_type<tc>, window_params = [{transform_indices = @transform_0, window_bounds = array<i64: 16, 256>}, {transform_indices = @transform_1, window_bounds = array<i64: 256, 1024>}, {transform_indices = @transform_2, window_bounds = array<i64: 1, 1024>}, {transform_indices = @transform_3, window_bounds = array<i64: 16, 1024>}]} {
    %c0_i32 = arith.constant 0 : i32
    %0 = arith.cmpi eq, %arg2, %c0_i32 : i32
    %1 = arith.extui %0 : i1 to i32
    %c0_i32_0 = arith.constant 0 : i32
    %2 = arith.cmpi ne, %1, %c0_i32_0 : i32
    scf.if %2 {
      %cst_10 = arith.constant 0.000000e+00 : f32
      %12 = vector.broadcast %cst_10 : f32 to vector<16x1024xf32>
      %c0_11 = arith.constant 0 : index
      %c0_12 = arith.constant 0 : index
      %13 = vector.load %arg7[%c0_11, %c0_12] : memref<16x1024xf32, #tpu.memory_space<vmem>>, vector<16x1024xf32>
      tpu.vector_store %arg7[%c0_11, %c0_12], %12 {strides = array<i32>} : memref<16x1024xf32, #tpu.memory_space<vmem>>, vector<16x1024xf32>,
    } else {
    }
    %c0 = arith.constant 0 : index
    %c0_1 = arith.constant 0 : index
    %3 = vector.load %arg3[%c0, %c0_1] : memref<16x256xbf16, #tpu.memory_space<vmem>>, vector<16x256xbf16>
    %c0_2 = arith.constant 0 : index
    %c0_3 = arith.constant 0 : index
    %4 = vector.load %arg7[%c0_2, %c0_3] : memref<16x1024xf32, #tpu.memory_space<vmem>>, vector<16x1024xf32>
    %c0_4 = arith.constant 0 : index
    %c0_5 = arith.constant 0 : index
    %5 = vector.load %arg4[%c0_4, %c0_5] : memref<256x1024xbf16, #tpu.memory_space<vmem>>, vector<256x1024xbf16>
    %cst = arith.constant dense<0.000000e+00> : vector<16x1024xf32>
    %6 = tpu.matmul %3, %5, %cst {dimension_numbers = #tpu.dot_dimension_numbers<[1], [0], [0], [1], [0, 0, 1, 1], [], []>} : vector<16x256xbf16>, vector<256x1024xbf16>, vector<16x1024xf32> -> vector<16x1024xf32>
    %7 = arith.addf %4, %6 : vector<16x1024xf32>
    %c0_6 = arith.constant 0 : index
    %c0_7 = arith.constant 0 : index
    %8 = vector.load %arg7[%c0_6, %c0_7] : memref<16x1024xf32, #tpu.memory_space<vmem>>, vector<16x1024xf32>
    tpu.vector_store %arg7[%c0_6, %c0_7], %7 {strides = array<i32>} : memref<16x1024xf32, #tpu.memory_space<vmem>>, vector<16x1024xf32>,
    %c0_i32_8 = arith.constant 0 : i32
    %9 = arith.cmpi eq, %arg2, %c0_i32_8 : i32
    %10 = arith.extui %9 : i1 to i32
    %c0_i32_9 = arith.constant 0 : i32
    %11 = arith.cmpi ne, %10, %c0_i32_9 : i32
    scf.if %11 {
      %c0_10 = arith.constant 0 : index
      %c0_11 = arith.constant 0 : index
      %12 = vector.load %arg7[%c0_10, %c0_11] : memref<16x1024xf32, #tpu.memory_space<vmem>>, vector<16x1024xf32>
      %c0_12 = arith.constant 0 : index
      %c0_13 = arith.constant 0 : index
      %13 = vector.load %arg5[%c0_12, %c0_13] : memref<1x1024xf32, #tpu.memory_space<vmem>>, vector<1x1024xf32>
      %14 = vector.broadcast %13 : vector<1x1024xf32> to vector<16x1024xf32>
      %15 = arith.addf %12, %14 : vector<16x1024xf32>
      %16 = arith.truncf %15 : vector<16x1024xf32> to vector<16x1024xbf16>
      %c0_14 = arith.constant 0 : index
      %c0_15 = arith.constant 0 : index
      %17 = vector.load %arg6[%c0_14, %c0_15] : memref<16x1024xbf16, #tpu.memory_space<vmem>>, vector<16x1024xbf16>
      tpu.vector_store %arg6[%c0_14, %c0_15], %16 {strides = array<i32>} : memref<16x1024xbf16, #tpu.memory_space<vmem>>, vector<16x1024xbf16>,
    } else {
    }
    return
  }
  func.func @transform_0(%arg0: i32, %arg1: i32, %arg2: i32) -> (i32, i32) {
    %c0_i32 = arith.constant 0 : i32
    return %arg0, %arg2 : i32, i32
  }
  func.func @transform_1(%arg0: i32, %arg1: i32, %arg2: i32) -> (i32, i32) {
    %c0_i32 = arith.constant 0 : i32
    return %arg2, %arg1 : i32, i32
  }
  func.func @transform_2(%arg0: i32, %arg1: i32, %arg2: i32) -> (i32, i32) {
    %c0_i32 = arith.constant 0 : i32
    %c0_i32_0 = arith.constant 0 : i32
    return %c0_i32, %arg1 : i32, i32
  }
  func.func @transform_3(%arg0: i32, %arg1: i32, %arg2: i32) -> (i32, i32) {
    %c0_i32 = arith.constant 0 : i32
    return %arg0, %arg1 : i32, i32
  }
}

module attributes {stable_mosaic.version = 11 : i64} {
  func.func @_fused_linear_kernel(%arg0: i32, %arg1: i32, %arg2: i32, %arg3: memref<16x1024xbf16, #tpu.memory_space<vmem>>, %arg4: memref<1024x128xbf16, #tpu.memory_space<vmem>>, %arg5: memref<1x128xf32, #tpu.memory_space<vmem>>, %arg6: memref<16x128xbf16, #tpu.memory_space<vmem>>, %arg7: memref<16x128xf32, #tpu.memory_space<vmem>>) attributes {dimension_semantics = [#tpu.dimension_semantics<parallel>, #tpu.dimension_semantics<parallel>, #tpu.dimension_semantics<arbitrary>], iteration_bounds = array<i64: 1, 1, 2>, scalar_prefetch = 0 : i64, scratch_operands = 1 : i64, tpu.core_type = #tpu.core_type<tc>, window_params = [{transform_indices = @transform_0, window_bounds = array<i64: 16, 1024>}, {transform_indices = @transform_1, window_bounds = array<i64: 1024, 128>}, {transform_indices = @transform_2, window_bounds = array<i64: 1, 128>}, {transform_indices = @transform_3, window_bounds = array<i64: 16, 128>}]} {
    %c0_i32 = arith.constant 0 : i32
    %0 = arith.cmpi eq, %arg2, %c0_i32 : i32
    %1 = arith.extui %0 : i1 to i32
    %c0_i32_0 = arith.constant 0 : i32
    %2 = arith.cmpi ne, %1, %c0_i32_0 : i32
    scf.if %2 {
      %cst_9 = arith.constant 0.000000e+00 : f32
      %12 = vector.broadcast %cst_9 : f32 to vector<16x128xf32>
      %c0_10 = arith.constant 0 : index
      %c0_11 = arith.constant 0 : index
      %13 = vector.load %arg7[%c0_10, %c0_11] : memref<16x128xf32, #tpu.memory_space<vmem>>, vector<16x128xf32>
      tpu.vector_store %arg7[%c0_10, %c0_11], %12 {strides = array<i32>} : memref<16x128xf32, #tpu.memory_space<vmem>>, vector<16x128xf32>,
    } else {
    }
    %c0 = arith.constant 0 : index
    %c0_1 = arith.constant 0 : index
    %3 = vector.load %arg3[%c0, %c0_1] : memref<16x1024xbf16, #tpu.memory_space<vmem>>, vector<16x1024xbf16>
    %c0_2 = arith.constant 0 : index
    %c0_3 = arith.constant 0 : index
    %4 = vector.load %arg7[%c0_2, %c0_3] : memref<16x128xf32, #tpu.memory_space<vmem>>, vector<16x128xf32>
    %c0_4 = arith.constant 0 : index
    %c0_5 = arith.constant 0 : index
    %5 = vector.load %arg4[%c0_4, %c0_5] : memref<1024x128xbf16, #tpu.memory_space<vmem>>, vector<1024x128xbf16>
    %cst = arith.constant dense<0.000000e+00> : vector<16x128xf32>
    %6 = tpu.matmul %3, %5, %cst {dimension_numbers = #tpu.dot_dimension_numbers<[1], [0], [0], [1], [0, 0, 1, 1], [], []>} : vector<16x1024xbf16>, vector<1024x128xbf16>, vector<16x128xf32> -> vector<16x128xf32>
    %7 = arith.addf %4, %6 : vector<16x128xf32>
    %c0_6 = arith.constant 0 : index
    %c0_7 = arith.constant 0 : index
    %8 = vector.load %arg7[%c0_6, %c0_7] : memref<16x128xf32, #tpu.memory_space<vmem>>, vector<16x128xf32>
    tpu.vector_store %arg7[%c0_6, %c0_7], %7 {strides = array<i32>} : memref<16x128xf32, #tpu.memory_space<vmem>>, vector<16x128xf32>,
    %c1_i32 = arith.constant 1 : i32
    %9 = arith.cmpi eq, %arg2, %c1_i32 : i32
    %10 = arith.extui %9 : i1 to i32
    %c0_i32_8 = arith.constant 0 : i32
    %11 = arith.cmpi ne, %10, %c0_i32_8 : i32
    scf.if %11 {
      %c0_9 = arith.constant 0 : index
      %c0_10 = arith.constant 0 : index
      %12 = vector.load %arg7[%c0_9, %c0_10] : memref<16x128xf32, #tpu.memory_space<vmem>>, vector<16x128xf32>
      %c0_11 = arith.constant 0 : index
      %c0_12 = arith.constant 0 : index
      %13 = vector.load %arg5[%c0_11, %c0_12] : memref<1x128xf32, #tpu.memory_space<vmem>>, vector<1x128xf32>
      %14 = vector.broadcast %13 : vector<1x128xf32> to vector<16x128xf32>
      %15 = arith.addf %12, %14 : vector<16x128xf32>
      %16 = arith.negf %15 : vector<16x128xf32>
      %17 = math.exp %16 : vector<16x128xf32>
      %cst_13 = arith.constant 1.000000e+00 : f32
      %18 = vector.broadcast %cst_13 : f32 to vector<16x128xf32>
      %19 = arith.addf %18, %17 : vector<16x128xf32>
      %20 = arith.divf %18, %19 : vector<16x128xf32>
      %21 = arith.mulf %15, %20 : vector<16x128xf32>
      %22 = arith.truncf %21 : vector<16x128xf32> to vector<16x128xbf16>
      %c0_14 = arith.constant 0 : index
      %c0_15 = arith.constant 0 : index
      %23 = vector.load %arg6[%c0_14, %c0_15] : memref<16x128xbf16, #tpu.memory_space<vmem>>, vector<16x128xbf16>
      tpu.vector_store %arg6[%c0_14, %c0_15], %22 {strides = array<i32>} : memref<16x128xbf16, #tpu.memory_space<vmem>>, vector<16x128xbf16>,
    } else {
    }
    return
  }
  func.func @transform_0(%arg0: i32, %arg1: i32, %arg2: i32) -> (i32, i32) {
    %c0_i32 = arith.constant 0 : i32
    return %arg0, %arg2 : i32, i32
  }
  func.func @transform_1(%arg0: i32, %arg1: i32, %arg2: i32) -> (i32, i32) {
    %c0_i32 = arith.constant 0 : i32
    return %arg2, %arg1 : i32, i32
  }
  func.func @transform_2(%arg0: i32, %arg1: i32, %arg2: i32) -> (i32, i32) {
    %c0_i32 = arith.constant 0 : i32
    %c0_i32_0 = arith.constant 0 : i32
    return %c0_i32, %arg1 : i32, i32
  }
  func.func @transform_3(%arg0: i32, %arg1: i32, %arg2: i32) -> (i32, i32) {
    %c0_i32 = arith.constant 0 : i32
    return %arg0, %arg1 : i32, i32
  }
}

module attributes {stable_mosaic.version = 11 : i64} {
  func.func @_fused_linear_kernel(%arg0: i32, %arg1: i32, %arg2: i32, %arg3: memref<16x768xbf16, #tpu.memory_space<vmem>>, %arg4: memref<768x128xbf16, #tpu.memory_space<vmem>>, %arg5: memref<1x128xf32, #tpu.memory_space<vmem>>, %arg6: memref<16x128xbf16, #tpu.memory_space<vmem>>, %arg7: memref<16x128xf32, #tpu.memory_space<vmem>>) attributes {dimension_semantics = [#tpu.dimension_semantics<parallel>, #tpu.dimension_semantics<parallel>, #tpu.dimension_semantics<arbitrary>], iteration_bounds = array<i64: 1, 1, 1>, scalar_prefetch = 0 : i64, scratch_operands = 1 : i64, tpu.core_type = #tpu.core_type<tc>, window_params = [{transform_indices = @transform_0, window_bounds = array<i64: 16, 768>}, {transform_indices = @transform_1, window_bounds = array<i64: 768, 128>}, {transform_indices = @transform_2, window_bounds = array<i64: 1, 128>}, {transform_indices = @transform_3, window_bounds = array<i64: 16, 128>}]} {
    %c0_i32 = arith.constant 0 : i32
    %0 = arith.cmpi eq, %arg2, %c0_i32 : i32
    %1 = arith.extui %0 : i1 to i32
    %c0_i32_0 = arith.constant 0 : i32
    %2 = arith.cmpi ne, %1, %c0_i32_0 : i32
    scf.if %2 {
      %cst_10 = arith.constant 0.000000e+00 : f32
      %12 = vector.broadcast %cst_10 : f32 to vector<16x128xf32>
      %c0_11 = arith.constant 0 : index
      %c0_12 = arith.constant 0 : index
      %13 = vector.load %arg7[%c0_11, %c0_12] : memref<16x128xf32, #tpu.memory_space<vmem>>, vector<16x128xf32>
      tpu.vector_store %arg7[%c0_11, %c0_12], %12 {strides = array<i32>} : memref<16x128xf32, #tpu.memory_space<vmem>>, vector<16x128xf32>,
    } else {
    }
    %c0 = arith.constant 0 : index
    %c0_1 = arith.constant 0 : index
    %3 = vector.load %arg3[%c0, %c0_1] : memref<16x768xbf16, #tpu.memory_space<vmem>>, vector<16x768xbf16>
    %c0_2 = arith.constant 0 : index
    %c0_3 = arith.constant 0 : index
    %4 = vector.load %arg7[%c0_2, %c0_3] : memref<16x128xf32, #tpu.memory_space<vmem>>, vector<16x128xf32>
    %c0_4 = arith.constant 0 : index
    %c0_5 = arith.constant 0 : index
    %5 = vector.load %arg4[%c0_4, %c0_5] : memref<768x128xbf16, #tpu.memory_space<vmem>>, vector<768x128xbf16>
    %cst = arith.constant dense<0.000000e+00> : vector<16x128xf32>
    %6 = tpu.matmul %3, %5, %cst {dimension_numbers = #tpu.dot_dimension_numbers<[1], [0], [0], [1], [0, 0, 1, 1], [], []>} : vector<16x768xbf16>, vector<768x128xbf16>, vector<16x128xf32> -> vector<16x128xf32>
    %7 = arith.addf %4, %6 : vector<16x128xf32>
    %c0_6 = arith.constant 0 : index
    %c0_7 = arith.constant 0 : index
    %8 = vector.load %arg7[%c0_6, %c0_7] : memref<16x128xf32, #tpu.memory_space<vmem>>, vector<16x128xf32>
    tpu.vector_store %arg7[%c0_6, %c0_7], %7 {strides = array<i32>} : memref<16x128xf32, #tpu.memory_space<vmem>>, vector<16x128xf32>,
    %c0_i32_8 = arith.constant 0 : i32
    %9 = arith.cmpi eq, %arg2, %c0_i32_8 : i32
    %10 = arith.extui %9 : i1 to i32
    %c0_i32_9 = arith.constant 0 : i32
    %11 = arith.cmpi ne, %10, %c0_i32_9 : i32
    scf.if %11 {
      %c0_10 = arith.constant 0 : index
      %c0_11 = arith.constant 0 : index
      %12 = vector.load %arg7[%c0_10, %c0_11] : memref<16x128xf32, #tpu.memory_space<vmem>>, vector<16x128xf32>
      %c0_12 = arith.constant 0 : index
      %c0_13 = arith.constant 0 : index
      %13 = vector.load %arg5[%c0_12, %c0_13] : memref<1x128xf32, #tpu.memory_space<vmem>>, vector<1x128xf32>
      %14 = vector.broadcast %13 : vector<1x128xf32> to vector<16x128xf32>
      %15 = arith.addf %12, %14 : vector<16x128xf32>
      %16 = arith.negf %15 : vector<16x128xf32>
      %17 = math.exp %16 : vector<16x128xf32>
      %cst_14 = arith.constant 1.000000e+00 : f32
      %18 = vector.broadcast %cst_14 : f32 to vector<16x128xf32>
      %19 = arith.addf %18, %17 : vector<16x128xf32>
      %20 = arith.divf %18, %19 : vector<16x128xf32>
      %21 = arith.mulf %15, %20 : vector<16x128xf32>
      %22 = arith.truncf %21 : vector<16x128xf32> to vector<16x128xbf16>
      %c0_15 = arith.constant 0 : index
      %c0_16 = arith.constant 0 : index
      %23 = vector.load %arg6[%c0_15, %c0_16] : memref<16x128xbf16, #tpu.memory_space<vmem>>, vector<16x128xbf16>
      tpu.vector_store %arg6[%c0_15, %c0_16], %22 {strides = array<i32>} : memref<16x128xbf16, #tpu.memory_space<vmem>>, vector<16x128xbf16>,
    } else {
    }
    return
  }
  func.func @transform_0(%arg0: i32, %arg1: i32, %arg2: i32) -> (i32, i32) {
    %c0_i32 = arith.constant 0 : i32
    return %arg0, %arg2 : i32, i32
  }
  func.func @transform_1(%arg0: i32, %arg1: i32, %arg2: i32) -> (i32, i32) {
    %c0_i32 = arith.constant 0 : i32
    return %arg2, %arg1 : i32, i32
  }
  func.func @transform_2(%arg0: i32, %arg1: i32, %arg2: i32) -> (i32, i32) {
    %c0_i32 = arith.constant 0 : i32
    %c0_i32_0 = arith.constant 0 : i32
    return %c0_i32, %arg1 : i32, i32
  }
  func.func @transform_3(%arg0: i32, %arg1: i32, %arg2: i32) -> (i32, i32) {
    %c0_i32 = arith.constant 0 : i32
    return %arg0, %arg1 : i32, i32
  }
}

module attributes {stable_mosaic.version = 11 : i64} {
  func.func @_fused_linear_kernel(%arg0: i32, %arg1: i32, %arg2: i32, %arg3: memref<32x128xbf16, #tpu.memory_space<vmem>>, %arg4: memref<128x128xbf16, #tpu.memory_space<vmem>>, %arg5: memref<1x128xf32, #tpu.memory_space<vmem>>, %arg6: memref<32x128xbf16, #tpu.memory_space<vmem>>, %arg7: memref<32x128xf32, #tpu.memory_space<vmem>>) attributes {dimension_semantics = [#tpu.dimension_semantics<parallel>, #tpu.dimension_semantics<parallel>, #tpu.dimension_semantics<arbitrary>], iteration_bounds = array<i64: 1, 1, 1>, scalar_prefetch = 0 : i64, scratch_operands = 1 : i64, tpu.core_type = #tpu.core_type<tc>, window_params = [{transform_indices = @transform_0, window_bounds = array<i64: 32, 128>}, {transform_indices = @transform_1, window_bounds = array<i64: 128, 128>}, {transform_indices = @transform_2, window_bounds = array<i64: 1, 128>}, {transform_indices = @transform_3, window_bounds = array<i64: 32, 128>}]} {
    %c0_i32 = arith.constant 0 : i32
    %0 = arith.cmpi eq, %arg2, %c0_i32 : i32
    %1 = arith.extui %0 : i1 to i32
    %c0_i32_0 = arith.constant 0 : i32
    %2 = arith.cmpi ne, %1, %c0_i32_0 : i32
    scf.if %2 {
      %cst_10 = arith.constant 0.000000e+00 : f32
      %12 = vector.broadcast %cst_10 : f32 to vector<32x128xf32>
      %c0_11 = arith.constant 0 : index
      %c0_12 = arith.constant 0 : index
      %13 = vector.load %arg7[%c0_11, %c0_12] : memref<32x128xf32, #tpu.memory_space<vmem>>, vector<32x128xf32>
      tpu.vector_store %arg7[%c0_11, %c0_12], %12 {strides = array<i32>} : memref<32x128xf32, #tpu.memory_space<vmem>>, vector<32x128xf32>,
    } else {
    }
    %c0 = arith.constant 0 : index
    %c0_1 = arith.constant 0 : index
    %3 = vector.load %arg3[%c0, %c0_1] : memref<32x128xbf16, #tpu.memory_space<vmem>>, vector<32x128xbf16>
    %c0_2 = arith.constant 0 : index
    %c0_3 = arith.constant 0 : index
    %4 = vector.load %arg7[%c0_2, %c0_3] : memref<32x128xf32, #tpu.memory_space<vmem>>, vector<32x128xf32>
    %c0_4 = arith.constant 0 : index
    %c0_5 = arith.constant 0 : index
    %5 = vector.load %arg4[%c0_4, %c0_5] : memref<128x128xbf16, #tpu.memory_space<vmem>>, vector<128x128xbf16>
    %cst = arith.constant dense<0.000000e+00> : vector<32x128xf32>
    %6 = tpu.matmul %3, %5, %cst {dimension_numbers = #tpu.dot_dimension_numbers<[1], [0], [0], [1], [0, 0, 1, 1], [], []>} : vector<32x128xbf16>, vector<128x128xbf16>, vector<32x128xf32> -> vector<32x128xf32>
    %7 = arith.addf %4, %6 : vector<32x128xf32>
    %c0_6 = arith.constant 0 : index
    %c0_7 = arith.constant 0 : index
    %8 = vector.load %arg7[%c0_6, %c0_7] : memref<32x128xf32, #tpu.memory_space<vmem>>, vector<32x128xf32>
    tpu.vector_store %arg7[%c0_6, %c0_7], %7 {strides = array<i32>} : memref<32x128xf32, #tpu.memory_space<vmem>>, vector<32x128xf32>,
    %c0_i32_8 = arith.constant 0 : i32
    %9 = arith.cmpi eq, %arg2, %c0_i32_8 : i32
    %10 = arith.extui %9 : i1 to i32
    %c0_i32_9 = arith.constant 0 : i32
    %11 = arith.cmpi ne, %10, %c0_i32_9 : i32
    scf.if %11 {
      %c0_10 = arith.constant 0 : index
      %c0_11 = arith.constant 0 : index
      %12 = vector.load %arg7[%c0_10, %c0_11] : memref<32x128xf32, #tpu.memory_space<vmem>>, vector<32x128xf32>
      %c0_12 = arith.constant 0 : index
      %c0_13 = arith.constant 0 : index
      %13 = vector.load %arg5[%c0_12, %c0_13] : memref<1x128xf32, #tpu.memory_space<vmem>>, vector<1x128xf32>
      %14 = vector.broadcast %13 : vector<1x128xf32> to vector<32x128xf32>
      %15 = arith.addf %12, %14 : vector<32x128xf32>
      %16 = arith.truncf %15 : vector<32x128xf32> to vector<32x128xbf16>
      %c0_14 = arith.constant 0 : index
      %c0_15 = arith.constant 0 : index
      %17 = vector.load %arg6[%c0_14, %c0_15] : memref<32x128xbf16, #tpu.memory_space<vmem>>, vector<32x128xbf16>
      tpu.vector_store %arg6[%c0_14, %c0_15], %16 {strides = array<i32>} : memref<32x128xbf16, #tpu.memory_space<vmem>>, vector<32x128xbf16>,
    } else {
    }
    return
  }
  func.func @transform_0(%arg0: i32, %arg1: i32, %arg2: i32) -> (i32, i32) {
    %c0_i32 = arith.constant 0 : i32
    return %arg0, %arg2 : i32, i32
  }
  func.func @transform_1(%arg0: i32, %arg1: i32, %arg2: i32) -> (i32, i32) {
    %c0_i32 = arith.constant 0 : i32
    return %arg2, %arg1 : i32, i32
  }
  func.func @transform_2(%arg0: i32, %arg1: i32, %arg2: i32) -> (i32, i32) {
    %c0_i32 = arith.constant 0 : i32
    %c0_i32_0 = arith.constant 0 : i32
    return %c0_i32, %arg1 : i32, i32
  }
  func.func @transform_3(%arg0: i32, %arg1: i32, %arg2: i32) -> (i32, i32) {
    %c0_i32 = arith.constant 0 : i32
    return %arg0, %arg1 : i32, i32
  }
}

module attributes {stable_mosaic.version = 11 : i64} {
  func.func @_mha_kernel(%arg0: i32, %arg1: i32, %arg2: memref<1x8x64xbf16, #tpu.memory_space<vmem>>, %arg3: memref<1x15x128xbf16, #tpu.memory_space<vmem>>, %arg4: memref<1x1x15xf32, #tpu.memory_space<vmem>>, %arg5: memref<1x8x64xbf16, #tpu.memory_space<vmem>>, %arg6: memref<4x8x1xf32, #tpu.memory_space<vmem>>, %arg7: memref<4x8x1xf32, #tpu.memory_space<vmem>>, %arg8: memref<4x8x16xf32, #tpu.memory_space<vmem>>) attributes {dimension_semantics = [#tpu.dimension_semantics<parallel>, #tpu.dimension_semantics<arbitrary>], iteration_bounds = array<i64: 2, 1>, scalar_prefetch = 0 : i64, scratch_operands = 3 : i64, tpu.core_type = #tpu.core_type<tc>, window_params = [{transform_indices = @transform_0, window_bounds = array<i64: 1, 8, 64>}, {transform_indices = @transform_1, window_bounds = array<i64: 1, 15, 128>}, {transform_indices = @transform_2, window_bounds = array<i64: 1, 1, 15>}, {transform_indices = @transform_3, window_bounds = array<i64: 1, 8, 64>}]} {
    %c0_i32 = arith.constant 0 : i32
    %0 = arith.cmpi eq, %arg1, %c0_i32 : i32
    %1 = arith.extui %0 : i1 to i32
    %c0_i32_0 = arith.constant 0 : i32
    %2 = arith.cmpi ne, %1, %c0_i32_0 : i32
    scf.if %2 {
      %cst_104 = arith.constant -1.000000e+30 : f32
      %176 = vector.broadcast %cst_104 : f32 to vector<4x8x1xf32>
      %c0_105 = arith.constant 0 : index
      %c0_106 = arith.constant 0 : index
      %c0_107 = arith.constant 0 : index
      %177 = vector.load %arg6[%c0_105, %c0_106, %c0_107] : memref<4x8x1xf32, #tpu.memory_space<vmem>>, vector<4x8x1xf32>
      tpu.vector_store %arg6[%c0_105, %c0_106, %c0_107], %176 {strides = array<i32>} : memref<4x8x1xf32, #tpu.memory_space<vmem>>, vector<4x8x1xf32>,
      %cst_108 = arith.constant 0.000000e+00 : f32
      %178 = vector.broadcast %cst_108 : f32 to vector<4x8x1xf32>
      %c0_109 = arith.constant 0 : index
      %c0_110 = arith.constant 0 : index
      %c0_111 = arith.constant 0 : index
      %179 = vector.load %arg7[%c0_109, %c0_110, %c0_111] : memref<4x8x1xf32, #tpu.memory_space<vmem>>, vector<4x8x1xf32>
      tpu.vector_store %arg7[%c0_109, %c0_110, %c0_111], %178 {strides = array<i32>} : memref<4x8x1xf32, #tpu.memory_space<vmem>>, vector<4x8x1xf32>,
      %cst_112 = arith.constant 0.000000e+00 : f32
      %180 = vector.broadcast %cst_112 : f32 to vector<4x8x16xf32>
      %c0_113 = arith.constant 0 : index
      %c0_114 = arith.constant 0 : index
      %c0_115 = arith.constant 0 : index
      %181 = vector.load %arg8[%c0_113, %c0_114, %c0_115] : memref<4x8x16xf32, #tpu.memory_space<vmem>>, vector<4x8x16xf32>
      tpu.vector_store %arg8[%c0_113, %c0_114, %c0_115], %180 {strides = array<i32>} : memref<4x8x16xf32, #tpu.memory_space<vmem>>, vector<4x8x16xf32>,
    } else {
    }
    %c0 = arith.constant 0 : index
    %c0_1 = arith.constant 0 : index
    %c0_2 = arith.constant 0 : index
    %3 = vector.load %arg2[%c0, %c0_1, %c0_2] : memref<1x8x64xbf16, #tpu.memory_space<vmem>>, vector<1x8x64xbf16>
    %4 = vector.shape_cast %3 : vector<1x8x64xbf16> to vector<8x64xbf16>
    %c0_3 = arith.constant 0 : index
    %c0_4 = arith.constant 0 : index
    %c0_5 = arith.constant 0 : index
    %5 = vector.load %arg3[%c0_3, %c0_4, %c0_5] : memref<1x15x128xbf16, #tpu.memory_space<vmem>>, vector<1x15x128xbf16>
    %6 = vector.shape_cast %5 : vector<1x15x128xbf16> to vector<15x128xbf16>
    %c0_6 = arith.constant 0 : index
    %c0_7 = arith.constant 0 : index
    %c0_8 = arith.constant 0 : index
    %7 = vector.load %arg4[%c0_6, %c0_7, %c0_8] : memref<1x1x15xf32, #tpu.memory_space<vmem>>, vector<1x1x15xf32>
    %8 = vector.shape_cast %7 : vector<1x1x15xf32> to vector<1x15xf32>
    %cst = arith.constant 0.000000e+00 : f32
    %9 = vector.broadcast %cst : f32 to vector<1x15xf32>
    %10 = arith.cmpf ogt, %8, %9 : vector<1x15xf32>
    %11 = vector.shape_cast %10 : vector<1x15xi1> to vector<1x15xi1>
    %12 = vector.broadcast %11 : vector<1x15xi1> to vector<8x15xi1>
    %13 = vector.extract_strided_slice %4 {offsets = [0, 0], sizes = [8, 16], strides = [1, 1]} : vector<8x64xbf16> to vector<8x16xbf16>
    %14 = vector.extract_strided_slice %6 {offsets = [0, 0], sizes = [15, 16], strides = [1, 1]} : vector<15x128xbf16> to vector<15x16xbf16>
    %15 = vector.extract_strided_slice %6 {offsets = [0, 64], sizes = [15, 16], strides = [1, 1]} : vector<15x128xbf16> to vector<15x16xbf16>
    %cst_9 = arith.constant dense<0.000000e+00> : vector<8x15xf32>
    %16 = tpu.matmul %13, %14, %cst_9 {dimension_numbers = #tpu.dot_dimension_numbers<[1], [1], [0], [0], [0, 0, 1, 0], [], []>} : vector<8x16xbf16>, vector<15x16xbf16>, vector<8x15xf32> -> vector<8x15xf32>
    %cst_10 = arith.constant -1.000000e+30 : f32
    %17 = vector.broadcast %cst_10 : f32 to vector<8x15xf32>
    %18 = arith.select %12, %16, %17 : vector<8x15xi1>, vector<8x15xf32>
    %c0_11 = arith.constant 0 : index
    %c0_12 = arith.constant 0 : index
    %c0_13 = arith.constant 0 : index
    %19 = vector.load %arg6[%c0_11, %c0_12, %c0_13] : memref<4x8x1xf32, #tpu.memory_space<vmem>>, vector<1x8x1xf32>
    %20 = vector.shape_cast %19 : vector<1x8x1xf32> to vector<8x1xf32>
    %cst_14 = arith.constant dense<0xFF800000> : vector<8xf32>
    %21 = vector.multi_reduction <maximumf>, %18, %cst_14 [1] : vector<8x15xf32> to vector<8xf32>
    %22 = vector.shape_cast %21 : vector<8xf32> to vector<8x1xf32>
    %23 = arith.maximumf %20, %22 : vector<8x1xf32>
    %24 = arith.subf %20, %23 : vector<8x1xf32>
    %25 = math.exp %24 : vector<8x1xf32>
    %26 = vector.broadcast %23 : vector<8x1xf32> to vector<8x15xf32>
    %27 = arith.subf %18, %26 : vector<8x15xf32>
    %28 = math.exp %27 : vector<8x15xf32>
    %cst_15 = arith.constant 0.000000e+00 : f32
    %29 = vector.broadcast %cst_15 : f32 to vector<8x15xf32>
    %30 = arith.select %12, %28, %29 : vector<8x15xi1>, vector<8x15xf32>
    %c0_16 = arith.constant 0 : index
    %c0_17 = arith.constant 0 : index
    %c0_18 = arith.constant 0 : index
    %31 = vector.load %arg7[%c0_16, %c0_17, %c0_18] : memref<4x8x1xf32, #tpu.memory_space<vmem>>, vector<1x8x1xf32>
    %32 = vector.shape_cast %31 : vector<1x8x1xf32> to vector<8x1xf32>
    %33 = arith.mulf %25, %32 : vector<8x1xf32>
    %cst_19 = arith.constant dense<0.000000e+00> : vector<8xf32>
    %34 = vector.multi_reduction <add>, %30, %cst_19 [1] : vector<8x15xf32> to vector<8xf32>
    %35 = vector.shape_cast %34 : vector<8xf32> to vector<8x1xf32>
    %36 = arith.addf %33, %35 : vector<8x1xf32>
    %c0_20 = arith.constant 0 : index
    %c0_21 = arith.constant 0 : index
    %c0_22 = arith.constant 0 : index
    %37 = vector.load %arg7[%c0_20, %c0_21, %c0_22] : memref<4x8x1xf32, #tpu.memory_space<vmem>>, vector<1x8x1xf32>
    %38 = vector.shape_cast %37 : vector<1x8x1xf32> to vector<8x1xf32>
    %39 = vector.shape_cast %36 : vector<8x1xf32> to vector<1x8x1xf32>
    tpu.vector_store %arg7[%c0_20, %c0_21, %c0_22], %39 {strides = array<i32>} : memref<4x8x1xf32, #tpu.memory_space<vmem>>, vector<1x8x1xf32>,
    %c0_23 = arith.constant 0 : index
    %c0_24 = arith.constant 0 : index
    %c0_25 = arith.constant 0 : index
    %40 = vector.load %arg8[%c0_23, %c0_24, %c0_25] : memref<4x8x16xf32, #tpu.memory_space<vmem>>, vector<1x8x16xf32>
    %41 = vector.shape_cast %40 : vector<1x8x16xf32> to vector<8x16xf32>
    %42 = vector.broadcast %25 : vector<8x1xf32> to vector<8x16xf32>
    %43 = arith.mulf %42, %41 : vector<8x16xf32>
    %44 = arith.truncf %30 : vector<8x15xf32> to vector<8x15xbf16>
    %cst_26 = arith.constant dense<0.000000e+00> : vector<8x16xf32>
    %45 = tpu.matmul %44, %15, %cst_26 {dimension_numbers = #tpu.dot_dimension_numbers<[1], [0], [0], [1], [0, 0, 1, 1], [], []>} : vector<8x15xbf16>, vector<15x16xbf16>, vector<8x16xf32> -> vector<8x16xf32>
    %46 = arith.addf %43, %45 : vector<8x16xf32>
    %c0_27 = arith.constant 0 : index
    %c0_28 = arith.constant 0 : index
    %c0_29 = arith.constant 0 : index
    %47 = vector.load %arg8[%c0_27, %c0_28, %c0_29] : memref<4x8x16xf32, #tpu.memory_space<vmem>>, vector<1x8x16xf32>
    %48 = vector.shape_cast %47 : vector<1x8x16xf32> to vector<8x16xf32>
    %49 = vector.shape_cast %46 : vector<8x16xf32> to vector<1x8x16xf32>
    tpu.vector_store %arg8[%c0_27, %c0_28, %c0_29], %49 {strides = array<i32>} : memref<4x8x16xf32, #tpu.memory_space<vmem>>, vector<1x8x16xf32>,
    %c0_30 = arith.constant 0 : index
    %c0_31 = arith.constant 0 : index
    %c0_32 = arith.constant 0 : index
    %50 = vector.load %arg6[%c0_30, %c0_31, %c0_32] : memref<4x8x1xf32, #tpu.memory_space<vmem>>, vector<1x8x1xf32>
    %51 = vector.shape_cast %50 : vector<1x8x1xf32> to vector<8x1xf32>
    %52 = vector.shape_cast %23 : vector<8x1xf32> to vector<1x8x1xf32>
    tpu.vector_store %arg6[%c0_30, %c0_31, %c0_32], %52 {strides = array<i32>} : memref<4x8x1xf32, #tpu.memory_space<vmem>>, vector<1x8x1xf32>,
    %53 = vector.extract_strided_slice %4 {offsets = [0, 16], sizes = [8, 16], strides = [1, 1]} : vector<8x64xbf16> to vector<8x16xbf16>
    %54 = vector.extract_strided_slice %6 {offsets = [0, 16], sizes = [15, 16], strides = [1, 1]} : vector<15x128xbf16> to vector<15x16xbf16>
    %55 = vector.extract_strided_slice %6 {offsets = [0, 80], sizes = [15, 16], strides = [1, 1]} : vector<15x128xbf16> to vector<15x16xbf16>
    %cst_33 = arith.constant dense<0.000000e+00> : vector<8x15xf32>
    %56 = tpu.matmul %53, %54, %cst_33 {dimension_numbers = #tpu.dot_dimension_numbers<[1], [1], [0], [0], [0, 0, 1, 0], [], []>} : vector<8x16xbf16>, vector<15x16xbf16>, vector<8x15xf32> -> vector<8x15xf32>
    %cst_34 = arith.constant -1.000000e+30 : f32
    %57 = vector.broadcast %cst_34 : f32 to vector<8x15xf32>
    %58 = arith.select %12, %56, %57 : vector<8x15xi1>, vector<8x15xf32>
    %c1 = arith.constant 1 : index
    %c0_35 = arith.constant 0 : index
    %c0_36 = arith.constant 0 : index
    %59 = vector.load %arg6[%c1, %c0_35, %c0_36] : memref<4x8x1xf32, #tpu.memory_space<vmem>>, vector<1x8x1xf32>
    %60 = vector.shape_cast %59 : vector<1x8x1xf32> to vector<8x1xf32>
    %cst_37 = arith.constant dense<0xFF800000> : vector<8xf32>
    %61 = vector.multi_reduction <maximumf>, %58, %cst_37 [1] : vector<8x15xf32> to vector<8xf32>
    %62 = vector.shape_cast %61 : vector<8xf32> to vector<8x1xf32>
    %63 = arith.maximumf %60, %62 : vector<8x1xf32>
    %64 = arith.subf %60, %63 : vector<8x1xf32>
    %65 = math.exp %64 : vector<8x1xf32>
    %66 = vector.broadcast %63 : vector<8x1xf32> to vector<8x15xf32>
    %67 = arith.subf %58, %66 : vector<8x15xf32>
    %68 = math.exp %67 : vector<8x15xf32>
    %cst_38 = arith.constant 0.000000e+00 : f32
    %69 = vector.broadcast %cst_38 : f32 to vector<8x15xf32>
    %70 = arith.select %12, %68, %69 : vector<8x15xi1>, vector<8x15xf32>
    %c1_39 = arith.constant 1 : index
    %c0_40 = arith.constant 0 : index
    %c0_41 = arith.constant 0 : index
    %71 = vector.load %arg7[%c1_39, %c0_40, %c0_41] : memref<4x8x1xf32, #tpu.memory_space<vmem>>, vector<1x8x1xf32>
    %72 = vector.shape_cast %71 : vector<1x8x1xf32> to vector<8x1xf32>
    %73 = arith.mulf %65, %72 : vector<8x1xf32>
    %cst_42 = arith.constant dense<0.000000e+00> : vector<8xf32>
    %74 = vector.multi_reduction <add>, %70, %cst_42 [1] : vector<8x15xf32> to vector<8xf32>
    %75 = vector.shape_cast %74 : vector<8xf32> to vector<8x1xf32>
    %76 = arith.addf %73, %75 : vector<8x1xf32>
    %c1_43 = arith.constant 1 : index
    %c0_44 = arith.constant 0 : index
    %c0_45 = arith.constant 0 : index
    %77 = vector.load %arg7[%c1_43, %c0_44, %c0_45] : memref<4x8x1xf32, #tpu.memory_space<vmem>>, vector<1x8x1xf32>
    %78 = vector.shape_cast %77 : vector<1x8x1xf32> to vector<8x1xf32>
    %79 = vector.shape_cast %76 : vector<8x1xf32> to vector<1x8x1xf32>
    tpu.vector_store %arg7[%c1_43, %c0_44, %c0_45], %79 {strides = array<i32>} : memref<4x8x1xf32, #tpu.memory_space<vmem>>, vector<1x8x1xf32>,
    %c1_46 = arith.constant 1 : index
    %c0_47 = arith.constant 0 : index
    %c0_48 = arith.constant 0 : index
    %80 = vector.load %arg8[%c1_46, %c0_47, %c0_48] : memref<4x8x16xf32, #tpu.memory_space<vmem>>, vector<1x8x16xf32>
    %81 = vector.shape_cast %80 : vector<1x8x16xf32> to vector<8x16xf32>
    %82 = vector.broadcast %65 : vector<8x1xf32> to vector<8x16xf32>
    %83 = arith.mulf %82, %81 : vector<8x16xf32>
    %84 = arith.truncf %70 : vector<8x15xf32> to vector<8x15xbf16>
    %cst_49 = arith.constant dense<0.000000e+00> : vector<8x16xf32>
    %85 = tpu.matmul %84, %55, %cst_49 {dimension_numbers = #tpu.dot_dimension_numbers<[1], [0], [0], [1], [0, 0, 1, 1], [], []>} : vector<8x15xbf16>, vector<15x16xbf16>, vector<8x16xf32> -> vector<8x16xf32>
    %86 = arith.addf %83, %85 : vector<8x16xf32>
    %c1_50 = arith.constant 1 : index
    %c0_51 = arith.constant 0 : index
    %c0_52 = arith.constant 0 : index
    %87 = vector.load %arg8[%c1_50, %c0_51, %c0_52] : memref<4x8x16xf32, #tpu.memory_space<vmem>>, vector<1x8x16xf32>
    %88 = vector.shape_cast %87 : vector<1x8x16xf32> to vector<8x16xf32>
    %89 = vector.shape_cast %86 : vector<8x16xf32> to vector<1x8x16xf32>
    tpu.vector_store %arg8[%c1_50, %c0_51, %c0_52], %89 {strides = array<i32>} : memref<4x8x16xf32, #tpu.memory_space<vmem>>, vector<1x8x16xf32>,
    %c1_53 = arith.constant 1 : index
    %c0_54 = arith.constant 0 : index
    %c0_55 = arith.constant 0 : index
    %90 = vector.load %arg6[%c1_53, %c0_54, %c0_55] : memref<4x8x1xf32, #tpu.memory_space<vmem>>, vector<1x8x1xf32>
    %91 = vector.shape_cast %90 : vector<1x8x1xf32> to vector<8x1xf32>
    %92 = vector.shape_cast %63 : vector<8x1xf32> to vector<1x8x1xf32>
    tpu.vector_store %arg6[%c1_53, %c0_54, %c0_55], %92 {strides = array<i32>} : memref<4x8x1xf32, #tpu.memory_space<vmem>>, vector<1x8x1xf32>,
    %93 = vector.extract_strided_slice %4 {offsets = [0, 32], sizes = [8, 16], strides = [1, 1]} : vector<8x64xbf16> to vector<8x16xbf16>
    %94 = vector.extract_strided_slice %6 {offsets = [0, 32], sizes = [15, 16], strides = [1, 1]} : vector<15x128xbf16> to vector<15x16xbf16>
    %95 = vector.extract_strided_slice %6 {offsets = [0, 96], sizes = [15, 16], strides = [1, 1]} : vector<15x128xbf16> to vector<15x16xbf16>
    %cst_56 = arith.constant dense<0.000000e+00> : vector<8x15xf32>
    %96 = tpu.matmul %93, %94, %cst_56 {dimension_numbers = #tpu.dot_dimension_numbers<[1], [1], [0], [0], [0, 0, 1, 0], [], []>} : vector<8x16xbf16>, vector<15x16xbf16>, vector<8x15xf32> -> vector<8x15xf32>
    %cst_57 = arith.constant -1.000000e+30 : f32
    %97 = vector.broadcast %cst_57 : f32 to vector<8x15xf32>
    %98 = arith.select %12, %96, %97 : vector<8x15xi1>, vector<8x15xf32>
    %c2 = arith.constant 2 : index
    %c0_58 = arith.constant 0 : index
    %c0_59 = arith.constant 0 : index
    %99 = vector.load %arg6[%c2, %c0_58, %c0_59] : memref<4x8x1xf32, #tpu.memory_space<vmem>>, vector<1x8x1xf32>
    %100 = vector.shape_cast %99 : vector<1x8x1xf32> to vector<8x1xf32>
    %cst_60 = arith.constant dense<0xFF800000> : vector<8xf32>
    %101 = vector.multi_reduction <maximumf>, %98, %cst_60 [1] : vector<8x15xf32> to vector<8xf32>
    %102 = vector.shape_cast %101 : vector<8xf32> to vector<8x1xf32>
    %103 = arith.maximumf %100, %102 : vector<8x1xf32>
    %104 = arith.subf %100, %103 : vector<8x1xf32>
    %105 = math.exp %104 : vector<8x1xf32>
    %106 = vector.broadcast %103 : vector<8x1xf32> to vector<8x15xf32>
    %107 = arith.subf %98, %106 : vector<8x15xf32>
    %108 = math.exp %107 : vector<8x15xf32>
    %cst_61 = arith.constant 0.000000e+00 : f32
    %109 = vector.broadcast %cst_61 : f32 to vector<8x15xf32>
    %110 = arith.select %12, %108, %109 : vector<8x15xi1>, vector<8x15xf32>
    %c2_62 = arith.constant 2 : index
    %c0_63 = arith.constant 0 : index
    %c0_64 = arith.constant 0 : index
    %111 = vector.load %arg7[%c2_62, %c0_63, %c0_64] : memref<4x8x1xf32, #tpu.memory_space<vmem>>, vector<1x8x1xf32>
    %112 = vector.shape_cast %111 : vector<1x8x1xf32> to vector<8x1xf32>
    %113 = arith.mulf %105, %112 : vector<8x1xf32>
    %cst_65 = arith.constant dense<0.000000e+00> : vector<8xf32>
    %114 = vector.multi_reduction <add>, %110, %cst_65 [1] : vector<8x15xf32> to vector<8xf32>
    %115 = vector.shape_cast %114 : vector<8xf32> to vector<8x1xf32>
    %116 = arith.addf %113, %115 : vector<8x1xf32>
    %c2_66 = arith.constant 2 : index
    %c0_67 = arith.constant 0 : index
    %c0_68 = arith.constant 0 : index
    %117 = vector.load %arg7[%c2_66, %c0_67, %c0_68] : memref<4x8x1xf32, #tpu.memory_space<vmem>>, vector<1x8x1xf32>
    %118 = vector.shape_cast %117 : vector<1x8x1xf32> to vector<8x1xf32>
    %119 = vector.shape_cast %116 : vector<8x1xf32> to vector<1x8x1xf32>
    tpu.vector_store %arg7[%c2_66, %c0_67, %c0_68], %119 {strides = array<i32>} : memref<4x8x1xf32, #tpu.memory_space<vmem>>, vector<1x8x1xf32>,
    %c2_69 = arith.constant 2 : index
    %c0_70 = arith.constant 0 : index
    %c0_71 = arith.constant 0 : index
    %120 = vector.load %arg8[%c2_69, %c0_70, %c0_71] : memref<4x8x16xf32, #tpu.memory_space<vmem>>, vector<1x8x16xf32>
    %121 = vector.shape_cast %120 : vector<1x8x16xf32> to vector<8x16xf32>
    %122 = vector.broadcast %105 : vector<8x1xf32> to vector<8x16xf32>
    %123 = arith.mulf %122, %121 : vector<8x16xf32>
    %124 = arith.truncf %110 : vector<8x15xf32> to vector<8x15xbf16>
    %cst_72 = arith.constant dense<0.000000e+00> : vector<8x16xf32>
    %125 = tpu.matmul %124, %95, %cst_72 {dimension_numbers = #tpu.dot_dimension_numbers<[1], [0], [0], [1], [0, 0, 1, 1], [], []>} : vector<8x15xbf16>, vector<15x16xbf16>, vector<8x16xf32> -> vector<8x16xf32>
    %126 = arith.addf %123, %125 : vector<8x16xf32>
    %c2_73 = arith.constant 2 : index
    %c0_74 = arith.constant 0 : index
    %c0_75 = arith.constant 0 : index
    %127 = vector.load %arg8[%c2_73, %c0_74, %c0_75] : memref<4x8x16xf32, #tpu.memory_space<vmem>>, vector<1x8x16xf32>
    %128 = vector.shape_cast %127 : vector<1x8x16xf32> to vector<8x16xf32>
    %129 = vector.shape_cast %126 : vector<8x16xf32> to vector<1x8x16xf32>
    tpu.vector_store %arg8[%c2_73, %c0_74, %c0_75], %129 {strides = array<i32>} : memref<4x8x16xf32, #tpu.memory_space<vmem>>, vector<1x8x16xf32>,
    %c2_76 = arith.constant 2 : index
    %c0_77 = arith.constant 0 : index
    %c0_78 = arith.constant 0 : index
    %130 = vector.load %arg6[%c2_76, %c0_77, %c0_78] : memref<4x8x1xf32, #tpu.memory_space<vmem>>, vector<1x8x1xf32>
    %131 = vector.shape_cast %130 : vector<1x8x1xf32> to vector<8x1xf32>
    %132 = vector.shape_cast %103 : vector<8x1xf32> to vector<1x8x1xf32>
    tpu.vector_store %arg6[%c2_76, %c0_77, %c0_78], %132 {strides = array<i32>} : memref<4x8x1xf32, #tpu.memory_space<vmem>>, vector<1x8x1xf32>,
    %133 = vector.extract_strided_slice %4 {offsets = [0, 48], sizes = [8, 16], strides = [1, 1]} : vector<8x64xbf16> to vector<8x16xbf16>
    %134 = vector.extract_strided_slice %6 {offsets = [0, 48], sizes = [15, 16], strides = [1, 1]} : vector<15x128xbf16> to vector<15x16xbf16>
    %135 = vector.extract_strided_slice %6 {offsets = [0, 112], sizes = [15, 16], strides = [1, 1]} : vector<15x128xbf16> to vector<15x16xbf16>
    %cst_79 = arith.constant dense<0.000000e+00> : vector<8x15xf32>
    %136 = tpu.matmul %133, %134, %cst_79 {dimension_numbers = #tpu.dot_dimension_numbers<[1], [1], [0], [0], [0, 0, 1, 0], [], []>} : vector<8x16xbf16>, vector<15x16xbf16>, vector<8x15xf32> -> vector<8x15xf32>
    %cst_80 = arith.constant -1.000000e+30 : f32
    %137 = vector.broadcast %cst_80 : f32 to vector<8x15xf32>
    %138 = arith.select %12, %136, %137 : vector<8x15xi1>, vector<8x15xf32>
    %c3 = arith.constant 3 : index
    %c0_81 = arith.constant 0 : index
    %c0_82 = arith.constant 0 : index
    %139 = vector.load %arg6[%c3, %c0_81, %c0_82] : memref<4x8x1xf32, #tpu.memory_space<vmem>>, vector<1x8x1xf32>
    %140 = vector.shape_cast %139 : vector<1x8x1xf32> to vector<8x1xf32>
    %cst_83 = arith.constant dense<0xFF800000> : vector<8xf32>
    %141 = vector.multi_reduction <maximumf>, %138, %cst_83 [1] : vector<8x15xf32> to vector<8xf32>
    %142 = vector.shape_cast %141 : vector<8xf32> to vector<8x1xf32>
    %143 = arith.maximumf %140, %142 : vector<8x1xf32>
    %144 = arith.subf %140, %143 : vector<8x1xf32>
    %145 = math.exp %144 : vector<8x1xf32>
    %146 = vector.broadcast %143 : vector<8x1xf32> to vector<8x15xf32>
    %147 = arith.subf %138, %146 : vector<8x15xf32>
    %148 = math.exp %147 : vector<8x15xf32>
    %cst_84 = arith.constant 0.000000e+00 : f32
    %149 = vector.broadcast %cst_84 : f32 to vector<8x15xf32>
    %150 = arith.select %12, %148, %149 : vector<8x15xi1>, vector<8x15xf32>
    %c3_85 = arith.constant 3 : index
    %c0_86 = arith.constant 0 : index
    %c0_87 = arith.constant 0 : index
    %151 = vector.load %arg7[%c3_85, %c0_86, %c0_87] : memref<4x8x1xf32, #tpu.memory_space<vmem>>, vector<1x8x1xf32>
    %152 = vector.shape_cast %151 : vector<1x8x1xf32> to vector<8x1xf32>
    %153 = arith.mulf %145, %152 : vector<8x1xf32>
    %cst_88 = arith.constant dense<0.000000e+00> : vector<8xf32>
    %154 = vector.multi_reduction <add>, %150, %cst_88 [1] : vector<8x15xf32> to vector<8xf32>
    %155 = vector.shape_cast %154 : vector<8xf32> to vector<8x1xf32>
    %156 = arith.addf %153, %155 : vector<8x1xf32>
    %c3_89 = arith.constant 3 : index
    %c0_90 = arith.constant 0 : index
    %c0_91 = arith.constant 0 : index
    %157 = vector.load %arg7[%c3_89, %c0_90, %c0_91] : memref<4x8x1xf32, #tpu.memory_space<vmem>>, vector<1x8x1xf32>
    %158 = vector.shape_cast %157 : vector<1x8x1xf32> to vector<8x1xf32>
    %159 = vector.shape_cast %156 : vector<8x1xf32> to vector<1x8x1xf32>
    tpu.vector_store %arg7[%c3_89, %c0_90, %c0_91], %159 {strides = array<i32>} : memref<4x8x1xf32, #tpu.memory_space<vmem>>, vector<1x8x1xf32>,
    %c3_92 = arith.constant 3 : index
    %c0_93 = arith.constant 0 : index
    %c0_94 = arith.constant 0 : index
    %160 = vector.load %arg8[%c3_92, %c0_93, %c0_94] : memref<4x8x16xf32, #tpu.memory_space<vmem>>, vector<1x8x16xf32>
    %161 = vector.shape_cast %160 : vector<1x8x16xf32> to vector<8x16xf32>
    %162 = vector.broadcast %145 : vector<8x1xf32> to vector<8x16xf32>
    %163 = arith.mulf %162, %161 : vector<8x16xf32>
    %164 = arith.truncf %150 : vector<8x15xf32> to vector<8x15xbf16>
    %cst_95 = arith.constant dense<0.000000e+00> : vector<8x16xf32>
    %165 = tpu.matmul %164, %135, %cst_95 {dimension_numbers = #tpu.dot_dimension_numbers<[1], [0], [0], [1], [0, 0, 1, 1], [], []>} : vector<8x15xbf16>, vector<15x16xbf16>, vector<8x16xf32> -> vector<8x16xf32>
    %166 = arith.addf %163, %165 : vector<8x16xf32>
    %c3_96 = arith.constant 3 : index
    %c0_97 = arith.constant 0 : index
    %c0_98 = arith.constant 0 : index
    %167 = vector.load %arg8[%c3_96, %c0_97, %c0_98] : memref<4x8x16xf32, #tpu.memory_space<vmem>>, vector<1x8x16xf32>
    %168 = vector.shape_cast %167 : vector<1x8x16xf32> to vector<8x16xf32>
    %169 = vector.shape_cast %166 : vector<8x16xf32> to vector<1x8x16xf32>
    tpu.vector_store %arg8[%c3_96, %c0_97, %c0_98], %169 {strides = array<i32>} : memref<4x8x16xf32, #tpu.memory_space<vmem>>, vector<1x8x16xf32>,
    %c3_99 = arith.constant 3 : index
    %c0_100 = arith.constant 0 : index
    %c0_101 = arith.constant 0 : index
    %170 = vector.load %arg6[%c3_99, %c0_100, %c0_101] : memref<4x8x1xf32, #tpu.memory_space<vmem>>, vector<1x8x1xf32>
    %171 = vector.shape_cast %170 : vector<1x8x1xf32> to vector<8x1xf32>
    %172 = vector.shape_cast %143 : vector<8x1xf32> to vector<1x8x1xf32>
    tpu.vector_store %arg6[%c3_99, %c0_100, %c0_101], %172 {strides = array<i32>} : memref<4x8x1xf32, #tpu.memory_space<vmem>>, vector<1x8x1xf32>,
    %c0_i32_102 = arith.constant 0 : i32
    %173 = arith.cmpi eq, %arg1, %c0_i32_102 : i32
    %174 = arith.extui %173 : i1 to i32
    %c0_i32_103 = arith.constant 0 : i32
    %175 = arith.cmpi ne, %174, %c0_i32_103 : i32
    scf.if %175 {
      %c0_104 = arith.constant 0 : index
      %c0_105 = arith.constant 0 : index
      %c0_106 = arith.constant 0 : index
      %176 = vector.load %arg7[%c0_104, %c0_105, %c0_106] : memref<4x8x1xf32, #tpu.memory_space<vmem>>, vector<1x8x1xf32>
      %177 = vector.shape_cast %176 : vector<1x8x1xf32> to vector<8x1xf32>
      %cst_107 = arith.constant 1.000000e-30 : f32
      %178 = vector.broadcast %cst_107 : f32 to vector<8x1xf32>
      %179 = arith.maximumf %177, %178 : vector<8x1xf32>
      %180 = tpu.reciprocal %179 {approx = true} : vector<8x1xf32> -> vector<8x1xf32>
      %c0_108 = arith.constant 0 : index
      %c0_109 = arith.constant 0 : index
      %c0_110 = arith.constant 0 : index
      %181 = vector.load %arg8[%c0_108, %c0_109, %c0_110] : memref<4x8x16xf32, #tpu.memory_space<vmem>>, vector<1x8x16xf32>
      %182 = vector.shape_cast %181 : vector<1x8x16xf32> to vector<8x16xf32>
      %183 = vector.broadcast %180 : vector<8x1xf32> to vector<8x16xf32>
      %184 = arith.mulf %182, %183 : vector<8x16xf32>
      %c1_111 = arith.constant 1 : index
      %c0_112 = arith.constant 0 : index
      %c0_113 = arith.constant 0 : index
      %185 = vector.load %arg7[%c1_111, %c0_112, %c0_113] : memref<4x8x1xf32, #tpu.memory_space<vmem>>, vector<1x8x1xf32>
      %186 = vector.shape_cast %185 : vector<1x8x1xf32> to vector<8x1xf32>
      %cst_114 = arith.constant 1.000000e-30 : f32
      %187 = vector.broadcast %cst_114 : f32 to vector<8x1xf32>
      %188 = arith.maximumf %186, %187 : vector<8x1xf32>
      %189 = tpu.reciprocal %188 {approx = true} : vector<8x1xf32> -> vector<8x1xf32>
      %c1_115 = arith.constant 1 : index
      %c0_116 = arith.constant 0 : index
      %c0_117 = arith.constant 0 : index
      %190 = vector.load %arg8[%c1_115, %c0_116, %c0_117] : memref<4x8x16xf32, #tpu.memory_space<vmem>>, vector<1x8x16xf32>
      %191 = vector.shape_cast %190 : vector<1x8x16xf32> to vector<8x16xf32>
      %192 = vector.broadcast %189 : vector<8x1xf32> to vector<8x16xf32>
      %193 = arith.mulf %191, %192 : vector<8x16xf32>
      %c2_118 = arith.constant 2 : index
      %c0_119 = arith.constant 0 : index
      %c0_120 = arith.constant 0 : index
      %194 = vector.load %arg7[%c2_118, %c0_119, %c0_120] : memref<4x8x1xf32, #tpu.memory_space<vmem>>, vector<1x8x1xf32>
      %195 = vector.shape_cast %194 : vector<1x8x1xf32> to vector<8x1xf32>
      %cst_121 = arith.constant 1.000000e-30 : f32
      %196 = vector.broadcast %cst_121 : f32 to vector<8x1xf32>
      %197 = arith.maximumf %195, %196 : vector<8x1xf32>
      %198 = tpu.reciprocal %197 {approx = true} : vector<8x1xf32> -> vector<8x1xf32>
      %c2_122 = arith.constant 2 : index
      %c0_123 = arith.constant 0 : index
      %c0_124 = arith.constant 0 : index
      %199 = vector.load %arg8[%c2_122, %c0_123, %c0_124] : memref<4x8x16xf32, #tpu.memory_space<vmem>>, vector<1x8x16xf32>
      %200 = vector.shape_cast %199 : vector<1x8x16xf32> to vector<8x16xf32>
      %201 = vector.broadcast %198 : vector<8x1xf32> to vector<8x16xf32>
      %202 = arith.mulf %200, %201 : vector<8x16xf32>
      %c3_125 = arith.constant 3 : index
      %c0_126 = arith.constant 0 : index
      %c0_127 = arith.constant 0 : index
      %203 = vector.load %arg7[%c3_125, %c0_126, %c0_127] : memref<4x8x1xf32, #tpu.memory_space<vmem>>, vector<1x8x1xf32>
      %204 = vector.shape_cast %203 : vector<1x8x1xf32> to vector<8x1xf32>
      %cst_128 = arith.constant 1.000000e-30 : f32
      %205 = vector.broadcast %cst_128 : f32 to vector<8x1xf32>
      %206 = arith.maximumf %204, %205 : vector<8x1xf32>
      %207 = tpu.reciprocal %206 {approx = true} : vector<8x1xf32> -> vector<8x1xf32>
      %c3_129 = arith.constant 3 : index
      %c0_130 = arith.constant 0 : index
      %c0_131 = arith.constant 0 : index
      %208 = vector.load %arg8[%c3_129, %c0_130, %c0_131] : memref<4x8x16xf32, #tpu.memory_space<vmem>>, vector<1x8x16xf32>
      %209 = vector.shape_cast %208 : vector<1x8x16xf32> to vector<8x16xf32>
      %210 = vector.broadcast %207 : vector<8x1xf32> to vector<8x16xf32>
      %211 = arith.mulf %209, %210 : vector<8x16xf32>
      %212 = tpu.concatenate %184, %193, %202, %211 in 1 : vector<8x16xf32>, vector<8x16xf32>, vector<8x16xf32>, vector<8x16xf32> -> vector<8x64xf32>
      %213 = arith.truncf %212 : vector<8x64xf32> to vector<8x64xbf16>
      %c0_132 = arith.constant 0 : index
      %c0_133 = arith.constant 0 : index
      %c0_134 = arith.constant 0 : index
      %214 = vector.load %arg5[%c0_132, %c0_133, %c0_134] : memref<1x8x64xbf16, #tpu.memory_space<vmem>>, vector<1x8x64xbf16>
      %215 = vector.shape_cast %214 : vector<1x8x64xbf16> to vector<8x64xbf16>
      %216 = vector.shape_cast %213 : vector<8x64xbf16> to vector<1x8x64xbf16>
      tpu.vector_store %arg5[%c0_132, %c0_133, %c0_134], %216 {strides = array<i32>} : memref<1x8x64xbf16, #tpu.memory_space<vmem>>, vector<1x8x64xbf16>,
    } else {
    }
    return
  }
  func.func @transform_0(%arg0: i32, %arg1: i32) -> (i32, i32, i32) {
    %c0_i32 = arith.constant 0 : i32
    %c0_i32_0 = arith.constant 0 : i32
    %c0_i32_1 = arith.constant 0 : i32
    return %arg0, %c0_i32, %c0_i32_0 : i32, i32, i32
  }
  func.func @transform_1(%arg0: i32, %arg1: i32) -> (i32, i32, i32) {
    %c0_i32 = arith.constant 0 : i32
    %c0_i32_0 = arith.constant 0 : i32
    return %arg0, %arg1, %c0_i32 : i32, i32, i32
  }
  func.func @transform_2(%arg0: i32, %arg1: i32) -> (i32, i32, i32) {
    %c0_i32 = arith.constant 0 : i32
    %c0_i32_0 = arith.constant 0 : i32
    return %arg0, %c0_i32, %arg1 : i32, i32, i32
  }
  func.func @transform_3(%arg0: i32, %arg1: i32) -> (i32, i32, i32) {
    %c0_i32 = arith.constant 0 : i32
    %c0_i32_0 = arith.constant 0 : i32
    %c0_i32_1 = arith.constant 0 : i32
    return %arg0, %c0_i32, %c0_i32_0 : i32, i32, i32
  }
}

module attributes {stable_mosaic.version = 11 : i64} {
  func.func @_fused_linear_kernel(%arg0: i32, %arg1: i32, %arg2: i32, %arg3: memref<16x128xbf16, #tpu.memory_space<vmem>>, %arg4: memref<128x128xbf16, #tpu.memory_space<vmem>>, %arg5: memref<1x128xf32, #tpu.memory_space<vmem>>, %arg6: memref<1x128xf32, #tpu.memory_space<vmem>>, %arg7: memref<16x128xbf16, #tpu.memory_space<vmem>>, %arg8: memref<16x128xf32, #tpu.memory_space<vmem>>, %arg9: memref<16x1xf32, #tpu.memory_space<vmem>>) attributes {dimension_semantics = [#tpu.dimension_semantics<parallel>, #tpu.dimension_semantics<arbitrary>, #tpu.dimension_semantics<arbitrary>], iteration_bounds = array<i64: 1, 1, 1>, scalar_prefetch = 0 : i64, scratch_operands = 2 : i64, tpu.core_type = #tpu.core_type<tc>, window_params = [{transform_indices = @transform_0, window_bounds = array<i64: 16, 128>}, {transform_indices = @transform_1, window_bounds = array<i64: 128, 128>}, {transform_indices = @transform_2, window_bounds = array<i64: 1, 128>}, {transform_indices = @transform_3, window_bounds = array<i64: 1, 128>}, {transform_indices = @transform_4, window_bounds = array<i64: 16, 128>}]} {
    %c0_i32 = arith.constant 0 : i32
    %0 = arith.cmpi eq, %arg2, %c0_i32 : i32
    %1 = arith.extui %0 : i1 to i32
    %c0_i32_0 = arith.constant 0 : i32
    %2 = arith.cmpi ne, %1, %c0_i32_0 : i32
    scf.if %2 {
      %cst_16 = arith.constant 0.000000e+00 : f32
      %23 = vector.broadcast %cst_16 : f32 to vector<16x128xf32>
      %c0_17 = arith.constant 0 : index
      %c0_18 = arith.constant 0 : index
      %24 = vector.load %arg8[%c0_17, %c0_18] : memref<16x128xf32, #tpu.memory_space<vmem>>, vector<16x128xf32>
      tpu.vector_store %arg8[%c0_17, %c0_18], %23 {strides = array<i32>} : memref<16x128xf32, #tpu.memory_space<vmem>>, vector<16x128xf32>,
    } else {
    }
    %c0 = arith.constant 0 : index
    %c0_1 = arith.constant 0 : index
    %3 = vector.load %arg3[%c0, %c0_1] : memref<16x128xbf16, #tpu.memory_space<vmem>>, vector<16x128xbf16>
    %c0_i32_2 = arith.constant 0 : i32
    %4 = arith.cmpi eq, %arg1, %c0_i32_2 : i32
    %5 = arith.extui %4 : i1 to i32
    %c0_i32_3 = arith.constant 0 : i32
    %6 = arith.cmpi ne, %5, %c0_i32_3 : i32
    scf.if %6 {
      %23 = arith.extf %3 : vector<16x128xbf16> to vector<16x128xf32>
      %24 = arith.mulf %23, %23 : vector<16x128xf32>
      %cst_16 = arith.constant dense<0.000000e+00> : vector<16xf32>
      %25 = vector.multi_reduction <add>, %24, %cst_16 [1] : vector<16x128xf32> to vector<16xf32>
      %26 = vector.shape_cast %25 : vector<16xf32> to vector<16x1xf32>
      %cst_17 = arith.constant 1.562500e-02 : f32
      %27 = vector.broadcast %cst_17 : f32 to vector<16x1xf32>
      %28 = arith.mulf %26, %27 : vector<16x1xf32>
      %cst_18 = arith.constant 9.99999997E-7 : f32
      %29 = vector.broadcast %cst_18 : f32 to vector<16x1xf32>
      %30 = arith.addf %28, %29 : vector<16x1xf32>
      %31 = math.rsqrt %30 : vector<16x1xf32>
      %c0_19 = arith.constant 0 : index
      %c0_20 = arith.constant 0 : index
      %32 = vector.load %arg9[%c0_19, %c0_20] : memref<16x1xf32, #tpu.memory_space<vmem>>, vector<16x1xf32>
      tpu.vector_store %arg9[%c0_19, %c0_20], %31 {strides = array<i32>} : memref<16x1xf32, #tpu.memory_space<vmem>>, vector<16x1xf32>,
    } else {
    }
    %7 = arith.extf %3 : vector<16x128xbf16> to vector<16x128xf32>
    %c0_4 = arith.constant 0 : index
    %c0_5 = arith.constant 0 : index
    %8 = vector.load %arg9[%c0_4, %c0_5] : memref<16x1xf32, #tpu.memory_space<vmem>>, vector<16x1xf32>
    %9 = vector.broadcast %8 : vector<16x1xf32> to vector<16x128xf32>
    %10 = arith.mulf %7, %9 : vector<16x128xf32>
    %c0_6 = arith.constant 0 : index
    %c0_7 = arith.constant 0 : index
    %11 = vector.load %arg6[%c0_6, %c0_7] : memref<1x128xf32, #tpu.memory_space<vmem>>, vector<1x128xf32>
    %12 = vector.broadcast %11 : vector<1x128xf32> to vector<16x128xf32>
    %13 = arith.mulf %10, %12 : vector<16x128xf32>
    %14 = arith.truncf %13 : vector<16x128xf32> to vector<16x128xbf16>
    %c0_8 = arith.constant 0 : index
    %c0_9 = arith.constant 0 : index
    %15 = vector.load %arg8[%c0_8, %c0_9] : memref<16x128xf32, #tpu.memory_space<vmem>>, vector<16x128xf32>
    %c0_10 = arith.constant 0 : index
    %c0_11 = arith.constant 0 : index
    %16 = vector.load %arg4[%c0_10, %c0_11] : memref<128x128xbf16, #tpu.memory_space<vmem>>, vector<128x128xbf16>
    %cst = arith.constant dense<0.000000e+00> : vector<16x128xf32>
    %17 = tpu.matmul %14, %16, %cst {dimension_numbers = #tpu.dot_dimension_numbers<[1], [0], [0], [1], [0, 0, 1, 1], [], []>} : vector<16x128xbf16>, vector<128x128xbf16>, vector<16x128xf32> -> vector<16x128xf32>
    %18 = arith.addf %15, %17 : vector<16x128xf32>
    %c0_12 = arith.constant 0 : index
    %c0_13 = arith.constant 0 : index
    %19 = vector.load %arg8[%c0_12, %c0_13] : memref<16x128xf32, #tpu.memory_space<vmem>>, vector<16x128xf32>
    tpu.vector_store %arg8[%c0_12, %c0_13], %18 {strides = array<i32>} : memref<16x128xf32, #tpu.memory_space<vmem>>, vector<16x128xf32>,
    %c0_i32_14 = arith.constant 0 : i32
    %20 = arith.cmpi eq, %arg2, %c0_i32_14 : i32
    %21 = arith.extui %20 : i1 to i32
    %c0_i32_15 = arith.constant 0 : i32
    %22 = arith.cmpi ne, %21, %c0_i32_15 : i32
    scf.if %22 {
      %c0_16 = arith.constant 0 : index
      %c0_17 = arith.constant 0 : index
      %23 = vector.load %arg8[%c0_16, %c0_17] : memref<16x128xf32, #tpu.memory_space<vmem>>, vector<16x128xf32>
      %c0_18 = arith.constant 0 : index
      %c0_19 = arith.constant 0 : index
      %24 = vector.load %arg5[%c0_18, %c0_19] : memref<1x128xf32, #tpu.memory_space<vmem>>, vector<1x128xf32>
      %25 = vector.broadcast %24 : vector<1x128xf32> to vector<16x128xf32>
      %26 = arith.addf %23, %25 : vector<16x128xf32>
      %27 = arith.negf %26 : vector<16x128xf32>
      %28 = math.exp %27 : vector<16x128xf32>
      %cst_20 = arith.constant 1.000000e+00 : f32
      %29 = vector.broadcast %cst_20 : f32 to vector<16x128xf32>
      %30 = arith.addf %29, %28 : vector<16x128xf32>
      %31 = arith.divf %29, %30 : vector<16x128xf32>
      %32 = arith.mulf %26, %31 : vector<16x128xf32>
      %33 = arith.truncf %32 : vector<16x128xf32> to vector<16x128xbf16>
      %c0_21 = arith.constant 0 : index
      %c0_22 = arith.constant 0 : index
      %34 = vector.load %arg7[%c0_21, %c0_22] : memref<16x128xbf16, #tpu.memory_space<vmem>>, vector<16x128xbf16>
      tpu.vector_store %arg7[%c0_21, %c0_22], %33 {strides = array<i32>} : memref<16x128xbf16, #tpu.memory_space<vmem>>, vector<16x128xbf16>,
    } else {
    }
    return
  }
  func.func @transform_0(%arg0: i32, %arg1: i32, %arg2: i32) -> (i32, i32) {
    %c0_i32 = arith.constant 0 : i32
    return %arg0, %arg2 : i32, i32
  }
  func.func @transform_1(%arg0: i32, %arg1: i32, %arg2: i32) -> (i32, i32) {
    %c0_i32 = arith.constant 0 : i32
    return %arg2, %arg1 : i32, i32
  }
  func.func @transform_2(%arg0: i32, %arg1: i32, %arg2: i32) -> (i32, i32) {
    %c0_i32 = arith.constant 0 : i32
    %c0_i32_0 = arith.constant 0 : i32
    return %c0_i32, %arg1 : i32, i32
  }
  func.func @transform_3(%arg0: i32, %arg1: i32, %arg2: i32) -> (i32, i32) {
    %c0_i32 = arith.constant 0 : i32
    %c0_i32_0 = arith.constant 0 : i32
    return %c0_i32, %arg2 : i32, i32
  }
  func.func @transform_4(%arg0: i32, %arg1: i32, %arg2: i32) -> (i32, i32) {
    %c0_i32 = arith.constant 0 : i32
    return %arg0, %arg1 : i32, i32
  }
}

module attributes {stable_mosaic.version = 11 : i64} {
  func.func @_fused_linear_kernel(%arg0: i32, %arg1: i32, %arg2: i32, %arg3: memref<16x128xbf16, #tpu.memory_space<vmem>>, %arg4: memref<128x128xbf16, #tpu.memory_space<vmem>>, %arg5: memref<1x128xf32, #tpu.memory_space<vmem>>, %arg6: memref<1x128xf32, #tpu.memory_space<vmem>>, %arg7: memref<16x128xf32, #tpu.memory_space<vmem>>, %arg8: memref<16x128xf32, #tpu.memory_space<vmem>>, %arg9: memref<16x1xf32, #tpu.memory_space<vmem>>) attributes {dimension_semantics = [#tpu.dimension_semantics<parallel>, #tpu.dimension_semantics<arbitrary>, #tpu.dimension_semantics<arbitrary>], iteration_bounds = array<i64: 1, 1, 1>, scalar_prefetch = 0 : i64, scratch_operands = 2 : i64, tpu.core_type = #tpu.core_type<tc>, window_params = [{transform_indices = @transform_0, window_bounds = array<i64: 16, 128>}, {transform_indices = @transform_1, window_bounds = array<i64: 128, 128>}, {transform_indices = @transform_2, window_bounds = array<i64: 1, 128>}, {transform_indices = @transform_3, window_bounds = array<i64: 1, 128>}, {transform_indices = @transform_4, window_bounds = array<i64: 16, 128>}]} {
    %c0_i32 = arith.constant 0 : i32
    %0 = arith.cmpi eq, %arg2, %c0_i32 : i32
    %1 = arith.extui %0 : i1 to i32
    %c0_i32_0 = arith.constant 0 : i32
    %2 = arith.cmpi ne, %1, %c0_i32_0 : i32
    scf.if %2 {
      %cst_16 = arith.constant 0.000000e+00 : f32
      %23 = vector.broadcast %cst_16 : f32 to vector<16x128xf32>
      %c0_17 = arith.constant 0 : index
      %c0_18 = arith.constant 0 : index
      %24 = vector.load %arg8[%c0_17, %c0_18] : memref<16x128xf32, #tpu.memory_space<vmem>>, vector<16x128xf32>
      tpu.vector_store %arg8[%c0_17, %c0_18], %23 {strides = array<i32>} : memref<16x128xf32, #tpu.memory_space<vmem>>, vector<16x128xf32>,
    } else {
    }
    %c0 = arith.constant 0 : index
    %c0_1 = arith.constant 0 : index
    %3 = vector.load %arg3[%c0, %c0_1] : memref<16x128xbf16, #tpu.memory_space<vmem>>, vector<16x128xbf16>
    %c0_i32_2 = arith.constant 0 : i32
    %4 = arith.cmpi eq, %arg1, %c0_i32_2 : i32
    %5 = arith.extui %4 : i1 to i32
    %c0_i32_3 = arith.constant 0 : i32
    %6 = arith.cmpi ne, %5, %c0_i32_3 : i32
    scf.if %6 {
      %23 = arith.extf %3 : vector<16x128xbf16> to vector<16x128xf32>
      %24 = arith.mulf %23, %23 : vector<16x128xf32>
      %cst_16 = arith.constant dense<0.000000e+00> : vector<16xf32>
      %25 = vector.multi_reduction <add>, %24, %cst_16 [1] : vector<16x128xf32> to vector<16xf32>
      %26 = vector.shape_cast %25 : vector<16xf32> to vector<16x1xf32>
      %cst_17 = arith.constant 1.562500e-02 : f32
      %27 = vector.broadcast %cst_17 : f32 to vector<16x1xf32>
      %28 = arith.mulf %26, %27 : vector<16x1xf32>
      %cst_18 = arith.constant 9.99999997E-7 : f32
      %29 = vector.broadcast %cst_18 : f32 to vector<16x1xf32>
      %30 = arith.addf %28, %29 : vector<16x1xf32>
      %31 = math.rsqrt %30 : vector<16x1xf32>
      %c0_19 = arith.constant 0 : index
      %c0_20 = arith.constant 0 : index
      %32 = vector.load %arg9[%c0_19, %c0_20] : memref<16x1xf32, #tpu.memory_space<vmem>>, vector<16x1xf32>
      tpu.vector_store %arg9[%c0_19, %c0_20], %31 {strides = array<i32>} : memref<16x1xf32, #tpu.memory_space<vmem>>, vector<16x1xf32>,
    } else {
    }
    %7 = arith.extf %3 : vector<16x128xbf16> to vector<16x128xf32>
    %c0_4 = arith.constant 0 : index
    %c0_5 = arith.constant 0 : index
    %8 = vector.load %arg9[%c0_4, %c0_5] : memref<16x1xf32, #tpu.memory_space<vmem>>, vector<16x1xf32>
    %9 = vector.broadcast %8 : vector<16x1xf32> to vector<16x128xf32>
    %10 = arith.mulf %7, %9 : vector<16x128xf32>
    %c0_6 = arith.constant 0 : index
    %c0_7 = arith.constant 0 : index
    %11 = vector.load %arg6[%c0_6, %c0_7] : memref<1x128xf32, #tpu.memory_space<vmem>>, vector<1x128xf32>
    %12 = vector.broadcast %11 : vector<1x128xf32> to vector<16x128xf32>
    %13 = arith.mulf %10, %12 : vector<16x128xf32>
    %14 = arith.truncf %13 : vector<16x128xf32> to vector<16x128xbf16>
    %c0_8 = arith.constant 0 : index
    %c0_9 = arith.constant 0 : index
    %15 = vector.load %arg8[%c0_8, %c0_9] : memref<16x128xf32, #tpu.memory_space<vmem>>, vector<16x128xf32>
    %c0_10 = arith.constant 0 : index
    %c0_11 = arith.constant 0 : index
    %16 = vector.load %arg4[%c0_10, %c0_11] : memref<128x128xbf16, #tpu.memory_space<vmem>>, vector<128x128xbf16>
    %cst = arith.constant dense<0.000000e+00> : vector<16x128xf32>
    %17 = tpu.matmul %14, %16, %cst {dimension_numbers = #tpu.dot_dimension_numbers<[1], [0], [0], [1], [0, 0, 1, 1], [], []>} : vector<16x128xbf16>, vector<128x128xbf16>, vector<16x128xf32> -> vector<16x128xf32>
    %18 = arith.addf %15, %17 : vector<16x128xf32>
    %c0_12 = arith.constant 0 : index
    %c0_13 = arith.constant 0 : index
    %19 = vector.load %arg8[%c0_12, %c0_13] : memref<16x128xf32, #tpu.memory_space<vmem>>, vector<16x128xf32>
    tpu.vector_store %arg8[%c0_12, %c0_13], %18 {strides = array<i32>} : memref<16x128xf32, #tpu.memory_space<vmem>>, vector<16x128xf32>,
    %c0_i32_14 = arith.constant 0 : i32
    %20 = arith.cmpi eq, %arg2, %c0_i32_14 : i32
    %21 = arith.extui %20 : i1 to i32
    %c0_i32_15 = arith.constant 0 : i32
    %22 = arith.cmpi ne, %21, %c0_i32_15 : i32
    scf.if %22 {
      %c0_16 = arith.constant 0 : index
      %c0_17 = arith.constant 0 : index
      %23 = vector.load %arg8[%c0_16, %c0_17] : memref<16x128xf32, #tpu.memory_space<vmem>>, vector<16x128xf32>
      %c0_18 = arith.constant 0 : index
      %c0_19 = arith.constant 0 : index
      %24 = vector.load %arg5[%c0_18, %c0_19] : memref<1x128xf32, #tpu.memory_space<vmem>>, vector<1x128xf32>
      %25 = vector.broadcast %24 : vector<1x128xf32> to vector<16x128xf32>
      %26 = arith.addf %23, %25 : vector<16x128xf32>
      %c0_20 = arith.constant 0 : index
      %c0_21 = arith.constant 0 : index
      %27 = vector.load %arg7[%c0_20, %c0_21] : memref<16x128xf32, #tpu.memory_space<vmem>>, vector<16x128xf32>
      tpu.vector_store %arg7[%c0_20, %c0_21], %26 {strides = array<i32>} : memref<16x128xf32, #tpu.memory_space<vmem>>, vector<16x128xf32>,
    } else {
    }
    return
  }
  func.func @transform_0(%arg0: i32, %arg1: i32, %arg2: i32) -> (i32, i32) {
    %c0_i32 = arith.constant 0 : i32
    return %arg0, %arg2 : i32, i32
  }
  func.func @transform_1(%arg0: i32, %arg1: i32, %arg2: i32) -> (i32, i32) {
    %c0_i32 = arith.constant 0 : i32
    return %arg2, %arg1 : i32, i32
  }
  func.func @transform_2(%arg0: i32, %arg1: i32, %arg2: i32) -> (i32, i32) {
    %c0_i32 = arith.constant 0 : i32
    %c0_i32_0 = arith.constant 0 : i32
    return %c0_i32, %arg1 : i32, i32
  }
  func.func @transform_3(%arg0: i32, %arg1: i32, %arg2: i32) -> (i32, i32) {
    %c0_i32 = arith.constant 0 : i32
    %c0_i32_0 = arith.constant 0 : i32
    return %c0_i32, %arg2 : i32, i32
  }
  func.func @transform_4(%arg0: i32, %arg1: i32, %arg2: i32) -> (i32, i32) {
    %c0_i32 = arith.constant 0 : i32
    return %arg0, %arg1 : i32, i32
  }
}

</mosaic_0001>

<bundles_post_ra>
// kernel: fg_model_forward.32
= control target key start
LH: loop header
LB: loop body
LE: loop exit
PB: predicated region body
PF: predicated region fallthrough
CT: control target
= control target key end

     0   :  { %v281_v5 = vmov 0   ;;  %v282_v6 = vmov 0.0   ;;  %vm44_vm0 = vcmask 7168   ;;  %vm283_vm1 = vmmov 0   ;;  %s345_s0 = inlined_call_operand.vmem [shape: bf16[16,128], index: 0, kind: input, shape index: {}]   ;;  %s346_s1 = inlined_call_operand.vmem [shape: bf16[128,128], index: 1, kind: input, shape index: {}]   ;;  %s347_s3 = inlined_call_operand.vmem [shape: f32[1,128], index: 3, kind: input, shape index: {}]   ;;  %s348_s2 = inlined_call_operand.vmem [shape: f32[1,128], index: 2, kind: input, shape index: {}]   ;;  %s349_s4 = inlined_call_operand.vmem [shape: bf16[16,128], index: 4, kind: output, shape index: {}]  }
   0x1   :  { %v227_v0 = vld [vmem:[%s345_s0] sm:$0xff]   ;;  %267 = vset.pattern.permute.xlu1 %v281_v5  ;;  %268 = vset.pattern.permute.xlu0 %v281_v5  ;;  %v270_v8 = vld [vmem:[%s346_s1 + $0x8] sm:$0xff]   ;;  %v271_v9 = vld [vmem:[%s346_s1 + $0x10] sm:$0xff]  }
   0x2   :  { %v228_v1 = vunpack.c.l.bf16 %v227_v0  ;;  %v229_v2 = vunpack.c.h.bf16 %v227_v0  ;;  %244 = vmatprep.subr.bf16.mxu0 %v282_v6  ;;  %v269_v7 = vld [vmem:[%s346_s1] sm:$0xff]   ;;  %v272_v10 = vld [vmem:[%s346_s1 + $0x18] sm:$0xff]   ;;  %v274_v12 = vld [vmem:[%s346_s1 + $0x28] sm:$0xff]   ;;  %260 = vmatprep.mubr.msk.bf16.mxu0 %vm283_vm1, %v282_v6 }
   0x3   :  { %245 = vmatpush3.bf16.msra.mxu0 %v269_v7  ;;  %v273_v11 = vld [vmem:[%s346_s1 + $0x20] sm:$0xff]   ;;  %v275_v22 = vld [vmem:[%s346_s1 + $0x30] sm:$0xff]   ;;  %v276_v24 = vld [vmem:[%s346_s1 + $0x38] sm:$0xff]  }
   0x4   :  { %v32_v3 = vmul.f32 %v228_v1, %v228_v1  ;;  %v33_v4 = vmul.f32 %v229_v2, %v229_v2  ;;  %246 = vmatprep.subr.bf16.mxu0 %v282_v6  ;;  %v212_v27 = vld [vmem:[%s347_s3] ss:$0 sm:$0xff] }
   0x5   :  { %v221_v34 = vld [vmem:[%s348_s2] ss:$0 sm:$0xff] }
   0x6   :  { %34 = vadd.xlane.f32.xlu0 %v32_v3 }
   0x7   :  { %247 = vmatpush3.bf16.msra.mxu0 %v270_v8 }
   0x8   :  { %248 = vmatprep.subr.bf16.mxu0 %v282_v6 }
   0xa   :  { %36 = vadd.xlane.f32.xlu0 %v33_v4 }
   0xb   :  { %249 = vmatpush3.bf16.msra.mxu0 %v271_v9 }
   0xc   :  { %250 = vmatprep.subr.bf16.mxu0 %v282_v6 }
   0xf   :  { %251 = vmatpush3.bf16.msra.mxu0 %v272_v10 }
  0x10   :  { %252 = vmatprep.subr.bf16.mxu0 %v282_v6 }
  0x13   :  { %253 = vmatpush3.bf16.msra.mxu0 %v273_v11 }
  0x14   :  { %254 = vmatprep.subr.bf16.mxu0 %v282_v6 }
  0x17   :  { %255 = vmatpush3.bf16.msra.mxu0 %v274_v12 }
  0x18   :  { %256 = vmatprep.subr.bf16.mxu0 %v282_v6 }
  0x1b   :  { %257 = vmatpush3.bf16.msra.mxu0 %v275_v22 }
  0x1c   :  { %258 = vmatprep.subr.bf16.mxu0 %v282_v6 }
  0x1f   :  { %259 = vmatpush3.bf16.msra.mxu0 %v276_v24 }
  0x93   :  { %v35_v13 = vpop.xlane.xlu0 %34 }
  0x94   :  { %v38_v14 = vmul.f32 0.015625, %v35_v13 }
  0x96   :  { %v40_v15 = vadd.f32 1e-06, %v38_v14 }
  0x97   :  { %v37_v16 = vpop.xlane.xlu0 %36 }
  0x98   :  { %277 = vrsqrt.f32 %v40_v15  ;;  %v39_v17 = vmul.f32 0.015625, %v37_v16 }
  0x9a   :  { %v41_v18 = vadd.f32 1e-06, %v39_v17 }
  0x9c   :  { %279 = vrsqrt.f32 %v41_v18 }
  0xa2   :  { %v278_v19 = vpop.eup %277 }
  0xa3   :  { %45 = vst.msk [vmem:[#allocation3] sm:$0xff] %vm44_vm0, %v278_v19 }
  0xa6   :  { %v280_v20 = vpop.eup %279 }
  0xa7   :  { %46 = vst.msk [vmem:[#allocation3 + $0x8] sm:$0xff] %vm44_vm0, %v280_v20 }
  0xaa   :  { %v49_v21 = vld [vmem:[#allocation3] sm:$0xff] }
  0xab   :  { %53 = vperm.xlu1 %267, %v49_v21  }
  0xae   :  { %v50_v23 = vld [vmem:[#allocation3 + $0x8] sm:$0xff] }
  0xaf   :  { %58 = vperm.xlu1 %267, %v50_v23  }
 0x12a   :  { %v54_v25 = vpop.permute.xlu1 %53 }
 0x12b   :  { %v61_v26 = vmul.f32 %v228_v1, %v54_v25 }
 0x12d   :  { %v70_v30 = vmul.f32 %v212_v27, %v61_v26 }
 0x12e   :  { %v59_v28 = vpop.permute.xlu1 %58 }
 0x12f   :  { %v62_v29 = vmul.f32 %v229_v2, %v59_v28 }
 0x131   :  { %v71_v31 = vmul.f32 %v212_v27, %v62_v29 }
 0x133   :  { %v72_v32 = vpack.c.bf16 %v71_v31, %v70_v30 }
 0x135   :  { %261 = vmatmul.mubr.bf16.vlgmr.msra.gmra.mrb[0].mxu0 %v72_v32 }
 0x208   :  { %v173_v33 = vpop.f32.mrb[0].mxu0 }
 0x209   :  { %v262_v35 = vpop.f32.mrb[1].mxu0  ;;  %v196_v37 = vadd.f32 %v221_v34, %v173_v33 }
 0x20a   :  { %v176_v36 = vpop.f32.mrb[2].mxu0 }
 0x20b   :  { %v197_v38 = vadd.f32 %v221_v34, %v176_v36  ;;  %v263_v39 = vpop.f32.mrb[3].mxu0 }
 0x20d   :  { %v233_v40 = vpack.c.bf16 %v197_v38, %v196_v37 }
 0x20f   :  { %234 = vst [vmem:[%s349_s4] sm:$0xff] %v233_v40  }

// kernel: fg_model_forward.31
= control target key start
LH: loop header
LB: loop body
LE: loop exit
PB: predicated region body
PF: predicated region fallthrough
CT: control target
= control target key end

     0   :  { %v240_v0 = vmov 0.0   ;;  %vm241_vm0 = vmmov 0   ;;  %s303_s1 = inlined_call_operand.vmem [shape: bf16[128,128], index: 1, kind: input, shape index: {}]   ;;  %s304_s0 = inlined_call_operand.vmem [shape: bf16[16,128], index: 0, kind: input, shape index: {}]   ;;  %s305_s2 = inlined_call_operand.vmem [shape: f32[1,128], index: 2, kind: input, shape index: {}]   ;;  %s306_s3 = inlined_call_operand.vmem [shape: bf16[16,128], index: 3, kind: input, shape index: {}]   ;;  %s307_s4 = inlined_call_operand.vmem [shape: bf16[16,128], index: 4, kind: output, shape index: {}]  }
   0x1   :  { %209 = vmatprep.subr.bf16.mxu0 %v240_v0  ;;  %v231_v1 = vld [vmem:[%s303_s1] sm:$0xff]   ;;  %225 = vmatprep.mubr.msk.bf16.mxu0 %vm241_vm0, %v240_v0  ;;  %v232_v2 = vld [vmem:[%s303_s1 + $0x8] sm:$0xff]   ;;  %v233_v3 = vld [vmem:[%s303_s1 + $0x10] sm:$0xff]  }
   0x2   :  { %210 = vmatpush3.bf16.msra.mxu0 %v231_v1  ;;  %v234_v4 = vld [vmem:[%s303_s1 + $0x18] sm:$0xff]   ;;  %v235_v5 = vld [vmem:[%s303_s1 + $0x20] sm:$0xff]   ;;  %v236_v6 = vld [vmem:[%s303_s1 + $0x28] sm:$0xff]  }
   0x3   :  { %211 = vmatprep.subr.bf16.mxu0 %v240_v0  ;;  %v237_v7 = vld [vmem:[%s303_s1 + $0x30] sm:$0xff]   ;;  %v238_v8 = vld [vmem:[%s303_s1 + $0x38] sm:$0xff]   ;;  %v239_v9 = vld [vmem:[%s304_s0] sm:$0xff]  }
   0x4   :  { %v186_v10 = vld [vmem:[%s305_s2] ss:$0 sm:$0xff] }
   0x5   :  { %v192_v11 = vld [vmem:[%s306_s3] sm:$0xff]  }
   0x6   :  { %212 = vmatpush3.bf16.msra.mxu0 %v232_v2  ;;  %v193_v14 = vunpack.c.l.bf16 %v192_v11  ;;  %v194_v16 = vunpack.c.h.bf16 %v192_v11 }
   0x7   :  { %213 = vmatprep.subr.bf16.mxu0 %v240_v0 }
   0xa   :  { %214 = vmatpush3.bf16.msra.mxu0 %v233_v3 }
   0xb   :  { %215 = vmatprep.subr.bf16.mxu0 %v240_v0 }
   0xe   :  { %216 = vmatpush3.bf16.msra.mxu0 %v234_v4 }
   0xf   :  { %217 = vmatprep.subr.bf16.mxu0 %v240_v0 }
  0x12   :  { %218 = vmatpush3.bf16.msra.mxu0 %v235_v5 }
  0x13   :  { %219 = vmatprep.subr.bf16.mxu0 %v240_v0 }
  0x16   :  { %220 = vmatpush3.bf16.msra.mxu0 %v236_v6 }
  0x17   :  { %221 = vmatprep.subr.bf16.mxu0 %v240_v0 }
  0x1a   :  { %222 = vmatpush3.bf16.msra.mxu0 %v237_v7 }
  0x1b   :  { %223 = vmatprep.subr.bf16.mxu0 %v240_v0 }
  0x1e   :  { %224 = vmatpush3.bf16.msra.mxu0 %v238_v8 }
  0x21   :  { %226 = vmatmul.mubr.bf16.vlgmr.msra.gmra.mrb[0].mxu0 %v239_v9 }
  0xf4   :  { %v132_v12 = vpop.f32.mrb[0].mxu0 }
  0xf5   :  { %v155_v13 = vadd.f32 %v186_v10, %v132_v12  ;;  %v227_v15 = vpop.f32.mrb[1].mxu0 }
  0xf6   :  { %v135_v17 = vpop.f32.mrb[2].mxu0 }
  0xf7   :  { %v156_v18 = vadd.f32 %v186_v10, %v135_v17  ;;  %v228_v19 = vpop.f32.mrb[3].mxu0  ;;  %v161_v20 = vadd.f32 %v193_v14, %v155_v13 }
  0xf9   :  { %v162_v21 = vadd.f32 %v194_v16, %v156_v18 }
  0xfb   :  { %v198_v22 = vpack.c.bf16 %v162_v21, %v161_v20 }
  0xfd   :  { %199 = vst [vmem:[%s307_s4] sm:$0xff] %v198_v22  }

// kernel: fg_model_forward.29
= control target key start
LH: loop header
LB: loop body
LE: loop exit
PB: predicated region body
PF: predicated region fallthrough
CT: control target
= control target key end

     0   :  { %v323_v5 = vmov 0   ;;  %vm46_vm0 = vcmask 7168   ;;  %v235_v40 = vlaneseq  ;;  %s417_s0 = inlined_call_operand.vmem [shape: bf16[16,128], index: 0, kind: input, shape index: {}]   ;;  %s418_s1 = inlined_call_operand.vmem [shape: bf16[128,256], index: 1, kind: input, shape index: {}]   ;;  %s419_s3 = inlined_call_operand.vmem [shape: f32[1,128], index: 3, kind: input, shape index: {}]   ;;  %s420_s2 = inlined_call_operand.vmem [shape: f32[1,256], index: 2, kind: input, shape index: {}]   ;;  %s421_s4 = inlined_call_operand.vmem [shape: bf16[16,256], index: 4, kind: output, shape index: {}]  }
   0x1   :  { %v289_v0 = vld [vmem:[%s417_s0] sm:$0xff]   ;;  %293 = vset.pattern.permute.xlu1 %v323_v5  ;;  %207 = vmatprep.mubr.bf16.mxu0 %v323_v5  ;;  %v298_v8 = vld [vmem:[%s418_s1 + $0x14] ss:$8 sps:$4 sm:$0xff]   ;;  %v300_v9 = vld [vmem:[%s418_s1 + $0x10] ss:$8 sps:$4 sm:$0xff]  }
   0x2   :  { %v290_v1 = vunpack.c.l.bf16 %v289_v0  ;;  %v352_v2 = vunpack.c.h.bf16 %v289_v0  ;;  %294 = vset.pattern.permute.xlu0 %v323_v5  ;;  %v295_v6 = vld [vmem:[%s418_s1 + $0x4] ss:$8 sps:$4 sm:$0xff]   ;;  %v297_v7 = vld [vmem:[%s418_s1] ss:$8 sps:$4 sm:$0xff]   ;;  %v304_v12 = vld [vmem:[%s418_s1 + $0x34] ss:$8 sps:$4 sm:$0xff]  }
   0x3   :  { %175 = vmatprep.subr.bf16.mxu0 %v295_v6  ;;  %v301_v10 = vld [vmem:[%s418_s1 + $0x24] ss:$8 sps:$4 sm:$0xff]   ;;  %v303_v11 = vld [vmem:[%s418_s1 + $0x20] ss:$8 sps:$4 sm:$0xff]   ;;  %v306_v13 = vld [vmem:[%s418_s1 + $0x30] ss:$8 sps:$4 sm:$0xff]  }
   0x4   :  { %v34_v3 = vmul.f32 %v290_v1, %v290_v1  ;;  %v35_v4 = vmul.f32 %v352_v2, %v352_v2  ;;  %176 = vmatpush1.bf16.msra.mxu0 %v297_v7  ;;  %v307_v14 = vld [vmem:[%s418_s1 + $0x44] ss:$8 sps:$4 sm:$0xff]   ;;  %v309_v15 = vld [vmem:[%s418_s1 + $0x40] ss:$8 sps:$4 sm:$0xff]   ;;  %v310_v16 = vld [vmem:[%s418_s1 + $0x54] ss:$8 sps:$4 sm:$0xff]  }
   0x5   :  { %177 = vmatprep.subr.bf16.mxu0 %v298_v8  ;;  %v312_v17 = vld [vmem:[%s418_s1 + $0x50] ss:$8 sps:$4 sm:$0xff]   ;;  %v313_v27 = vld [vmem:[%s418_s1 + $0x64] ss:$8 sps:$4 sm:$0xff]   ;;  %v315_v28 = vld [vmem:[%s418_s1 + $0x60] ss:$8 sps:$4 sm:$0xff]  }
   0x6   :  { %36 = vadd.xlane.f32.xlu0 %v34_v3  ;;  %v316_v30 = vld [vmem:[%s418_s1 + $0x74] ss:$8 sps:$4 sm:$0xff]   ;;  %v318_v31 = vld [vmem:[%s418_s1 + $0x70] ss:$8 sps:$4 sm:$0xff]   ;;  %v267_v34 = vld [vmem:[%s419_s3] ss:$0 sm:$0xff] }
   0x7   :  { %v236_v41 = vshrl.u32 %v235_v40, 7  ;;  %v233_v43 = vld [vmem:[%s420_s2] sm:$0x3] }
   0x8   :  { %178 = vmatpush1.bf16.msra.mxu0 %v300_v9 }
   0x9   :  { %179 = vmatprep.subr.bf16.mxu0 %v301_v10  ;;  %v237_v42 = vsub.s32 0, %v236_v41  ;;  %v241_v44 = vsub.s32 1, %v236_v41 }
   0xa   :  { %38 = vadd.xlane.f32.xlu0 %v35_v4 }
   0xb   :  { %v238_v45 = vrot.slane %v233_v43, %v237_v42  ;;  %v242_v46 = vrot.slane %v233_v43, %v241_v44 }
   0xc   :  { %180 = vmatpush1.bf16.msra.mxu0 %v303_v11 }
   0xd   :  { %181 = vmatprep.subr.bf16.mxu0 %v304_v12 }
  0x10   :  { %182 = vmatpush1.bf16.msra.mxu0 %v306_v13 }
  0x11   :  { %183 = vmatprep.subr.bf16.mxu0 %v307_v14 }
  0x14   :  { %184 = vmatpush1.bf16.msra.mxu0 %v309_v15 }
  0x15   :  { %185 = vmatprep.subr.bf16.mxu0 %v310_v16 }
  0x18   :  { %186 = vmatpush1.bf16.msra.mxu0 %v312_v17 }
  0x19   :  { %187 = vmatprep.subr.bf16.mxu0 %v313_v27 }
  0x1c   :  { %188 = vmatpush1.bf16.msra.mxu0 %v315_v28 }
  0x1d   :  { %189 = vmatprep.subr.bf16.mxu0 %v316_v30 }
  0x20   :  { %190 = vmatpush1.bf16.msra.mxu0 %v318_v31 }
  0x93   :  { %v37_v18 = vpop.xlane.xlu0 %36 }
  0x94   :  { %v40_v19 = vmul.f32 0.015625, %v37_v18 }
  0x96   :  { %v42_v20 = vadd.f32 1e-06, %v40_v19 }
  0x97   :  { %v39_v21 = vpop.xlane.xlu0 %38 }
  0x98   :  { %319 = vrsqrt.f32 %v42_v20  ;;  %v41_v22 = vmul.f32 0.015625, %v39_v21 }
  0x9a   :  { %v43_v23 = vadd.f32 1e-06, %v41_v22 }
  0x9c   :  { %321 = vrsqrt.f32 %v43_v23 }
  0xa2   :  { %v320_v24 = vpop.eup %319 }
  0xa3   :  { %47 = vst.msk [vmem:[#allocation3] sm:$0xff] %vm46_vm0, %v320_v24 }
  0xa6   :  { %v322_v25 = vpop.eup %321 }
  0xa7   :  { %48 = vst.msk [vmem:[#allocation3 + $0x8] sm:$0xff] %vm46_vm0, %v322_v25 }
  0xaa   :  { %v51_v26 = vld [vmem:[#allocation3] sm:$0xff] }
  0xab   :  { %55 = vperm.xlu1 %293, %v51_v26  }
  0xae   :  { %v52_v29 = vld [vmem:[#allocation3 + $0x8] sm:$0xff] }
  0xaf   :  { %60 = vperm.xlu1 %293, %v52_v29  }
 0x12a   :  { %v56_v32 = vpop.permute.xlu1 %55 }
 0x12b   :  { %v63_v33 = vmul.f32 %v290_v1, %v56_v32 }
 0x12d   :  { %v72_v37 = vmul.f32 %v267_v34, %v63_v33 }
 0x12e   :  { %v61_v35 = vpop.permute.xlu1 %60 }
 0x12f   :  { %v64_v36 = vmul.f32 %v352_v2, %v61_v35 }
 0x131   :  { %v73_v38 = vmul.f32 %v267_v34, %v64_v36 }
 0x133   :  { %v74_v39 = vpack.c.bf16 %v73_v38, %v72_v37 }
 0x135   :  { %208 = vmatmul.mubr.bf16.vlgmr.msra.gmra.mrb[0].mxu0 %v74_v39 }
 0x208   :  { %v209_v47 = vpop.f32.mrb[0].mxu0 }
 0x209   :  { %v245_v48 = vadd.f32 %v238_v45, %v209_v47  ;;  %v211_v49 = vpop.f32.mrb[1].mxu0 }
 0x20a   :  { %v246_v50 = vadd.f32 %v242_v46, %v211_v49  ;;  %v213_v51 = vpop.f32.mrb[2].mxu0 }
 0x20b   :  { %v247_v52 = vadd.f32 %v238_v45, %v213_v51  ;;  %v215_v53 = vpop.f32.mrb[3].mxu0 }
 0x20c   :  { %v286_v54 = vpack.c.bf16 %v246_v50, %v245_v48  ;;  %v248_v55 = vadd.f32 %v242_v46, %v215_v53 }
 0x20e   :  { %261 = vst [vmem:[%s421_s4] sm:$0xff] %v286_v54  ;;  %v287_v56 = vpack.c.bf16 %v248_v55, %v247_v52 }
 0x210   :  { %262 = vst [vmem:[%s421_s4 + $0x8] sm:$0xff] %v287_v56 }

// kernel: fg_model_forward.30
= control target key start
LH: loop header
LB: loop body
LE: loop exit
PB: predicated region body
PF: predicated region fallthrough
CT: control target
= control target key end

     0   :  { %s1194_s12 = smov 0   ;;  %s1196_s13 = smov 0   ;;  %s1389_s0 = inlined_call_operand.vmem [shape: bf16[2,8,192], index: 0, kind: input, shape index: {}, may-alias: {0,1}]   ;;  %s1390_s1 = inlined_call_operand.vmem [shape: bf16[2,8,192], index: 1, kind: input, shape index: {}, may-alias: {0,1}]   ;;  %s1391_s2 = inlined_call_operand.vmem [shape: f32[2,1,8], index: 2, kind: input, shape index: {}]   ;;  %s1392_s3 = inlined_call_operand.vmem [shape: bf16[2,8,64], index: 3, kind: output, shape index: {}]  }
   0x1   :  { %s1198_s14 = smov 0  }
   0x2 LB: > { %s25_s15 = sadd.s32 1, %s1157_s13  ;;  %p992_p0 = scmp.ge.s32.totalorder %s1161_s14, 1  ;;  %s1161_s14 = sphi %s1198_s14, %s13_s14   ;;  %s1157_s13 = sphi %s1196_s13, %s1396_s13   ;;  %s1153_s12 = sphi %s1194_s12, %s1395_s12  }
   0x3   : > { %p27_p1 = scmp.ge.s32.totalorder %s25_s15, 2  ;;  %p178_p2 = scmp.lt.s32.totalorder %s1161_s14, 3 }
   0x5   : > { %s1398_s15 = smov (%p27_p1, %s25_s15), 0  ;;  %p179_p3 = pnand %p992_p0, %p178_p2 }
   0x6   : > { %p216_p4 = scmp.lt.s32.totalorder (!%p179_p3), %s1153_s12, 1  ;;  %vm254_vm0 = vcmask (!%p179_p3), 130048   ;;  %v1163_v0 = vmov (!%p179_p3), 0.0   ;;  %vm1164_vm1 = vmmov (!%p179_p3), 0   ;;  %v1165_v1 = vmov (!%p179_p3), 0   ;;  %s1166_s20 = smov (!%p179_p3), 64  }
   0x7   : > { %182 = sbr.rel (%p179_p3) target bundleno = 1588 (0x634), region = 32  ;;  %1029 = vmatprep.subr.bf16.mxu0 (!%p179_p3), %v1163_v0  ;;  %255 = vst.msk [vmem:[#allocation4] sm:$0xff] (!%p179_p3), %vm254_vm0, %v1163_v0  ;;  %256 = vst.msk [vmem:[#allocation4 + $0x8] sm:$0xff] (!%p179_p3), %vm254_vm0, %v1163_v0  ;;  %1031 = vmatprep.mubr.msk.bf16.mxu0 (!%p179_p3), %vm1164_vm1, %v1163_v0  ;;  %vm245_vm2 = vcmask (!%p179_p3), 7168   ;;  %v1167_v7 = vmov (!%p179_p3), -1e+30   ;;  %v263_v8 = vlaneseq (!%p179_p3) }
   0x8   : > { %257 = vst.msk [vmem:[#allocation4 + $0x10] sm:$0xff] (!%p179_p3), %vm254_vm0, %v1163_v0  ;;  %258 = vst.msk [vmem:[#allocation4 + $0x18] sm:$0xff] (!%p179_p3), %vm254_vm0, %v1163_v0  ;;  %1035 = vmatprep.subr.bf16.mxu1 (!%p179_p3), %v1163_v0  ;;  %1037 = vmatprep.mubr.msk.bf16.mxu1 (!%p179_p3), %vm1164_vm1, %v1163_v0  ;;  %vm332_vm7 = vcmask (!%p179_p3), 64512   ;;  %s1168_s27 = smov (!%p179_p3), 48   ;;  %vm370_vm8 = vcmask (!%p179_p3), 1043456   ;;  %s1169_s28 = smov (!%p179_p3), 112  }
   0x9   : > { %1112 = vset.pattern.permute.xlu1 (!%p179_p3), %v1165_v1  ;;  %1113 = vset.pattern.permute.xlu0 (!%p179_p3), %v1165_v1  ;;  %246 = vst.msk [vmem:[#allocation2] sm:$0xff] (!%p179_p3), %vm245_vm2, %v1167_v7  ;;  %247 = vst.msk [vmem:[#allocation2 + $0x8] sm:$0xff] (!%p179_p3), %vm245_vm2, %v1167_v7  ;;  %v264_v10 = vshrl.u32 (!%p179_p3), %v263_v8, 7  ;;  %v267_v13 = vand.u32 (!%p179_p3), 127, %v263_v8  ;;  %s1170_s29 = smov (!%p179_p3), 32   ;;  %s1171_s30 = smov (!%p179_p3), 96  }
   0xa   : > { %248 = vst.msk [vmem:[#allocation2 + $0x10] sm:$0xff] (!%p179_p3), %vm245_vm2, %v1167_v7  ;;  %249 = vst.msk [vmem:[#allocation2 + $0x18] sm:$0xff] (!%p179_p3), %vm245_vm2, %v1167_v7  ;;  %s1172_s4 = smov (!%p179_p3), 16   ;;  %s1173_s5 = smov (!%p179_p3), 80   ;;  %vm887_vm9 = vcmask (!%p179_p3), 261120   ;;  %vm889_vm10 = vcmask (!%p179_p3), 392192  }
   0xb   : > { %250 = vst.msk [vmem:[#allocation3] sm:$0xff] (!%p179_p3), %vm245_vm2, %v1163_v0  ;;  %251 = vst.msk [vmem:[#allocation3 + $0x8] sm:$0xff] (!%p179_p3), %vm245_vm2, %v1163_v0  ;;  %v274_v11 = vsub.s32 (!%p179_p3), 0, %v264_v10  ;;  %vm270_vm4 = vcmp.le.s32.totalorder (!%p179_p3), %v267_v13, %v264_v10  ;;  %vm892_vm11 = vcmask (!%p179_p3), 519168  }
   0xc   : > { %252 = vst.msk [vmem:[#allocation3 + $0x10] sm:$0xff] (!%p179_p3), %vm245_vm2, %v1163_v0  ;;  %253 = vst.msk [vmem:[#allocation3 + $0x18] sm:$0xff] (!%p179_p3), %vm245_vm2, %v1163_v0 }
   0xe   : > { %s1400_s12 = smov (!%p216_p4, %s1153_s12), 1 }
   0xf   : > { %s1011_s16 = sshll.u32 %s1400_s12, 3  ;;  %s235_s26 = scalar_lea.vmem %s1391_s2, %s1400_s12 }
  0x10   : > { %s229_s19 = scalar_lea.vmem %s1390_s1, %s1011_s16  ;;  %s220_s23 = scalar_lea.vmem %s1389_s0, %s1011_s16  ;;  %v261_v9 = vld [vmem:[%s235_s26] sm:$0x1] }
  0x11   : > { %v260_v2 = vld [vmem:[%s229_s19] sm:$0xff]  ;;  %vm262_vm3 = vcmp.gt.f32.partialorder %v261_v9, 0.0  ;;  %v609_v7 = vld [vmem:[#allocation2 + $0x10] sm:$0xff]  ;;  %s997_s6 = sshll.u32 %s1400_s12, 2 }
  0x12   : > { %v998_v3 = vcombine.low %v260_v2, %v260_v2  ;;  %v259_v6 = vld [vmem:[%s220_s23] sm:$0xff]  ;;  %v271_v12 = vsel %vm262_vm3, 1, %v1165_v1  ;;  %v1274_v27 = vcombine.high %v260_v2, %v260_v2  ;;  %s239_s9 = scalar_lea.vmem %s1392_s3, %s997_s6 }
  0x13   : > { %v275_v14 = vrot.slane %v271_v12, %v274_v11  ;;  %v1263_v22 = vld [vmem:[#allocation2] sm:$0xff]  ;;  %v1002_v26 = vcombine.low %v259_v6, %v259_v6  ;;  %v746_v11 = vld [vmem:[#allocation2 + $0x18] sm:$0xff] }
  0x14   : > { %281 = vrot.lane.b32.xlu0 %v998_v3, %s1166_s20  ;;  %v372_v28 = vsel %vm370_vm8, %v1274_v27, 0 }
  0x15   : > { %vm276_vm5 = vcmp.eq.s32.totalorder %v275_v14, 1  ;;  %1036 = vmatpush3.bf16.msra.mxu1 %v372_v28 }
  0x16   : > { %vm1256_vm6 = vmand %vm276_vm5, %vm270_vm4  ;;  %1041 = vmatprep.subr.bf16.mxu1 %v1163_v0 }
  0x86   : > { %v282_v4 = vpop.permute.xlu0 %281 }
  0x87   : > { %v288_v5 = vsel %vm254_vm0, %v282_v4, 0 }
  0x88   : > { %1030 = vmatpush3.bf16.xpose.msra.mxu0 %v288_v5 }
  0x89   : > { %1047 = vmatprep.subr.bf16.mxu0 %v1163_v0 }
  0x8f   : > { %1032 = vmatmul.mubr.msk.bf16.vlgmr.msra.gmra.mrb[0].mxu0 %vm254_vm0, %v259_v6 }
  0x90   : > { %1049 = vmatprep.mubr.msk.bf16.mxu0 %vm1164_vm1, %v1163_v0 }
 0x162   : > { %v324_v16 = vpop.f32.mrb[0].mxu0 }
 0x163   : > { %v330_v17 = vsel %vm1256_vm6, %v324_v16, -1e+30  ;;  %v1033_v18 = vpop.f32.mrb[1].mxu0 }
 0x164   : > { %v327_v19 = vpop.f32.mrb[2].mxu0  ;;  %v333_v20 = vsel %vm332_vm7, %v330_v17, -inf }
 0x165   : > { %334 = vmax.xlane.f32.xlu0 %v333_v20  ;;  %v1034_v21 = vpop.f32.mrb[3].mxu0 }
 0x1f2   : > { %v335_v23 = vpop.xlane.xlu0 %334 }
 0x1f3   : > { %v1266_v24 = vmax.f32 %v1263_v22, %v335_v23 }
 0x1f5   : > { %v337_v25 = vsub.f32 %v1263_v22, %v1266_v24  ;;  %416 = vst.msk [vmem:[#allocation2] sm:$0xff] %vm245_vm2, %v1266_v24  ;;  %342 = vperm.xlu1 %1112, %v1266_v24  }
 0x1f9   : > { %422 = vrot.lane.b32.xlu1 %v998_v3, %s1168_s27 }
 0x1fd   : > { %420 = vrot.lane.b32.xlu1 %v1002_v26, %s1169_s28 }
 0x201   : > { %559 = vrot.lane.b32.xlu1 %v998_v3, %s1170_s29 }
 0x205   : > { %557 = vrot.lane.b32.xlu1 %v1002_v26, %s1171_s30 }
 0x209   : > { %696 = vrot.lane.b32.xlu1 %v998_v3, %s1172_s4  ;;  %v1316_v3 = vld [vmem:[#allocation2 + $0x8] sm:$0xff] }
 0x20d   : > { %694 = vrot.lane.b32.xlu1 %v1002_v26, %s1173_s5 }
 0x274   : > { %v343_v29 = vpop.permute.xlu1 %342 }
 0x275   : > { %v345_v30 = vsub.f32 %v330_v17, %v343_v29 }
 0x277   : > { %v346_v31 = vmul.f32 1.442695, %v345_v30 }
 0x278   : > { %v423_v32 = vpop.permute.xlu1 %422 }
 0x279   : > { %1115 = vpow2.f32 %v346_v31  ;;  %v428_v36 = vsel %vm254_vm0, %v423_v32, 0  ;;  %v338_v32 = vmul.f32 1.442695, %v337_v25 }
 0x27c   : > { %v421_v33 = vpop.permute.xlu1 %420 }
 0x280   : > { %v560_v38 = vpop.permute.xlu1 %559 }
 0x281   : > { %v565_v40 = vsel %vm254_vm0, %v560_v38, 0 }
 0x283   : > { %v1116_v34 = vpop.eup %1115 }
 0x284   : > { %v1286_v35 = vsel %vm1256_vm6, %v1116_v34, 0.0  ;;  %v558_v39 = vpop.permute.xlu1 %557 }
 0x285   : > { %v364_v37 = vpack.c.bf16 %v1286_v35, %v1286_v35  ;;  %v351_v16 = vsel %vm332_vm7, %v1286_v35, 0.0 }
 0x287   : > { %1038 = vmatmul.mubr.msk.bf16.vlgmr.msra.gmra.mrb[0].mxu1 %vm332_vm7, %v364_v37 }
 0x288   : > { %1042 = vmatpush3.bf16.xpose.msra.mxu1 %v428_v36  ;;  %1043 = vmatprep.mubr.msk.bf16.mxu1 %vm1164_vm1, %v1163_v0  ;;  %v697_v41 = vpop.permute.xlu1 %696 }
 0x289   : > { %1053 = vmatprep.subr.bf16.mxu1 %v1163_v0  ;;  %v702_v42 = vsel %vm254_vm0, %v697_v41, 0 }
 0x28c   : > { %v695_v43 = vpop.permute.xlu1 %694 }
 0x28f   : > { %1044 = vmatmul.mubr.msk.bf16.vlgmr.msra.gmra.mrb[4].mxu1 %vm254_vm0, %v421_v33 }
 0x290   : > { %1054 = vmatpush3.bf16.xpose.msra.mxu1 %v565_v40  ;;  %1055 = vmatprep.mubr.msk.bf16.mxu1 %vm1164_vm1, %v1163_v0 }
 0x291   : > { %1065 = vmatprep.subr.bf16.mxu1 %v1163_v0 }
 0x297   : > { %1056 = vmatmul.mubr.msk.bf16.vlgmr.msra.gmra.mrb[8].mxu1 %vm254_vm0, %v558_v39 }
 0x298   : > { %1066 = vmatpush3.bf16.xpose.msra.mxu1 %v702_v42  ;;  %1067 = vmatprep.mubr.msk.bf16.mxu1 %vm1164_vm1, %v1163_v0 }
 0x29f   : > { %1068 = vmatmul.mubr.msk.bf16.vlgmr.msra.gmra.mrb[12].mxu1 %vm254_vm0, %v695_v43 }
 0x35a   : > { %v1305_v44 = vpop.f32.mrb[0].mxu1 }
 0x35b   : > { %v1039_v45 = vpop.f32.mrb[1].mxu1 }
 0x35c   : > { %v411_v46 = vpop.f32.mrb[2].mxu1 }
 0x35d   : > { %v1040_v47 = vpop.f32.mrb[3].mxu1 }
 0x362   : > { %v464_v48 = vpop.f32.mrb[4].mxu1 }
 0x363   : > { %v470_v49 = vsel %vm1256_vm6, %v464_v48, -1e+30  ;;  %v1045_v50 = vpop.f32.mrb[5].mxu1 }
 0x364   : > { %v467_v51 = vpop.f32.mrb[6].mxu1  ;;  %v473_v52 = vsel %vm332_vm7, %v470_v49, -inf }
 0x365   : > { %474 = vmax.xlane.f32.xlu1 %v473_v52  ;;  %v1046_v53 = vpop.f32.mrb[7].mxu1  ;;  %v349_v51 = vld [vmem:[#allocation3] sm:$0xff] }
 0x36a   : > { %v601_v54 = vpop.f32.mrb[8].mxu1 }
 0x36b   : > { %v607_v55 = vsel %vm1256_vm6, %v601_v54, -1e+30  ;;  %v1057_v56 = vpop.f32.mrb[9].mxu1 }
 0x36c   : > { %v604_v57 = vpop.f32.mrb[10].mxu1  ;;  %v610_v58 = vsel %vm332_vm7, %v607_v55, -inf }
 0x36d   : > { %611 = vmax.xlane.f32.xlu0 %v610_v58  ;;  %v1058_v59 = vpop.f32.mrb[11].mxu1  ;;  %v490_v58 = vld [vmem:[#allocation3 + $0x8] sm:$0xff] }
 0x372   : > { %v738_v60 = vpop.f32.mrb[12].mxu1 }
 0x373   : > { %v744_v61 = vsel %vm1256_vm6, %v738_v60, -1e+30  ;;  %v1069_v62 = vpop.f32.mrb[13].mxu1 }
 0x374   : > { %v741_v63 = vpop.f32.mrb[14].mxu1  ;;  %v747_v1 = vsel %vm332_vm7, %v744_v61, -inf  ;;  %v357_v62 = vld [vmem:[#allocation4] sm:$0xff] }
 0x375   : > { %748 = vmax.xlane.f32.xlu0 %v747_v1  ;;  %v1070_v2 = vpop.f32.mrb[15].mxu1  ;;  %v627_v1 = vld [vmem:[#allocation3 + $0x10] sm:$0xff] }
 0x3f2   : > { %v475_v4 = vpop.xlane.xlu1 %474 }
 0x3f3   : > { %v1319_v5 = vmax.f32 %v1316_v3, %v475_v4 }
 0x3f5   : > { %v477_v6 = vsub.f32 %v1316_v3, %v1319_v5  ;;  %556 = vst.msk [vmem:[#allocation2 + $0x8] sm:$0xff] %vm245_vm2, %v1319_v5  ;;  %482 = vperm.xlu0 %1113, %v1319_v5  }
 0x3f7   : > { %v478_v50 = vmul.f32 1.442695, %v477_v6 }
 0x3f9   : > { %643 = vrot.lane.b32.xlu0 %v1274_v27, %s1171_s30 }
 0x3fa   : > { %v612_v8 = vpop.xlane.xlu0 %611 }
 0x3fb   : > { %v613_v9 = vmax.f32 %v609_v7, %v612_v8 }
 0x3fd   : > { %v614_v10 = vsub.f32 %v609_v7, %v613_v9  ;;  %693 = vst.msk [vmem:[#allocation2 + $0x10] sm:$0xff] %vm245_vm2, %v613_v9  ;;  %619 = vperm.xlu1 %1112, %v613_v9   ;;  %v764_v9 = vld [vmem:[#allocation3 + $0x18] sm:$0xff] }
 0x3ff   : > { %v615_v39 = vmul.f32 1.442695, %v614_v10 }
 0x402   : > { %v749_v12 = vpop.xlane.xlu0 %748 }
 0x403   : > { %v750_v13 = vmax.f32 %v746_v11, %v749_v12 }
 0x405   : > { %v751_v14 = vsub.f32 %v746_v11, %v750_v13  ;;  %830 = vst.msk [vmem:[#allocation2 + $0x18] sm:$0xff] %vm245_vm2, %v750_v13  ;;  %756 = vperm.xlu1 %1112, %v750_v13  }
 0x407   : > { %v752_v24 = vmul.f32 1.442695, %v751_v14 }
 0x409   : > { %506 = vrot.lane.b32.xlu1 %v1274_v27, %s1169_s28 }
 0x40d   : > { %780 = vrot.lane.b32.xlu1 %v1274_v27, %s1173_s5 }
 0x418   : > { %352 = vadd.xlane.f32.xlu0 %v351_v16 }
 0x474   : > { %v483_v17 = vpop.permute.xlu0 %482 }
 0x475   : > { %v485_v18 = vsub.f32 %v470_v49, %v483_v17 }
 0x477   : > { %v486_v19 = vmul.f32 1.442695, %v485_v18 }
 0x478   : > { %v644_v34 = vpop.permute.xlu0 %643 }
 0x479   : > { %1117 = vpow2.f32 %v486_v19  ;;  %v649_v38 = vsel %vm370_vm8, %v644_v34, 0 }
 0x47c   : > { %v620_v20 = vpop.permute.xlu1 %619 }
 0x47d   : > { %v622_v21 = vsub.f32 %v607_v55, %v620_v20  ;;  %v498_v20 = vld [vmem:[#allocation4 + $0x8] sm:$0xff] }
 0x47f   : > { %v623_v23 = vmul.f32 1.442695, %v622_v21 }
 0x481   : > { %1119 = vpow2.f32 %v623_v23 }
 0x483   : > { %v1118_v26 = vpop.eup %1117 }
 0x484   : > { %v757_v28 = vpop.permute.xlu1 %756  ;;  %v488_v29 = vsel %vm1256_vm6, %v1118_v26, 0.0 }
 0x485   : > { %v759_v30 = vsub.f32 %v744_v61, %v757_v28  ;;  %v492_v27 = vsel %vm332_vm7, %v488_v29, 0.0  ;;  %v505_v37 = vpack.c.bf16 %v488_v29, %v488_v29 }
 0x486   : > { %493 = vadd.xlane.f32.xlu1 %v492_v27 }
 0x487   : > { %v760_v31 = vmul.f32 1.442695, %v759_v30 }
 0x488   : > { %v507_v33 = vpop.permute.xlu1 %506 }
 0x489   : > { %1121 = vpow2.f32 %v760_v31  ;;  %v512_v35 = vsel %vm370_vm8, %v507_v33, 0  ;;  %v635_v31 = vld [vmem:[#allocation4 + $0x10] sm:$0xff] }
 0x48a   : > { %1048 = vmatpush3.bf16.msra.mxu0 %v512_v35  ;;  %1123 = vpow2.f32 %v338_v32 }
 0x48b   : > { %v1120_v36 = vpop.eup %1119  ;;  %1059 = vmatprep.subr.bf16.mxu0 %v1163_v0  ;;  %1125 = vpow2.f32 %v615_v39  ;;  %v772_v39 = vld [vmem:[#allocation4 + $0x18] sm:$0xff] }
 0x48c   : > { %v625_v40 = vsel %vm1256_vm6, %v1120_v36, 0.0  ;;  %v781_v25 = vpop.permute.xlu1 %780  ;;  %1127 = vpow2.f32 %v752_v24 }
 0x48d   : > { %1050 = vmatmul.mubr.msk.bf16.vlgmr.msra.gmra.mrb[4].mxu0 %vm332_vm7, %v505_v37  ;;  %v629_v22 = vsel %vm332_vm7, %v625_v40, 0.0  ;;  %v642_v42 = vpack.c.bf16 %v625_v40, %v625_v40  ;;  %v786_v43 = vsel %vm370_vm8, %v781_v25, 0  ;;  %1129 = vpow2.f32 %v478_v50 }
 0x48e   : > { %630 = vadd.xlane.f32.xlu0 %v629_v22  ;;  %1060 = vmatpush3.bf16.msra.mxu0 %v649_v38 }
 0x48f   : > { %1061 = vmatprep.mubr.msk.bf16.mxu0 %vm1164_vm1, %v1163_v0  ;;  %1071 = vmatprep.subr.bf16.mxu0 %v1163_v0 }
 0x493   : > { %v1122_v41 = vpop.eup %1121 }
 0x494   : > { %v762_v45 = vsel %vm1256_vm6, %v1122_v41, 0.0  ;;  %v1124_v47 = vpop.eup %1123 }
 0x495   : > { %1062 = vmatmul.mubr.msk.bf16.vlgmr.msra.gmra.mrb[8].mxu0 %vm332_vm7, %v642_v42  ;;  %v766_v46 = vsel %vm332_vm7, %v762_v45, 0.0  ;;  %v1126_v48 = vpop.eup %1125  ;;  %v779_v49 = vpack.c.bf16 %v762_v45, %v762_v45  ;;  %v350_v52 = vmul.f32 %v1124_v47, %v349_v51 }
 0x496   : > { %767 = vadd.xlane.f32.xlu0 %v766_v46  ;;  %1072 = vmatpush3.bf16.msra.mxu0 %v786_v43  ;;  %v1128_v15 = vpop.eup %1127  ;;  %v628_v4 = vmul.f32 %v1126_v48, %v627_v1 }
 0x497   : > { %360 = vperm.xlu1 %1112, %v1124_v47   ;;  %1073 = vmatprep.mubr.msk.bf16.mxu0 %vm1164_vm1, %v1163_v0  ;;  %v1130_v55 = vpop.eup %1129  ;;  %v765_v10 = vmul.f32 %v1128_v15, %v764_v9 }
 0x498   : > { %v491_v59 = vmul.f32 %v1130_v55, %v490_v58 }
 0x49b   : > { %638 = vperm.xlu1 %1112, %v1126_v48  }
 0x49d   : > { %1074 = vmatmul.mubr.msk.bf16.vlgmr.msra.gmra.mrb[12].mxu0 %vm332_vm7, %v779_v49 }
 0x49f   : > { %775 = vperm.xlu1 %1112, %v1128_v15  }
 0x4a5   : > { %v353_v53 = vpop.xlane.xlu0 %352 }
 0x4a6   : > { %v354_v54 = vadd.f32 %v353_v53, %v350_v52 }
 0x4a8   : > { %356 = vst.msk [vmem:[#allocation3] sm:$0xff] %vm245_vm2, %v354_v54 }
 0x4ac   : > { %501 = vperm.xlu0 %1113, %v1130_v55  }
 0x4af   : > { %v834_v0 = vld [vmem:[#allocation3] sm:$0xff] }
 0x4b0   : > { %v835_v56 = vmax.f32 %v834_v0, 1e-30 }
 0x4b2   : > { %1131 = vrcp.f32 %v835_v56 }
 0x4bc   : > { %v1132_v57 = vpop.eup %1131 }
 0x4bd   : > { %840 = vperm.xlu0 %1113, %v1132_v57  }
 0x513   : > { %v494_v60 = vpop.xlane.xlu1 %493 }
 0x514   : > { %v495_v61 = vadd.f32 %v494_v60, %v491_v59 }
 0x516   : > { %496 = vst.msk [vmem:[#allocation3 + $0x8] sm:$0xff] %vm245_vm2, %v495_v61 }
 0x517   : > { %v361_v63 = vpop.permute.xlu1 %360 }
 0x518   : > { %v363_v2 = vmul.f32 %v361_v63, %v357_v62 }
 0x51a   : > { %v414_v3 = vadd.f32 %v1305_v44, %v363_v2 }
 0x51b   : > { %v631_v5 = vpop.xlane.xlu0 %630  ;;  %v639_v32 = vpop.permute.xlu1 %638 }
 0x51c   : > { %415 = vst.msk [vmem:[#allocation4] sm:$0xff] %vm254_vm0, %v414_v3  ;;  %v632_v6 = vadd.f32 %v631_v5, %v628_v4  ;;  %v641_v33 = vmul.f32 %v639_v32, %v635_v31 }
 0x51d   : > { %v844_v7 = vld [vmem:[#allocation3 + $0x8] sm:$0xff] }
 0x51e   : > { %633 = vst.msk [vmem:[#allocation3 + $0x10] sm:$0xff] %vm245_vm2, %v632_v6  ;;  %v845_v8 = vmax.f32 %v844_v7, 1e-30 }
 0x51f   : > { %v776_v40 = vpop.permute.xlu1 %775 }
 0x520   : > { %1133 = vrcp.f32 %v845_v8  ;;  %v778_v22 = vmul.f32 %v776_v40, %v772_v39 }
 0x523   : > { %v768_v11 = vpop.xlane.xlu0 %767  ;;  %v837_v54 = vld [vmem:[#allocation4] sm:$0xff] }
 0x524   : > { %v769_v12 = vadd.f32 %v768_v11, %v765_v10 }
 0x525   : > { %v854_v13 = vld [vmem:[#allocation3 + $0x10] sm:$0xff] }
 0x526   : > { %770 = vst.msk [vmem:[#allocation3 + $0x18] sm:$0xff] %vm245_vm2, %v769_v12  ;;  %v855_v14 = vmax.f32 %v854_v13, 1e-30 }
 0x528   : > { %1135 = vrcp.f32 %v855_v14 }
 0x52a   : > { %v1134_v44 = vpop.eup %1133 }
 0x52b   : > { %850 = vperm.xlu1 %1112, %v1134_v44   ;;  %v502_v21 = vpop.permute.xlu0 %501 }
 0x52c   : > { %v504_v23 = vmul.f32 %v502_v21, %v498_v20 }
 0x52d   : > { %v864_v16 = vld [vmem:[#allocation3 + $0x18] sm:$0xff] }
 0x52e   : > { %v865_v17 = vmax.f32 %v864_v16, 1e-30 }
 0x530   : > { %1137 = vrcp.f32 %v865_v17 }
 0x532   : > { %v1136_v18 = vpop.eup %1135 }
 0x533   : > { %860 = vperm.xlu0 %1113, %v1136_v18  }
 0x53a   : > { %v1138_v19 = vpop.eup %1137 }
 0x53b   : > { %870 = vperm.xlu1 %1112, %v1138_v19  }
 0x53c   : > { %v841_v48 = vpop.permute.xlu0 %840 }
 0x53d   : > { %v843_v0 = vmul.f32 %v841_v48, %v837_v54 }
 0x560   : > { %v548_v26 = vpop.f32.mrb[4].mxu0 }
 0x561   : > { %v554_v28 = vadd.f32 %v548_v26, %v504_v23  ;;  %v1051_v29 = vpop.f32.mrb[5].mxu0 }
 0x562   : > { %v551_v30 = vpop.f32.mrb[6].mxu0 }
 0x563   : > { %555 = vst.msk [vmem:[#allocation4 + $0x8] sm:$0xff] %vm254_vm0, %v554_v28  ;;  %v1052_v27 = vpop.f32.mrb[7].mxu0 }
 0x568   : > { %v685_v34 = vpop.f32.mrb[8].mxu0 }
 0x569   : > { %v691_v35 = vadd.f32 %v685_v34, %v641_v33  ;;  %v1063_v36 = vpop.f32.mrb[9].mxu0 }
 0x56a   : > { %v688_v37 = vpop.f32.mrb[10].mxu0  ;;  %v847_v46 = vld [vmem:[#allocation4 + $0x8] sm:$0xff] }
 0x56b   : > { %692 = vst.msk [vmem:[#allocation4 + $0x10] sm:$0xff] %vm254_vm0, %v691_v35  ;;  %v1064_v38 = vpop.f32.mrb[11].mxu0 }
 0x570   : > { %v822_v24 = vpop.f32.mrb[12].mxu0 }
 0x571   : > { %v828_v25 = vadd.f32 %v822_v24, %v778_v22  ;;  %v1075_v41 = vpop.f32.mrb[13].mxu0 }
 0x572   : > { %v825_v42 = vpop.f32.mrb[14].mxu0  ;;  %v857_v50 = vld [vmem:[#allocation4 + $0x10] sm:$0xff] }
 0x573   : > { %829 = vst.msk [vmem:[#allocation4 + $0x18] sm:$0xff] %vm254_vm0, %v828_v25  ;;  %v1076_v43 = vpop.f32.mrb[15].mxu0 }
 0x57a   : > { %v867_v52 = vld [vmem:[#allocation4 + $0x18] sm:$0xff] }
 0x5aa   : > { %v851_v45 = vpop.permute.xlu1 %850 }
 0x5ab   : > { %v853_v47 = vmul.f32 %v851_v45, %v847_v46 }
 0x5ad   : > { %875 = vrot.lane.b32.xlu0 %v853_v47, %s1172_s4 }
 0x5b2   : > { %v861_v49 = vpop.permute.xlu0 %860 }
 0x5b3   : > { %v863_v15 = vmul.f32 %v861_v49, %v857_v50 }
 0x5b5   : > { %879 = vrot.lane.b32.xlu1 %v863_v15, %s1170_s29 }
 0x5ba   : > { %v871_v51 = vpop.permute.xlu1 %870 }
 0x5bb   : > { %v873_v53 = vmul.f32 %v871_v51, %v867_v52 }
 0x5bd   : > { %883 = vrot.lane.b32.xlu0 %v873_v53, %s1168_s27 }
 0x61f   : > { %v876_v55 = vpop.permute.xlu0 %875 }
 0x620   : > { %v886_v57 = vsel %vm254_vm0, %v843_v0, %v876_v55 }
 0x627   : > { %v880_v56 = vpop.permute.xlu1 %879 }
 0x628   : > { %v888_v58 = vsel %vm887_vm9, %v886_v57, %v880_v56 }
 0x62f   : > { %v884_v59 = vpop.permute.xlu0 %883 }
 0x630   : > { %v890_v60 = vsel %vm889_vm10, %v888_v58, %v884_v59 }
 0x631   : > { %v891_v61 = vpack.c.bf16 %v890_v60, %v890_v60 }
 0x633   : > { %893 = vst.msk [vmem:[%s239_s9] sm:$0xf] %vm892_vm11, %v891_v61 }
 0x634 PF: > { %s13_s14 = sadd.s32 1, %s1161_s14   ;;  %s1395_s12 = smov %s1157_s13 }
 0x635   : > { %p10_p5 = scmp.ge.s32.totalorder %s13_s14, 4   ;;  %s1396_s13 = smov %s1398_s15 }
 0x637   :  { %12 = sbr.rel (!%p10_p5) target bundleno = 2 (0x2), region = 85 }

// kernel: fg_model_forward.26
= control target key start
LH: loop header
LB: loop body
LE: loop exit
PB: predicated region body
PF: predicated region fallthrough
CT: control target
= control target key end

     0   :  { %s1538_s12 = smov 0   ;;  %s1540_s13 = smov 0   ;;  %s1687_s0 = inlined_call_operand.vmem [shape: bf16[16,2048], index: 0, kind: input, shape index: {}]   ;;  %s1688_s1 = inlined_call_operand.vmem [shape: bf16[2048,128], index: 1, kind: input, shape index: {}]   ;;  %s1689_s2 = inlined_call_operand.vmem [shape: f32[1,128], index: 2, kind: input, shape index: {}]   ;;  %s1690_s3 = inlined_call_operand.vmem [shape: bf16[16,128], index: 3, kind: output, shape index: {}]  }
   0x1   :  { %s1542_s14 = smov 0   ;;  %s1544_s15 = smov 0  }
   0x2   :  { %s1546_s16 = smov 0  }
   0x3 LB: > { %s25_s17 = sadd.s32 1, %s1511_s15  ;;  %p48_p1 = scmp.ne.s32.totalorder %s1503_s13, %s1499_s12  ;;  %s1515_s16 = sphi %s1546_s16, %s13_s16   ;;  %s1511_s15 = sphi %s1544_s15, %s1694_s15   ;;  %s1507_s14 = sphi %s1542_s14, %s1693_s14   ;;  %s1503_s13 = sphi %s1540_s13, %s1692_s13   ;;  %s1499_s12 = sphi %s1538_s12, %s1691_s12  }
   0x4   : > { %p26_p0 = scmp.ge.s32.totalorder %s25_s17, 2  ;;  %p49_p2 = scmp.eq.s32.totalorder %s1515_s16, 0 }
   0x5   : > { %s41_s19 = sadd.s32 1, %s1503_s13  ;;  %p1177_p5 = scmp.ge.s32.totalorder %s1515_s16, 2 }
   0x6   : > { %s1696_s17 = smov (%p26_p0, %s25_s17), 0  ;;  %p50_p3 = por %p49_p2, %p48_p1 }
   0x7   : > { %s37_s18 = ssub.s32 %s1511_s15, %s1696_s17  ;;  %162 = sbr.rel (%p1177_p5) target bundleno = 22 (0x16), region = 20 }
   0x8   : > { %p39_p4 = scmp.eq.s32.totalorder %s37_s18, 0 }
   0xa   : > { %s1573_s20 = scalar_select %p39_p4, %s1503_s13, %s41_s19  }
   0xe   : > { %165 = sbr.rel (!%p50_p3) target bundleno = 22 (0x16), region = 24  ;;  %s167_s21 = sand.u32 (%p50_p3), 1, %s1503_s13  }
   0xf   : > { %s1268_s22 = sshll.u32 (%p50_p3), %s1511_s15, 5  ;;  %s1178_s23 = sshll.u32 (%p50_p3), %s167_s21, 6 }
  0x10   : > { %s175_s26 = scalar_lea.vmem (%p50_p3), %s1687_s0, %s1268_s22  ;;  %s169_s27 = scalar_lea.vmem (%p50_p3), [#allocation3], %s1178_s23 }
  0x11   : > { %v188_v0 = vld [vmem:[%s175_s26] sm:$0xff] (%p50_p3)  ;;  %v190_v1 = vld [vmem:[%s175_s26 + $0x8] sm:$0xff] (%p50_p3)  ;;  %v192_v2 = vld [vmem:[%s175_s26 + $0x10] sm:$0xff] (%p50_p3) }
  0x12   : > { %189 = vst [vmem:[%s169_s27] sm:$0xff] (%p50_p3), %v188_v0  ;;  %191 = vst [vmem:[%s169_s27 + $0x8] sm:$0xff] (%p50_p3), %v190_v1  ;;  %v194_v3 = vld [vmem:[%s175_s26 + $0x18] sm:$0xff] (%p50_p3)  ;;  %v196_v4 = vld [vmem:[%s175_s26 + $0x40] sm:$0xff] (%p50_p3) }
  0x13   : > { %193 = vst [vmem:[%s169_s27 + $0x10] sm:$0xff] (%p50_p3), %v192_v2  ;;  %v198_v5 = vld [vmem:[%s175_s26 + $0x48] sm:$0xff] (%p50_p3)  ;;  %195 = vst [vmem:[%s169_s27 + $0x18] sm:$0xff] (%p50_p3), %v194_v3  ;;  %v200_v6 = vld [vmem:[%s175_s26 + $0x50] sm:$0xff] (%p50_p3) }
  0x14   : > { %197 = vst [vmem:[%s169_s27 + $0x20] sm:$0xff] (%p50_p3), %v196_v4  ;;  %199 = vst [vmem:[%s169_s27 + $0x28] sm:$0xff] (%p50_p3), %v198_v5  ;;  %v202_v7 = vld [vmem:[%s175_s26 + $0x58] sm:$0xff] (%p50_p3) }
  0x15   : > { %201 = vst [vmem:[%s169_s27 + $0x30] sm:$0xff] %v200_v6  ;;  %203 = vst [vmem:[%s169_s27 + $0x38] sm:$0xff] %v202_v7 }
  0x16 PF: > { %p1181_p6 = scmp.ge.s32.totalorder %s1515_s16, 1  ;;  %p220_p7 = scmp.lt.s32.totalorder %s1515_s16, 3 }
  0x18   : > { %p221_p8 = pnand %p1181_p6, %p220_p7 }
  0x19   : > { %s227_s28 = sand.u32 (!%p221_p8), 1, %s1499_s12   ;;  %s1183_s29 = sshll.u32 (!%p221_p8), %s1507_s14, 7 }
  0x1a   : > { %224 = sbr.rel (%p221_p8) target bundleno = 370 (0x172), region = 51  ;;  %s1182_s30 = sshll.u32 (!%p221_p8), %s227_s28, 6 }
  0x1b   : > { %p267_p9 = scmp.lt.s32.totalorder (!%p221_p8), %s1183_s29, 255  ;;  %s1590_s8 = scalar_lea.vmem (!%p221_p8), [#allocation3], %s1182_s30 }
  0x1c   : > { %p1185_p10 = scmp.ne.s32.totalorder (!%p221_p8), %s1507_s14, 0 }
  0x21   : > { %s1698_s29 = smov (!%p267_p9, %s1183_s29), 255  ;;  %291 = sbr.rel (%p1185_p10) target bundleno = 40 (0x28), region = 59 }
  0x22   : > { %s1184_s4 = sshll.u32 %s1698_s29, 2  ;;  %v1517_v8 = vmov (!%p1185_p10), 0.0  }
  0x23   : > { %s1588_s7 = scalar_lea.vmem %s1688_s1, %s1184_s4  ;;  %292 = vst [vmem:[#allocation2] sm:$0xff] (!%p1185_p10), %v1517_v8  ;;  %293 = vst [vmem:[#allocation2 + $0x8] sm:$0xff] (!%p1185_p10), %v1517_v8 }
  0x28 PF: > { %v1405_v9 = vld [vmem:[%s1588_s7 + $0x40] sm:$0xff]   ;;  %v1409_v13 = vld [vmem:[%s1588_s7 + $0x48] sm:$0xff]   ;;  %v1413_v17 = vld [vmem:[%s1588_s7 + $0x50] sm:$0xff]   ;;  %p1258_p11 = scmp.ne.s32.totalorder %s1507_s14, 1 }
  0x29   : > { %v1406_v10 = vld [vmem:[%s1588_s7 + $0xc0] sm:$0xff]   ;;  %1276 = vmatprep.subr.bf16.mxu0 %v1405_v9  ;;  %v1410_v14 = vld [vmem:[%s1588_s7 + $0xc8] sm:$0xff]   ;;  %v1414_v18 = vld [vmem:[%s1588_s7 + $0xd0] sm:$0xff]  }
  0x2a   : > { %v1407_v11 = vld [vmem:[%s1588_s7] sm:$0xff]   ;;  %1298 = vmatprep.subr.bf16.mxu1 %v1406_v10  ;;  %v1411_v15 = vld [vmem:[%s1588_s7 + $0x8] sm:$0xff]   ;;  %v1415_v19 = vld [vmem:[%s1588_s7 + $0x10] sm:$0xff]  }
  0x2b   : > { %v1408_v12 = vld [vmem:[%s1588_s7 + $0x80] sm:$0xff]   ;;  %1277 = vmatpush3.bf16.msra.mxu0 %v1407_v11  ;;  %v1412_v16 = vld [vmem:[%s1588_s7 + $0x88] sm:$0xff]   ;;  %v1416_v20 = vld [vmem:[%s1588_s7 + $0x90] sm:$0xff]  }
  0x2c   : > { %1299 = vmatpush3.bf16.msra.mxu1 %v1408_v12  ;;  %1278 = vmatprep.subr.bf16.mxu0 %v1409_v13  ;;  %v1417_v21 = vld [vmem:[%s1588_s7 + $0x58] sm:$0xff]   ;;  %v1421_v25 = vld [vmem:[%s1588_s7 + $0x60] sm:$0xff]   ;;  %v1425_v29 = vld [vmem:[%s1588_s7 + $0x68] sm:$0xff]  }
  0x2d   : > { %1300 = vmatprep.subr.bf16.mxu1 %v1410_v14  ;;  %v1418_v22 = vld [vmem:[%s1588_s7 + $0xd8] sm:$0xff]   ;;  %v1422_v26 = vld [vmem:[%s1588_s7 + $0xe0] sm:$0xff]   ;;  %v1426_v30 = vld [vmem:[%s1588_s7 + $0xe8] sm:$0xff]  }
  0x2e   : > { %v1419_v23 = vld [vmem:[%s1588_s7 + $0x18] sm:$0xff]   ;;  %v1423_v27 = vld [vmem:[%s1588_s7 + $0x20] sm:$0xff]   ;;  %v1427_v31 = vld [vmem:[%s1588_s7 + $0x28] sm:$0xff]  }
  0x2f   : > { %1279 = vmatpush3.bf16.msra.mxu0 %v1411_v15  ;;  %v1420_v24 = vld [vmem:[%s1588_s7 + $0x98] sm:$0xff]   ;;  %v1424_v28 = vld [vmem:[%s1588_s7 + $0xa0] sm:$0xff]   ;;  %v1428_v32 = vld [vmem:[%s1588_s7 + $0xa8] sm:$0xff]  }
  0x30   : > { %1301 = vmatpush3.bf16.msra.mxu1 %v1412_v16  ;;  %1280 = vmatprep.subr.bf16.mxu0 %v1413_v17  ;;  %v1429_v33 = vld [vmem:[%s1588_s7 + $0x70] sm:$0xff]   ;;  %v1433_v37 = vld [vmem:[%s1588_s7 + $0x78] sm:$0xff]   ;;  %v1437_v49 = vld [vmem:[%s1588_s7 + $0x140] sm:$0xff]  }
  0x31   : > { %1302 = vmatprep.subr.bf16.mxu1 %v1414_v18  ;;  %v1430_v34 = vld [vmem:[%s1588_s7 + $0xf0] sm:$0xff]   ;;  %v1434_v38 = vld [vmem:[%s1588_s7 + $0xf8] sm:$0xff]   ;;  %v1438_v50 = vld [vmem:[%s1588_s7 + $0x1c0] sm:$0xff]  }
  0x32   : > { %v1431_v35 = vld [vmem:[%s1588_s7 + $0x30] sm:$0xff]   ;;  %v1435_v39 = vld [vmem:[%s1588_s7 + $0x38] sm:$0xff]   ;;  %v1439_v51 = vld [vmem:[%s1588_s7 + $0x100] sm:$0xff]  }
  0x33   : > { %1281 = vmatpush3.bf16.msra.mxu0 %v1415_v19  ;;  %v1432_v36 = vld [vmem:[%s1588_s7 + $0xb0] sm:$0xff]   ;;  %v1436_v40 = vld [vmem:[%s1588_s7 + $0xb8] sm:$0xff]   ;;  %v1440_v52 = vld [vmem:[%s1588_s7 + $0x180] sm:$0xff]  }
  0x34   : > { %1303 = vmatpush3.bf16.msra.mxu1 %v1416_v20  ;;  %1282 = vmatprep.subr.bf16.mxu0 %v1417_v21  ;;  %v294_v41 = vld [vmem:[%s1590_s8] sm:$0xff]  ;;  %v295_v43 = vld [vmem:[%s1590_s8 + $0x8] sm:$0xff]  ;;  %v1441_v53 = vld [vmem:[%s1588_s7 + $0x148] sm:$0xff]  }
  0x35   : > { %1304 = vmatprep.subr.bf16.mxu1 %v1418_v22  ;;  %v298_v42 = vld [vmem:[%s1590_s8 + $0x20] sm:$0xff]  ;;  %v299_v46 = vld [vmem:[%s1590_s8 + $0x28] sm:$0xff]  ;;  %v1442_v54 = vld [vmem:[%s1588_s7 + $0x1c8] sm:$0xff]  }
  0x36   : > { %v1186_v44 = vcombine.low %v294_v41, %v298_v42  ;;  %v1187_v45 = vcombine.high %v294_v41, %v298_v42  ;;  %v1188_v47 = vcombine.low %v295_v43, %v299_v46  ;;  %v1189_v48 = vcombine.high %v295_v43, %v299_v46  ;;  %v1443_v55 = vld [vmem:[%s1588_s7 + $0x108] sm:$0xff]   ;;  %v1445_v57 = vld [vmem:[%s1588_s7 + $0x150] sm:$0xff]   ;;  %v1449_v61 = vld [vmem:[%s1588_s7 + $0x158] sm:$0xff]  }
  0x37   : > { %1283 = vmatpush3.bf16.msra.mxu0 %v1419_v23  ;;  %v1444_v56 = vld [vmem:[%s1588_s7 + $0x188] sm:$0xff]   ;;  %v1446_v58 = vld [vmem:[%s1588_s7 + $0x1d0] sm:$0xff]   ;;  %v1450_v62 = vld [vmem:[%s1588_s7 + $0x1d8] sm:$0xff]  }
  0x38   : > { %1305 = vmatpush3.bf16.msra.mxu1 %v1420_v24  ;;  %1284 = vmatprep.subr.bf16.mxu0 %v1421_v25  ;;  %v1447_v59 = vld [vmem:[%s1588_s7 + $0x110] sm:$0xff]   ;;  %v1451_v63 = vld [vmem:[%s1588_s7 + $0x118] sm:$0xff]   ;;  %v1453_v1 = vld [vmem:[%s1588_s7 + $0x160] sm:$0xff]  }
  0x39   : > { %1306 = vmatprep.subr.bf16.mxu1 %v1422_v26  ;;  %888 = vmatprep.mubr.bf16.mxu0 %v1187_v45  ;;  %v1448_v60 = vld [vmem:[%s1588_s7 + $0x190] sm:$0xff]   ;;  %v1452_v0 = vld [vmem:[%s1588_s7 + $0x198] sm:$0xff]   ;;  %v1454_v2 = vld [vmem:[%s1588_s7 + $0x1e0] sm:$0xff]  }
  0x3a   : > { %929 = vmatprep.mubr.bf16.mxu1 %v1189_v48  ;;  %v1455_v3 = vld [vmem:[%s1588_s7 + $0x120] sm:$0xff]   ;;  %v1457_v5 = vld [vmem:[%s1588_s7 + $0x168] sm:$0xff]   ;;  %v1461_v9 = vld [vmem:[%s1588_s7 + $0x170] sm:$0xff]  }
  0x3b   : > { %1285 = vmatpush3.bf16.msra.mxu0 %v1423_v27  ;;  %v1456_v4 = vld [vmem:[%s1588_s7 + $0x1a0] sm:$0xff]   ;;  %v1458_v6 = vld [vmem:[%s1588_s7 + $0x1e8] sm:$0xff]   ;;  %v1462_v10 = vld [vmem:[%s1588_s7 + $0x1f0] sm:$0xff]  }
  0x3c   : > { %1307 = vmatpush3.bf16.msra.mxu1 %v1424_v28  ;;  %1286 = vmatprep.subr.bf16.mxu0 %v1425_v29  ;;  %v1459_v7 = vld [vmem:[%s1588_s7 + $0x128] sm:$0xff]   ;;  %v1463_v11 = vld [vmem:[%s1588_s7 + $0x130] sm:$0xff]   ;;  %v1465_v13 = vld [vmem:[%s1588_s7 + $0x178] sm:$0xff]  }
  0x3d   : > { %1308 = vmatprep.subr.bf16.mxu1 %v1426_v30  ;;  %v1460_v8 = vld [vmem:[%s1588_s7 + $0x1a8] sm:$0xff]   ;;  %v1464_v12 = vld [vmem:[%s1588_s7 + $0x1b0] sm:$0xff]   ;;  %v1466_v14 = vld [vmem:[%s1588_s7 + $0x1f8] sm:$0xff]  }
  0x3e   : > { %v1467_v15 = vld [vmem:[%s1588_s7 + $0x138] sm:$0xff]   ;;  %v296_v17 = vld [vmem:[%s1590_s8 + $0x10] sm:$0xff]  ;;  %v297_v21 = vld [vmem:[%s1590_s8 + $0x18] sm:$0xff] }
  0x3f   : > { %1287 = vmatpush3.bf16.msra.mxu0 %v1427_v31  ;;  %v1468_v16 = vld [vmem:[%s1588_s7 + $0x1b8] sm:$0xff]   ;;  %v300_v18 = vld [vmem:[%s1590_s8 + $0x30] sm:$0xff]  ;;  %v301_v22 = vld [vmem:[%s1590_s8 + $0x38] sm:$0xff] }
  0x40   : > { %1309 = vmatpush3.bf16.msra.mxu1 %v1428_v32  ;;  %1288 = vmatprep.subr.bf16.mxu0 %v1429_v33  ;;  %v1190_v19 = vcombine.low %v296_v17, %v300_v18  ;;  %v1191_v20 = vcombine.high %v296_v17, %v300_v18  ;;  %v1192_v23 = vcombine.low %v297_v21, %v301_v22 }
  0x41   : > { %1310 = vmatprep.subr.bf16.mxu1 %v1430_v34  ;;  %v1193_v24 = vcombine.high %v297_v21, %v301_v22 }
  0x43   : > { %1289 = vmatpush3.bf16.msra.mxu0 %v1431_v35 }
  0x44   : > { %1311 = vmatpush3.bf16.msra.mxu1 %v1432_v36  ;;  %1290 = vmatprep.subr.bf16.mxu0 %v1433_v37 }
  0x45   : > { %1312 = vmatprep.subr.bf16.mxu1 %v1434_v38 }
  0x47   : > { %1291 = vmatpush3.bf16.msra.mxu0 %v1435_v39 }
  0x48   : > { %1313 = vmatpush3.bf16.msra.mxu1 %v1436_v40  ;;  %1320 = vmatprep.subr.bf16.mxu0 %v1437_v49 }
  0x49   : > { %1342 = vmatprep.subr.bf16.mxu1 %v1438_v50 }
  0x4a   : > { %889 = vmatmul.mubr.bf16.vlgmr.msra.gmra.mrb[0].mxu0 %v1186_v44 }
  0x4b   : > { %930 = vmatmul.mubr.bf16.vlgmr.msra.gmra.mrb[0].mxu1 %v1188_v47  ;;  %1321 = vmatpush3.bf16.msra.mxu0 %v1439_v51  ;;  %v302_v51 = vld [vmem:[#allocation2] sm:$0xff] }
  0x4c   : > { %1343 = vmatpush3.bf16.msra.mxu1 %v1440_v52  ;;  %1322 = vmatprep.subr.bf16.mxu0 %v1441_v53 }
  0x4d   : > { %1344 = vmatprep.subr.bf16.mxu1 %v1442_v54  ;;  %970 = vmatprep.mubr.bf16.mxu0 %v1191_v20 }
  0x4e   : > { %1011 = vmatprep.mubr.bf16.mxu1 %v1193_v24 }
  0x4f   : > { %1323 = vmatpush3.bf16.msra.mxu0 %v1443_v55  ;;  %v303_v55 = vld [vmem:[#allocation2 + $0x8] sm:$0xff] }
  0x50   : > { %1345 = vmatpush3.bf16.msra.mxu1 %v1444_v56  ;;  %1324 = vmatprep.subr.bf16.mxu0 %v1445_v57 }
  0x51   : > { %1346 = vmatprep.subr.bf16.mxu1 %v1446_v58 }
  0x53   : > { %1325 = vmatpush3.bf16.msra.mxu0 %v1447_v59 }
  0x54   : > { %1347 = vmatpush3.bf16.msra.mxu1 %v1448_v60  ;;  %1326 = vmatprep.subr.bf16.mxu0 %v1449_v61  ;;  %v1259_v61 = vld [vmem:[%s1689_s2] ss:$0 sm:$0xff] (!%p1258_p11) }
  0x55   : > { %1348 = vmatprep.subr.bf16.mxu1 %v1450_v62 }
  0x57   : > { %1327 = vmatpush3.bf16.msra.mxu0 %v1451_v63 }
  0x58   : > { %1349 = vmatpush3.bf16.msra.mxu1 %v1452_v0  ;;  %1328 = vmatprep.subr.bf16.mxu0 %v1453_v1 }
  0x59   : > { %1350 = vmatprep.subr.bf16.mxu1 %v1454_v2 }
  0x5b   : > { %1329 = vmatpush3.bf16.msra.mxu0 %v1455_v3 }
  0x5c   : > { %1351 = vmatpush3.bf16.msra.mxu1 %v1456_v4  ;;  %1330 = vmatprep.subr.bf16.mxu0 %v1457_v5 }
  0x5d   : > { %1352 = vmatprep.subr.bf16.mxu1 %v1458_v6 }
  0x5f   : > { %1331 = vmatpush3.bf16.msra.mxu0 %v1459_v7 }
  0x60   : > { %1353 = vmatpush3.bf16.msra.mxu1 %v1460_v8  ;;  %1332 = vmatprep.subr.bf16.mxu0 %v1461_v9 }
  0x61   : > { %1354 = vmatprep.subr.bf16.mxu1 %v1462_v10 }
  0x63   : > { %1333 = vmatpush3.bf16.msra.mxu0 %v1463_v11 }
  0x64   : > { %1355 = vmatpush3.bf16.msra.mxu1 %v1464_v12  ;;  %1334 = vmatprep.subr.bf16.mxu0 %v1465_v13 }
  0x65   : > { %1356 = vmatprep.subr.bf16.mxu1 %v1466_v14 }
  0x67   : > { %1335 = vmatpush3.bf16.msra.mxu0 %v1467_v15 }
  0x68   : > { %1357 = vmatpush3.bf16.msra.mxu1 %v1468_v16 }
  0x6a   : > { %971 = vmatmul.mubr.bf16.vlgmr.msra.gmra.mrb[4].mxu0 %v1190_v19 }
  0x6b   : > { %1012 = vmatmul.mubr.bf16.vlgmr.msra.gmra.mrb[4].mxu1 %v1192_v23 }
 0x11d   : > { %v1292_v25 = vpop.f32.mrb[0].mxu0 }
 0x11e   : > { %v1314_v26 = vpop.f32.mrb[0].mxu1  ;;  %v1293_v27 = vpop.f32.mrb[1].mxu0 }
 0x11f   : > { %v1294_v28 = vadd.f32 %v1293_v27, %v1292_v25  ;;  %v1315_v29 = vpop.f32.mrb[1].mxu1  ;;  %v1295_v30 = vpop.f32.mrb[2].mxu0 }
 0x120   : > { %v1316_v31 = vadd.f32 %v1315_v29, %v1314_v26  ;;  %v1317_v32 = vpop.f32.mrb[2].mxu1  ;;  %v1296_v33 = vpop.f32.mrb[3].mxu0 }
 0x121   : > { %v1297_v34 = vadd.f32 %v1296_v33, %v1295_v30  ;;  %v1318_v35 = vpop.f32.mrb[3].mxu1 }
 0x122   : > { %v932_v36 = vadd.f32 %v1316_v31, %v1294_v28  ;;  %v1319_v37 = vadd.f32 %v1318_v35, %v1317_v32 }
 0x124   : > { %v935_v38 = vadd.f32 %v1319_v37, %v1297_v34 }
 0x13d   : > { %v1336_v39 = vpop.f32.mrb[4].mxu0 }
 0x13e   : > { %v1358_v40 = vpop.f32.mrb[4].mxu1  ;;  %v1337_v41 = vpop.f32.mrb[5].mxu0 }
 0x13f   : > { %v1338_v42 = vadd.f32 %v1337_v41, %v1336_v39  ;;  %v1359_v43 = vpop.f32.mrb[5].mxu1  ;;  %v1339_v44 = vpop.f32.mrb[6].mxu0 }
 0x140   : > { %v1360_v45 = vadd.f32 %v1359_v43, %v1358_v40  ;;  %v1361_v46 = vpop.f32.mrb[6].mxu1  ;;  %v1340_v47 = vpop.f32.mrb[7].mxu0 }
 0x141   : > { %v973_v48 = vadd.f32 %v1338_v42, %v932_v36  ;;  %v1341_v49 = vadd.f32 %v1340_v47, %v1339_v44  ;;  %v1362_v50 = vpop.f32.mrb[7].mxu1 }
 0x142   : > { %v1363_v52 = vadd.f32 %v1362_v50, %v1361_v46 }
 0x143   : > { %v1014_v53 = vadd.f32 %v1360_v45, %v973_v48  ;;  %v976_v54 = vadd.f32 %v1341_v49, %v935_v38  ;;  %1027 = sbr.rel (%p1258_p11) target bundleno = 370 (0x172), region = 63 }
 0x145   : > { %v1020_v56 = vadd.f32 %v1014_v53, %v302_v51  ;;  %v1017_v57 = vadd.f32 %v1363_v52, %v976_v54 }
 0x147   : > { %1022 = vst [vmem:[#allocation2] sm:$0xff] %v1020_v56  ;;  %v1021_v58 = vadd.f32 %v1017_v57, %v303_v55 }
 0x149   : > { %1023 = vst [vmem:[#allocation2 + $0x8] sm:$0xff] %v1021_v58 }
 0x14e   : > { %v1028_v59 = vld [vmem:[#allocation2] sm:$0xff] }
 0x14f   : > { %v1037_v62 = vadd.f32 %v1259_v61, %v1028_v59 }
 0x150   : > { %v1029_v60 = vld [vmem:[#allocation2 + $0x8] sm:$0xff] }
 0x151   : > { %v1038_v63 = vadd.f32 %v1259_v61, %v1029_v60  ;;  %v1260_v0 = vmul.f32 -1.442695, %v1037_v62 }
 0x153   : > { %v1261_v1 = vmul.f32 -1.442695, %v1038_v63  ;;  %1469 = vpow2.f32 %v1260_v0 }
 0x155   : > { %1471 = vpow2.f32 %v1261_v1 }
 0x15d   : > { %v1470_v2 = vpop.eup %1469 }
 0x15e   : > { %v1045_v4 = vadd.f32 1.0, %v1470_v2 }
 0x15f   : > { %v1472_v3 = vpop.eup %1471 }
 0x160   : > { %v1046_v5 = vadd.f32 1.0, %v1472_v3  ;;  %1473 = vrcp.f32 %v1045_v4 }
 0x162   : > { %1475 = vrcp.f32 %v1046_v5 }
 0x16a   : > { %v1474_v6 = vpop.eup %1473 }
 0x16b   : > { %v1051_v8 = vmul.f32 %v1474_v6, %v1037_v62 }
 0x16c   : > { %v1476_v7 = vpop.eup %1475 }
 0x16d   : > { %v1052_v9 = vmul.f32 %v1476_v7, %v1038_v63 }
 0x16f   : > { %v1274_v10 = vpack.c.bf16 %v1052_v9, %v1051_v8 }
 0x171   : > { %1275 = vst [vmem:[%s1690_s3] sm:$0xff] %v1274_v10  }
 0x172 PF: > { %s13_s16 = sadd.s32 1, %s1515_s16   ;;  %s1691_s12 = smov %s1503_s13 }
 0x173   : > { %p10_p12 = scmp.ge.s32.totalorder %s13_s16, 4   ;;  %s1692_s13 = smov %s1573_s20 }
 0x174   : > { %s1693_s14 = smov %s1511_s15  ;;  %s1694_s15 = smov %s1696_s17 }
 0x175   :  { %12 = sbr.rel (!%p10_p12) target bundleno = 3 (0x3), region = 104 }

// kernel: fg_model_forward.24
= control target key start
LH: loop header
LB: loop body
LE: loop exit
PB: predicated region body
PF: predicated region fallthrough
CT: control target
= control target key end

     0   :  { %s1769_s1 = inlined_call_operand.vmem [shape: bf16[256,1024], index: 1, kind: input, shape index: {}]   ;;  %s1770_s0 = inlined_call_operand.vmem [shape: bf16[16,256], index: 0, kind: input, shape index: {}]   ;;  %s1771_s2 = inlined_call_operand.vmem [shape: f32[1,1024], index: 2, kind: input, shape index: {}]   ;;  %s1772_s3 = inlined_call_operand.vmem [shape: bf16[16,1024], index: 3, kind: output, shape index: {}]  }
   0x1   :  { %v52_v0 = vld [vmem:[%s1769_s1] sm:$0xff]  ;;  %v53_v2 = vld [vmem:[%s1769_s1 + $0x8] sm:$0xff] }
   0x2   :  { %v56_v1 = vld [vmem:[%s1769_s1 + $0x20] sm:$0xff]  ;;  %v57_v4 = vld [vmem:[%s1769_s1 + $0x28] sm:$0xff] }
   0x3   :  { %v1174_v3 = vcombine.high %v52_v0, %v56_v1  ;;  %v1173_v5 = vcombine.low %v52_v0, %v56_v1  ;;  %v60_v6 = vld [vmem:[%s1769_s1 + $0x40] sm:$0xff]  ;;  %v1176_v8 = vcombine.high %v53_v2, %v57_v4  ;;  %v1175_v9 = vcombine.low %v53_v2, %v57_v4  ;;  %v61_v11 = vld [vmem:[%s1769_s1 + $0x48] sm:$0xff] }
   0x4   :  { %v64_v7 = vld [vmem:[%s1769_s1 + $0x60] sm:$0xff]  ;;  %v65_v12 = vld [vmem:[%s1769_s1 + $0x68] sm:$0xff] }
   0x5   :  { %v1182_v10 = vcombine.high %v60_v6, %v64_v7  ;;  %v68_v13 = vld [vmem:[%s1769_s1 + $0x80] sm:$0xff]  ;;  %830 = vmatprep.subr.bf16.mxu0 %v1174_v3  ;;  %v1184_v14 = vcombine.high %v61_v11, %v65_v12  ;;  %v69_v16 = vld [vmem:[%s1769_s1 + $0x88] sm:$0xff]  ;;  %873 = vmatprep.subr.bf16.mxu1 %v1176_v8  ;;  %v1181_v18 = vcombine.low %v60_v6, %v64_v7 }
   0x6   :  { %v72_v15 = vld [vmem:[%s1769_s1 + $0xa0] sm:$0xff]  ;;  %v73_v17 = vld [vmem:[%s1769_s1 + $0xa8] sm:$0xff]  ;;  %831 = vmatpush1.bf16.msra.mxu0 %v1173_v5  ;;  %874 = vmatpush1.bf16.msra.mxu1 %v1175_v9  ;;  %v1183_v19 = vcombine.low %v61_v11, %v65_v12 }
   0x7   :  { %832 = vmatprep.subr.bf16.mxu0 %v1182_v10  ;;  %v1190_v20 = vcombine.high %v68_v13, %v72_v15  ;;  %875 = vmatprep.subr.bf16.mxu1 %v1184_v14  ;;  %v1192_v21 = vcombine.high %v69_v16, %v73_v17  ;;  %v76_v22 = vld [vmem:[%s1769_s1 + $0xc0] sm:$0xff]  ;;  %v77_v24 = vld [vmem:[%s1769_s1 + $0xc8] sm:$0xff]  ;;  %v1189_v26 = vcombine.low %v68_v13, %v72_v15 }
   0x8   :  { %v80_v23 = vld [vmem:[%s1769_s1 + $0xe0] sm:$0xff]  ;;  %v81_v25 = vld [vmem:[%s1769_s1 + $0xe8] sm:$0xff]  ;;  %v1191_v27 = vcombine.low %v69_v16, %v73_v17 }
   0x9   :  { %v1198_v28 = vcombine.high %v76_v22, %v80_v23  ;;  %v1200_v29 = vcombine.high %v77_v24, %v81_v25  ;;  %v84_v30 = vld [vmem:[%s1769_s1 + $0x100] sm:$0xff]  ;;  %v85_v32 = vld [vmem:[%s1769_s1 + $0x108] sm:$0xff]  ;;  %v1197_v34 = vcombine.low %v76_v22, %v80_v23  ;;  %v1199_v35 = vcombine.low %v77_v24, %v81_v25 }
   0xa   :  { %833 = vmatpush1.bf16.msra.mxu0 %v1181_v18  ;;  %876 = vmatpush1.bf16.msra.mxu1 %v1183_v19  ;;  %v88_v31 = vld [vmem:[%s1769_s1 + $0x120] sm:$0xff]  ;;  %v89_v33 = vld [vmem:[%s1769_s1 + $0x128] sm:$0xff] }
   0xb   :  { %834 = vmatprep.subr.bf16.mxu0 %v1190_v20  ;;  %877 = vmatprep.subr.bf16.mxu1 %v1192_v21  ;;  %v1206_v36 = vcombine.high %v84_v30, %v88_v31  ;;  %v1208_v37 = vcombine.high %v85_v32, %v89_v33  ;;  %v92_v38 = vld [vmem:[%s1769_s1 + $0x140] sm:$0xff]  ;;  %v93_v40 = vld [vmem:[%s1769_s1 + $0x148] sm:$0xff]  ;;  %v1205_v42 = vcombine.low %v84_v30, %v88_v31 }
   0xc   :  { %v96_v39 = vld [vmem:[%s1769_s1 + $0x160] sm:$0xff]  ;;  %v97_v41 = vld [vmem:[%s1769_s1 + $0x168] sm:$0xff]  ;;  %v1207_v43 = vcombine.low %v85_v32, %v89_v33 }
   0xd   :  { %v1214_v44 = vcombine.high %v92_v38, %v96_v39  ;;  %v1216_v45 = vcombine.high %v93_v40, %v97_v41  ;;  %v100_v46 = vld [vmem:[%s1769_s1 + $0x180] sm:$0xff]  ;;  %v101_v48 = vld [vmem:[%s1769_s1 + $0x188] sm:$0xff]  ;;  %v1213_v50 = vcombine.low %v92_v38, %v96_v39  ;;  %v1215_v51 = vcombine.low %v93_v40, %v97_v41 }
   0xe   :  { %835 = vmatpush1.bf16.msra.mxu0 %v1189_v26  ;;  %878 = vmatpush1.bf16.msra.mxu1 %v1191_v27  ;;  %v104_v47 = vld [vmem:[%s1769_s1 + $0x1a0] sm:$0xff]  ;;  %v105_v49 = vld [vmem:[%s1769_s1 + $0x1a8] sm:$0xff] }
   0xf   :  { %836 = vmatprep.subr.bf16.mxu0 %v1198_v28  ;;  %879 = vmatprep.subr.bf16.mxu1 %v1200_v29  ;;  %v1222_v52 = vcombine.high %v100_v46, %v104_v47  ;;  %v1224_v53 = vcombine.high %v101_v48, %v105_v49  ;;  %v108_v54 = vld [vmem:[%s1769_s1 + $0x1c0] sm:$0xff]  ;;  %v109_v57 = vld [vmem:[%s1769_s1 + $0x1c8] sm:$0xff]  ;;  %v1221_v59 = vcombine.low %v100_v46, %v104_v47 }
  0x10   :  { %v112_v55 = vld [vmem:[%s1769_s1 + $0x1e0] sm:$0xff]  ;;  %v113_v58 = vld [vmem:[%s1769_s1 + $0x1e8] sm:$0xff]  ;;  %v1223_v60 = vcombine.low %v101_v48, %v105_v49 }
  0x11   :  { %v1433_v56 = vld [vmem:[%s1770_s0 + $0x4] ss:$8 sps:$4 sm:$0xff]   ;;  %v1230_v61 = vcombine.high %v108_v54, %v112_v55  ;;  %v1232_v62 = vcombine.high %v109_v57, %v113_v58  ;;  %v1229_v3 = vcombine.low %v108_v54, %v112_v55  ;;  %v1231_v4 = vcombine.low %v109_v57, %v113_v58 }
  0x12   :  { %837 = vmatpush1.bf16.msra.mxu0 %v1197_v34  ;;  %880 = vmatpush1.bf16.msra.mxu1 %v1199_v35  ;;  %v116_v63 = vld [vmem:[%s1769_s1 + $0x200] sm:$0xff]  ;;  %v117_v1 = vld [vmem:[%s1769_s1 + $0x208] sm:$0xff] }
  0x13   :  { %838 = vmatprep.subr.bf16.mxu0 %v1206_v36  ;;  %881 = vmatprep.subr.bf16.mxu1 %v1208_v37  ;;  %v120_v0 = vld [vmem:[%s1769_s1 + $0x220] sm:$0xff]  ;;  %v121_v2 = vld [vmem:[%s1769_s1 + $0x228] sm:$0xff] }
  0x14   :  { %862 = vmatprep.mubr.bf16.mxu0 %v1433_v56  ;;  %905 = vmatprep.mubr.bf16.mxu1 %v1433_v56  ;;  %v1238_v5 = vcombine.high %v116_v63, %v120_v0  ;;  %v1240_v6 = vcombine.high %v117_v1, %v121_v2  ;;  %v124_v7 = vld [vmem:[%s1769_s1 + $0x240] sm:$0xff]  ;;  %v125_v9 = vld [vmem:[%s1769_s1 + $0x248] sm:$0xff]  ;;  %v1237_v11 = vcombine.low %v116_v63, %v120_v0  ;;  %v54_v0 = vld [vmem:[%s1769_s1 + $0x10] sm:$0xff] }
  0x15   :  { %v128_v8 = vld [vmem:[%s1769_s1 + $0x260] sm:$0xff]  ;;  %v129_v10 = vld [vmem:[%s1769_s1 + $0x268] sm:$0xff]  ;;  %v1239_v12 = vcombine.low %v117_v1, %v121_v2  ;;  %v58_v1 = vld [vmem:[%s1769_s1 + $0x30] sm:$0xff] }
  0x16   :  { %839 = vmatpush1.bf16.msra.mxu0 %v1205_v42  ;;  %882 = vmatpush1.bf16.msra.mxu1 %v1207_v43  ;;  %v1246_v13 = vcombine.high %v124_v7, %v128_v8  ;;  %v1248_v14 = vcombine.high %v125_v9, %v129_v10  ;;  %v132_v15 = vld [vmem:[%s1769_s1 + $0x280] sm:$0xff]  ;;  %v133_v17 = vld [vmem:[%s1769_s1 + $0x288] sm:$0xff]  ;;  %v1245_v19 = vcombine.low %v124_v7, %v128_v8  ;;  %v55_v2 = vld [vmem:[%s1769_s1 + $0x18] sm:$0xff] }
  0x17   :  { %840 = vmatprep.subr.bf16.mxu0 %v1214_v44  ;;  %883 = vmatprep.subr.bf16.mxu1 %v1216_v45  ;;  %v136_v16 = vld [vmem:[%s1769_s1 + $0x2a0] sm:$0xff]  ;;  %v137_v18 = vld [vmem:[%s1769_s1 + $0x2a8] sm:$0xff]  ;;  %v1247_v20 = vcombine.low %v125_v9, %v129_v10  ;;  %v62_v8 = vld [vmem:[%s1769_s1 + $0x50] sm:$0xff] }
  0x18   :  { %v1254_v21 = vcombine.high %v132_v15, %v136_v16  ;;  %v1256_v22 = vcombine.high %v133_v17, %v137_v18  ;;  %v140_v23 = vld [vmem:[%s1769_s1 + $0x2c0] sm:$0xff]  ;;  %v141_v25 = vld [vmem:[%s1769_s1 + $0x2c8] sm:$0xff]  ;;  %v1253_v27 = vcombine.low %v132_v15, %v136_v16  ;;  %v1255_v28 = vcombine.low %v133_v17, %v137_v18  ;;  %v66_v9 = vld [vmem:[%s1769_s1 + $0x70] sm:$0xff] }
  0x19   :  { %v144_v24 = vld [vmem:[%s1769_s1 + $0x2e0] sm:$0xff]  ;;  %v145_v26 = vld [vmem:[%s1769_s1 + $0x2e8] sm:$0xff]  ;;  %v1186_v15 = vcombine.high %v62_v8, %v66_v9  ;;  %v70_v17 = vld [vmem:[%s1769_s1 + $0x90] sm:$0xff] }
  0x1a   :  { %841 = vmatpush1.bf16.msra.mxu0 %v1213_v50  ;;  %884 = vmatpush1.bf16.msra.mxu1 %v1215_v51  ;;  %v1262_v29 = vcombine.high %v140_v23, %v144_v24  ;;  %v1264_v30 = vcombine.high %v141_v25, %v145_v26  ;;  %v148_v31 = vld [vmem:[%s1769_s1 + $0x300] sm:$0xff]  ;;  %v149_v33 = vld [vmem:[%s1769_s1 + $0x308] sm:$0xff]  ;;  %v1261_v35 = vcombine.low %v140_v23, %v144_v24  ;;  %v74_v18 = vld [vmem:[%s1769_s1 + $0xb0] sm:$0xff] }
  0x1b   :  { %842 = vmatprep.subr.bf16.mxu0 %v1222_v52  ;;  %885 = vmatprep.subr.bf16.mxu1 %v1224_v53  ;;  %v152_v32 = vld [vmem:[%s1769_s1 + $0x320] sm:$0xff]  ;;  %v153_v34 = vld [vmem:[%s1769_s1 + $0x328] sm:$0xff]  ;;  %v1263_v36 = vcombine.low %v141_v25, %v145_v26  ;;  %v1194_v23 = vcombine.high %v70_v17, %v74_v18  ;;  %v78_v25 = vld [vmem:[%s1769_s1 + $0xd0] sm:$0xff] }
  0x1c   :  { %v1270_v37 = vcombine.high %v148_v31, %v152_v32  ;;  %v1272_v38 = vcombine.high %v149_v33, %v153_v34  ;;  %v156_v39 = vld [vmem:[%s1769_s1 + $0x340] sm:$0xff]  ;;  %v157_v41 = vld [vmem:[%s1769_s1 + $0x348] sm:$0xff]  ;;  %v1269_v43 = vcombine.low %v148_v31, %v152_v32  ;;  %v1271_v44 = vcombine.low %v149_v33, %v153_v34  ;;  %v82_v26 = vld [vmem:[%s1769_s1 + $0xf0] sm:$0xff] }
  0x1d   :  { %v160_v40 = vld [vmem:[%s1769_s1 + $0x360] sm:$0xff]  ;;  %v161_v42 = vld [vmem:[%s1769_s1 + $0x368] sm:$0xff]  ;;  %v1202_v31 = vcombine.high %v78_v25, %v82_v26  ;;  %v86_v33 = vld [vmem:[%s1769_s1 + $0x110] sm:$0xff] }
  0x1e   :  { %843 = vmatpush1.bf16.msra.mxu0 %v1221_v59  ;;  %886 = vmatpush1.bf16.msra.mxu1 %v1223_v60  ;;  %v1278_v45 = vcombine.high %v156_v39, %v160_v40  ;;  %v1280_v46 = vcombine.high %v157_v41, %v161_v42  ;;  %v164_v47 = vld [vmem:[%s1769_s1 + $0x380] sm:$0xff]  ;;  %v165_v49 = vld [vmem:[%s1769_s1 + $0x388] sm:$0xff]  ;;  %v1277_v51 = vcombine.low %v156_v39, %v160_v40  ;;  %v90_v34 = vld [vmem:[%s1769_s1 + $0x130] sm:$0xff] }
  0x1f   :  { %844 = vmatprep.subr.bf16.mxu0 %v1230_v61  ;;  %887 = vmatprep.subr.bf16.mxu1 %v1232_v62  ;;  %v168_v48 = vld [vmem:[%s1769_s1 + $0x3a0] sm:$0xff]  ;;  %v169_v50 = vld [vmem:[%s1769_s1 + $0x3a8] sm:$0xff]  ;;  %v1279_v52 = vcombine.low %v157_v41, %v161_v42  ;;  %v94_v40 = vld [vmem:[%s1769_s1 + $0x150] sm:$0xff] }
  0x20   :  { %v1286_v53 = vcombine.high %v164_v47, %v168_v48  ;;  %v1288_v54 = vcombine.high %v165_v49, %v169_v50  ;;  %v172_v55 = vld [vmem:[%s1769_s1 + $0x3c0] sm:$0xff]  ;;  %v173_v58 = vld [vmem:[%s1769_s1 + $0x3c8] sm:$0xff]  ;;  %v1285_v60 = vcombine.low %v164_v47, %v168_v48  ;;  %v1287_v61 = vcombine.low %v165_v49, %v169_v50  ;;  %v98_v41 = vld [vmem:[%s1769_s1 + $0x170] sm:$0xff] }
  0x21   :  { %v176_v57 = vld [vmem:[%s1769_s1 + $0x3e0] sm:$0xff]  ;;  %v177_v59 = vld [vmem:[%s1769_s1 + $0x3e8] sm:$0xff]  ;;  %v95_v42 = vld [vmem:[%s1769_s1 + $0x158] sm:$0xff] }
  0x22   :  { %845 = vmatpush1.bf16.msra.mxu0 %v1229_v3  ;;  %888 = vmatpush1.bf16.msra.mxu1 %v1231_v4  ;;  %v1294_v62 = vcombine.high %v172_v55, %v176_v57  ;;  %v1296_v63 = vcombine.high %v173_v58, %v177_v59  ;;  %v59_v3 = vld [vmem:[%s1769_s1 + $0x38] sm:$0xff]  ;;  %v1293_v4 = vcombine.low %v172_v55, %v176_v57  ;;  %v1560_v10 = vld [vmem:[%s1770_s0] ss:$8 sps:$4 sm:$0xff]   ;;  %v102_v48 = vld [vmem:[%s1769_s1 + $0x190] sm:$0xff] }
  0x23   :  { %846 = vmatprep.subr.bf16.mxu0 %v1238_v5  ;;  %889 = vmatprep.subr.bf16.mxu1 %v1240_v6  ;;  %v1295_v5 = vcombine.low %v173_v58, %v177_v59  ;;  %v1178_v6 = vcombine.high %v54_v0, %v58_v1  ;;  %v1180_v7 = vcombine.high %v55_v2, %v59_v3  ;;  %v106_v49 = vld [vmem:[%s1769_s1 + $0x1b0] sm:$0xff]  ;;  %v103_v50 = vld [vmem:[%s1769_s1 + $0x198] sm:$0xff] }
  0x24   :  { %v110_v57 = vld [vmem:[%s1769_s1 + $0x1d0] sm:$0xff]  ;;  %v111_v59 = vld [vmem:[%s1769_s1 + $0x1d8] sm:$0xff] }
  0x25   :  { %v114_v58 = vld [vmem:[%s1769_s1 + $0x1f0] sm:$0xff] }
  0x26   :  { %847 = vmatpush1.bf16.msra.mxu0 %v1237_v11  ;;  %890 = vmatpush1.bf16.msra.mxu1 %v1239_v12  ;;  %v63_v11 = vld [vmem:[%s1769_s1 + $0x58] sm:$0xff] }
  0x27   :  { %848 = vmatprep.subr.bf16.mxu0 %v1246_v13  ;;  %891 = vmatprep.subr.bf16.mxu1 %v1248_v14  ;;  %v67_v12 = vld [vmem:[%s1769_s1 + $0x78] sm:$0xff]  ;;  %v1177_v13 = vcombine.low %v54_v0, %v58_v1  ;;  %v1179_v14 = vcombine.low %v55_v2, %v59_v3  ;;  %v118_v1 = vld [vmem:[%s1769_s1 + $0x210] sm:$0xff] }
  0x28   :  { %v1188_v16 = vcombine.high %v63_v11, %v67_v12  ;;  %v122_v2 = vld [vmem:[%s1769_s1 + $0x230] sm:$0xff]  ;;  %v119_v3 = vld [vmem:[%s1769_s1 + $0x218] sm:$0xff] }
  0x2a   :  { %849 = vmatpush1.bf16.msra.mxu0 %v1245_v19  ;;  %892 = vmatpush1.bf16.msra.mxu1 %v1247_v20  ;;  %v71_v19 = vld [vmem:[%s1769_s1 + $0x98] sm:$0xff] }
  0x2b   :  { %850 = vmatprep.subr.bf16.mxu0 %v1254_v21  ;;  %893 = vmatprep.subr.bf16.mxu1 %v1256_v22  ;;  %v75_v20 = vld [vmem:[%s1769_s1 + $0xb8] sm:$0xff]  ;;  %v1185_v21 = vcombine.low %v62_v8, %v66_v9  ;;  %v1187_v22 = vcombine.low %v63_v11, %v67_v12  ;;  %v126_v9 = vld [vmem:[%s1769_s1 + $0x250] sm:$0xff] }
  0x2c   :  { %v1196_v24 = vcombine.high %v71_v19, %v75_v20  ;;  %v130_v11 = vld [vmem:[%s1769_s1 + $0x270] sm:$0xff]  ;;  %v127_v12 = vld [vmem:[%s1769_s1 + $0x258] sm:$0xff] }
  0x2e   :  { %851 = vmatpush1.bf16.msra.mxu0 %v1253_v27  ;;  %894 = vmatpush1.bf16.msra.mxu1 %v1255_v28  ;;  %v79_v27 = vld [vmem:[%s1769_s1 + $0xd8] sm:$0xff] }
  0x2f   :  { %852 = vmatprep.subr.bf16.mxu0 %v1262_v29  ;;  %895 = vmatprep.subr.bf16.mxu1 %v1264_v30  ;;  %v83_v28 = vld [vmem:[%s1769_s1 + $0xf8] sm:$0xff]  ;;  %v1193_v29 = vcombine.low %v70_v17, %v74_v18  ;;  %v1195_v30 = vcombine.low %v71_v19, %v75_v20  ;;  %v134_v18 = vld [vmem:[%s1769_s1 + $0x290] sm:$0xff] }
  0x30   :  { %v1204_v32 = vcombine.high %v79_v27, %v83_v28  ;;  %v138_v19 = vld [vmem:[%s1769_s1 + $0x2b0] sm:$0xff]  ;;  %v135_v20 = vld [vmem:[%s1769_s1 + $0x298] sm:$0xff] }
  0x32   :  { %853 = vmatpush1.bf16.msra.mxu0 %v1261_v35  ;;  %896 = vmatpush1.bf16.msra.mxu1 %v1263_v36  ;;  %v91_v35 = vld [vmem:[%s1769_s1 + $0x138] sm:$0xff]  ;;  %v1201_v36 = vcombine.low %v78_v25, %v82_v26  ;;  %v142_v26 = vld [vmem:[%s1769_s1 + $0x2d0] sm:$0xff] }
  0x33   :  { %854 = vmatprep.subr.bf16.mxu0 %v1270_v37  ;;  %897 = vmatprep.subr.bf16.mxu1 %v1272_v38  ;;  %v1203_v37 = vcombine.low %v79_v27, %v83_v28  ;;  %v1210_v38 = vcombine.high %v86_v33, %v90_v34  ;;  %v146_v27 = vld [vmem:[%s1769_s1 + $0x2f0] sm:$0xff]  ;;  %v143_v28 = vld [vmem:[%s1769_s1 + $0x2d8] sm:$0xff] }
  0x36   :  { %855 = vmatpush1.bf16.msra.mxu0 %v1269_v43  ;;  %898 = vmatpush1.bf16.msra.mxu1 %v1271_v44  ;;  %v99_v43 = vld [vmem:[%s1769_s1 + $0x178] sm:$0xff]  ;;  %v1209_v44 = vcombine.low %v86_v33, %v90_v34  ;;  %v150_v34 = vld [vmem:[%s1769_s1 + $0x310] sm:$0xff] }
  0x37   :  { %856 = vmatprep.subr.bf16.mxu0 %v1278_v45  ;;  %899 = vmatprep.subr.bf16.mxu1 %v1280_v46  ;;  %v1218_v46 = vcombine.high %v94_v40, %v98_v41  ;;  %v1220_v47 = vcombine.high %v95_v42, %v99_v43 }
  0x3a   :  { %857 = vmatpush1.bf16.msra.mxu0 %v1277_v51  ;;  %900 = vmatpush1.bf16.msra.mxu1 %v1279_v52  ;;  %v107_v51 = vld [vmem:[%s1769_s1 + $0x1b8] sm:$0xff]  ;;  %v1217_v52 = vcombine.low %v94_v40, %v98_v41  ;;  %v158_v41 = vld [vmem:[%s1769_s1 + $0x350] sm:$0xff] }
  0x3b   :  { %858 = vmatprep.subr.bf16.mxu0 %v1286_v53  ;;  %901 = vmatprep.subr.bf16.mxu1 %v1288_v54  ;;  %v1219_v53 = vcombine.low %v95_v42, %v99_v43  ;;  %v1226_v54 = vcombine.high %v102_v48, %v106_v49  ;;  %v1228_v55 = vcombine.high %v103_v50, %v107_v51  ;;  %v162_v42 = vld [vmem:[%s1769_s1 + $0x370] sm:$0xff]  ;;  %v159_v43 = vld [vmem:[%s1769_s1 + $0x358] sm:$0xff] }
  0x3e   :  { %859 = vmatpush1.bf16.msra.mxu0 %v1285_v60  ;;  %902 = vmatpush1.bf16.msra.mxu1 %v1287_v61  ;;  %v115_v60 = vld [vmem:[%s1769_s1 + $0x1f8] sm:$0xff]  ;;  %v1225_v61 = vcombine.low %v102_v48, %v106_v49  ;;  %v166_v49 = vld [vmem:[%s1769_s1 + $0x390] sm:$0xff] }
  0x3f   :  { %860 = vmatprep.subr.bf16.mxu0 %v1294_v62  ;;  %903 = vmatprep.subr.bf16.mxu1 %v1296_v63  ;;  %v1227_v62 = vcombine.low %v103_v50, %v107_v51  ;;  %v1234_v63 = vcombine.high %v110_v57, %v114_v58  ;;  %v1236_v0 = vcombine.high %v111_v59, %v115_v60  ;;  %v170_v50 = vld [vmem:[%s1769_s1 + $0x3b0] sm:$0xff]  ;;  %v167_v51 = vld [vmem:[%s1769_s1 + $0x398] sm:$0xff] }
  0x42   :  { %861 = vmatpush1.bf16.msra.mxu0 %v1293_v4  ;;  %904 = vmatpush1.bf16.msra.mxu1 %v1295_v5  ;;  %v123_v4 = vld [vmem:[%s1769_s1 + $0x238] sm:$0xff]  ;;  %v1233_v5 = vcombine.low %v110_v57, %v114_v58  ;;  %v174_v58 = vld [vmem:[%s1769_s1 + $0x3d0] sm:$0xff] }
  0x43   :  { %916 = vmatprep.subr.bf16.mxu0 %v1178_v6  ;;  %959 = vmatprep.subr.bf16.mxu1 %v1180_v7  ;;  %v1235_v6 = vcombine.low %v111_v59, %v115_v60  ;;  %v1242_v7 = vcombine.high %v118_v1, %v122_v2  ;;  %v1244_v8 = vcombine.high %v119_v3, %v123_v4  ;;  %v178_v59 = vld [vmem:[%s1769_s1 + $0x3f0] sm:$0xff]  ;;  %v175_v60 = vld [vmem:[%s1769_s1 + $0x3d8] sm:$0xff] }
  0x45   :  { %863 = vmatmul.mubr.bf16.vlgmr.msra.gmra.mrb[0].mxu0 %v1560_v10  ;;  %906 = vmatmul.mubr.bf16.vlgmr.msra.gmra.mrb[0].mxu1 %v1560_v10 }
  0x46   :  { %917 = vmatpush1.bf16.msra.mxu0 %v1177_v13  ;;  %960 = vmatpush1.bf16.msra.mxu1 %v1179_v14  ;;  %v131_v13 = vld [vmem:[%s1769_s1 + $0x278] sm:$0xff]  ;;  %v1241_v14 = vcombine.low %v118_v1, %v122_v2  ;;  %v1297_v2 = vcombine.low %v174_v58, %v178_v59 }
  0x47   :  { %918 = vmatprep.subr.bf16.mxu0 %v1186_v15  ;;  %961 = vmatprep.subr.bf16.mxu1 %v1188_v16  ;;  %v1243_v15 = vcombine.low %v119_v3, %v123_v4  ;;  %v1250_v16 = vcombine.high %v126_v9, %v130_v11  ;;  %v1252_v17 = vcombine.high %v127_v12, %v131_v13  ;;  %v1055_v4 = vlaneseq }
  0x48   :  { %948 = vmatprep.mubr.bf16.mxu0 %v1433_v56  ;;  %991 = vmatprep.mubr.bf16.mxu1 %v1433_v56  ;;  %v87_v56 = vld [vmem:[%s1769_s1 + $0x118] sm:$0xff] }
  0x49   :  { %v1212_v39 = vcombine.high %v87_v56, %v91_v35  ;;  %v1211_v45 = vcombine.low %v87_v56, %v91_v35  ;;  %v154_v56 = vld [vmem:[%s1769_s1 + $0x330] sm:$0xff]  ;;  %v151_v35 = vld [vmem:[%s1769_s1 + $0x318] sm:$0xff] }
  0x4a   :  { %919 = vmatpush1.bf16.msra.mxu0 %v1185_v21  ;;  %962 = vmatpush1.bf16.msra.mxu1 %v1187_v22  ;;  %v139_v21 = vld [vmem:[%s1769_s1 + $0x2b8] sm:$0xff]  ;;  %v1249_v22 = vcombine.low %v126_v9, %v130_v11 }
  0x4b   :  { %920 = vmatprep.subr.bf16.mxu0 %v1194_v23  ;;  %963 = vmatprep.subr.bf16.mxu1 %v1196_v24  ;;  %v1251_v23 = vcombine.low %v127_v12, %v131_v13  ;;  %v1258_v24 = vcombine.high %v134_v18, %v138_v19  ;;  %v1260_v25 = vcombine.high %v135_v20, %v139_v21 }
  0x4e   :  { %921 = vmatpush1.bf16.msra.mxu0 %v1193_v29  ;;  %964 = vmatpush1.bf16.msra.mxu1 %v1195_v30  ;;  %v147_v29 = vld [vmem:[%s1769_s1 + $0x2f8] sm:$0xff]  ;;  %v1257_v30 = vcombine.low %v134_v18, %v138_v19 }
  0x4f   :  { %922 = vmatprep.subr.bf16.mxu0 %v1202_v31  ;;  %965 = vmatprep.subr.bf16.mxu1 %v1204_v32  ;;  %v1259_v31 = vcombine.low %v135_v20, %v139_v21  ;;  %v1266_v32 = vcombine.high %v142_v26, %v146_v27  ;;  %v1268_v33 = vcombine.high %v143_v28, %v147_v29 }
  0x52   :  { %923 = vmatpush1.bf16.msra.mxu0 %v1201_v36  ;;  %966 = vmatpush1.bf16.msra.mxu1 %v1203_v37  ;;  %v155_v36 = vld [vmem:[%s1769_s1 + $0x338] sm:$0xff]  ;;  %v1265_v37 = vcombine.low %v142_v26, %v146_v27 }
  0x53   :  { %924 = vmatprep.subr.bf16.mxu0 %v1210_v38  ;;  %967 = vmatprep.subr.bf16.mxu1 %v1212_v39  ;;  %v1267_v38 = vcombine.low %v143_v28, %v147_v29  ;;  %v1274_v39 = vcombine.high %v150_v34, %v154_v56  ;;  %v1276_v40 = vcombine.high %v151_v35, %v155_v36 }
  0x56   :  { %925 = vmatpush1.bf16.msra.mxu0 %v1209_v44  ;;  %968 = vmatpush1.bf16.msra.mxu1 %v1211_v45  ;;  %v163_v44 = vld [vmem:[%s1769_s1 + $0x378] sm:$0xff]  ;;  %v1273_v45 = vcombine.low %v150_v34, %v154_v56 }
  0x57   :  { %926 = vmatprep.subr.bf16.mxu0 %v1218_v46  ;;  %969 = vmatprep.subr.bf16.mxu1 %v1220_v47  ;;  %v1275_v46 = vcombine.low %v151_v35, %v155_v36  ;;  %v1282_v47 = vcombine.high %v158_v41, %v162_v42  ;;  %v1284_v48 = vcombine.high %v159_v43, %v163_v44 }
  0x5a   :  { %927 = vmatpush1.bf16.msra.mxu0 %v1217_v52  ;;  %970 = vmatpush1.bf16.msra.mxu1 %v1219_v53  ;;  %v171_v52 = vld [vmem:[%s1769_s1 + $0x3b8] sm:$0xff]  ;;  %v1281_v53 = vcombine.low %v158_v41, %v162_v42 }
  0x5b   :  { %928 = vmatprep.subr.bf16.mxu0 %v1226_v54  ;;  %971 = vmatprep.subr.bf16.mxu1 %v1228_v55  ;;  %v1283_v54 = vcombine.low %v159_v43, %v163_v44  ;;  %v1290_v55 = vcombine.high %v166_v49, %v170_v50  ;;  %v1292_v57 = vcombine.high %v167_v51, %v171_v52 }
  0x5e   :  { %929 = vmatpush1.bf16.msra.mxu0 %v1225_v61  ;;  %972 = vmatpush1.bf16.msra.mxu1 %v1227_v62  ;;  %v179_v61 = vld [vmem:[%s1769_s1 + $0x3f8] sm:$0xff]  ;;  %v1289_v62 = vcombine.low %v166_v49, %v170_v50 }
  0x5f   :  { %930 = vmatprep.subr.bf16.mxu0 %v1234_v63  ;;  %973 = vmatprep.subr.bf16.mxu1 %v1236_v0  ;;  %v1291_v63 = vcombine.low %v167_v51, %v171_v52  ;;  %v1298_v0 = vcombine.high %v174_v58, %v178_v59  ;;  %v1300_v1 = vcombine.high %v175_v60, %v179_v61 }
  0x60   :  { %v1299_v3 = vcombine.low %v175_v60, %v179_v61 }
  0x62   :  { %931 = vmatpush1.bf16.msra.mxu0 %v1233_v5  ;;  %974 = vmatpush1.bf16.msra.mxu1 %v1235_v6  ;;  %v1056_v5 = vshrl.u32 %v1055_v4, 7 }
  0x63   :  { %932 = vmatprep.subr.bf16.mxu0 %v1242_v7  ;;  %975 = vmatprep.subr.bf16.mxu1 %v1244_v8  ;;  %v1053_v8 = vld [vmem:[%s1771_s2] sm:$0xff] }
  0x64   :  { %v1073_v6 = vsub.s32 4, %v1056_v5  ;;  %v1081_v7 = vsub.s32 6, %v1056_v5  ;;  %v1077_v9 = vsub.s32 5, %v1056_v5  ;;  %v1085_v11 = vsub.s32 7, %v1056_v5 }
  0x65   :  { %v1061_v18 = vsub.s32 1, %v1056_v5  ;;  %v1069_v19 = vsub.s32 3, %v1056_v5 }
  0x66   :  { %933 = vmatpush1.bf16.msra.mxu0 %v1241_v14  ;;  %976 = vmatpush1.bf16.msra.mxu1 %v1243_v15  ;;  %v1074_v12 = vrot.slane %v1053_v8, %v1073_v6  ;;  %v1082_v13 = vrot.slane %v1053_v8, %v1081_v7  ;;  %v1078_v14 = vrot.slane %v1053_v8, %v1077_v9 }
  0x67   :  { %934 = vmatprep.subr.bf16.mxu0 %v1250_v16  ;;  %977 = vmatprep.subr.bf16.mxu1 %v1252_v17  ;;  %v1086_v15 = vrot.slane %v1053_v8, %v1085_v11  ;;  %v1057_v16 = vsub.s32 0, %v1056_v5  ;;  %v1065_v17 = vsub.s32 2, %v1056_v5  ;;  %v1062_v21 = vrot.slane %v1053_v8, %v1061_v18 }
  0x69   :  { %v1058_v20 = vrot.slane %v1053_v8, %v1057_v16 }
  0x6a   :  { %935 = vmatpush1.bf16.msra.mxu0 %v1249_v22  ;;  %978 = vmatpush1.bf16.msra.mxu1 %v1251_v23  ;;  %v1070_v22 = vrot.slane %v1053_v8, %v1069_v19 }
  0x6b   :  { %936 = vmatprep.subr.bf16.mxu0 %v1258_v24  ;;  %979 = vmatprep.subr.bf16.mxu1 %v1260_v25 }
  0x6e   :  { %937 = vmatpush1.bf16.msra.mxu0 %v1257_v30  ;;  %980 = vmatpush1.bf16.msra.mxu1 %v1259_v31 }
  0x6f   :  { %938 = vmatprep.subr.bf16.mxu0 %v1266_v32  ;;  %981 = vmatprep.subr.bf16.mxu1 %v1268_v33 }
  0x72   :  { %939 = vmatpush1.bf16.msra.mxu0 %v1265_v37  ;;  %982 = vmatpush1.bf16.msra.mxu1 %v1267_v38 }
  0x73   :  { %940 = vmatprep.subr.bf16.mxu0 %v1274_v39  ;;  %983 = vmatprep.subr.bf16.mxu1 %v1276_v40 }
  0x76   :  { %941 = vmatpush1.bf16.msra.mxu0 %v1273_v45  ;;  %984 = vmatpush1.bf16.msra.mxu1 %v1275_v46 }
  0x77   :  { %942 = vmatprep.subr.bf16.mxu0 %v1282_v47  ;;  %985 = vmatprep.subr.bf16.mxu1 %v1284_v48 }
  0x7a   :  { %943 = vmatpush1.bf16.msra.mxu0 %v1281_v53  ;;  %986 = vmatpush1.bf16.msra.mxu1 %v1283_v54 }
  0x7b   :  { %944 = vmatprep.subr.bf16.mxu0 %v1290_v55  ;;  %987 = vmatprep.subr.bf16.mxu1 %v1292_v57 }
  0x7e   :  { %945 = vmatpush1.bf16.msra.mxu0 %v1289_v62  ;;  %988 = vmatpush1.bf16.msra.mxu1 %v1291_v63 }
  0x7f   :  { %946 = vmatprep.subr.bf16.mxu0 %v1298_v0  ;;  %989 = vmatprep.subr.bf16.mxu1 %v1300_v1 }
  0x82   :  { %947 = vmatpush1.bf16.msra.mxu0 %v1297_v2  ;;  %990 = vmatpush1.bf16.msra.mxu1 %v1299_v3 }
  0x85   :  { %949 = vmatmul.mubr.bf16.vlgmr.msra.gmra.mrb[4].mxu0 %v1560_v10  ;;  %992 = vmatmul.mubr.bf16.vlgmr.msra.gmra.mrb[4].mxu1 %v1560_v10  ;;  %v1066_v10 = vrot.slane %v1053_v8, %v1065_v17 }
 0x118   :  { %v864_v23 = vpop.f32.mrb[0].mxu0  ;;  %v907_v25 = vpop.f32.mrb[0].mxu1 }
 0x119   :  { %v1095_v24 = vadd.f32 %v1058_v20, %v864_v23  ;;  %v866_v26 = vpop.f32.mrb[1].mxu0  ;;  %v1097_v27 = vadd.f32 %v1066_v10, %v907_v25  ;;  %v909_v29 = vpop.f32.mrb[1].mxu1 }
 0x11a   :  { %v1096_v28 = vadd.f32 %v1062_v21, %v866_v26  ;;  %v868_v30 = vpop.f32.mrb[2].mxu0  ;;  %v1098_v31 = vadd.f32 %v1070_v22, %v909_v29  ;;  %v911_v33 = vpop.f32.mrb[2].mxu1 }
 0x11b   :  { %v1103_v32 = vadd.f32 %v1058_v20, %v868_v30  ;;  %v870_v34 = vpop.f32.mrb[3].mxu0  ;;  %v1105_v35 = vadd.f32 %v1066_v10, %v911_v33  ;;  %v913_v37 = vpop.f32.mrb[3].mxu1 }
 0x11c   :  { %v1309_v56 = vpack.c.bf16 %v1096_v28, %v1095_v24  ;;  %v1104_v36 = vadd.f32 %v1062_v21, %v870_v34  ;;  %v1310_v38 = vpack.c.bf16 %v1098_v31, %v1097_v27  ;;  %v1106_v39 = vadd.f32 %v1070_v22, %v913_v37 }
 0x11e   :  { %1159 = vst [vmem:[%s1772_s3] sm:$0xff] %v1309_v56  ;;  %v1313_v40 = vpack.c.bf16 %v1104_v36, %v1103_v32  ;;  %1160 = vst [vmem:[%s1772_s3 + $0x8] sm:$0xff] %v1310_v38  ;;  %v1314_v41 = vpack.c.bf16 %v1106_v39, %v1105_v35 }
 0x120   :  { %1163 = vst [vmem:[%s1772_s3 + $0x20] sm:$0xff] %v1313_v40  ;;  %1164 = vst [vmem:[%s1772_s3 + $0x28] sm:$0xff] %v1314_v41 }
 0x158   :  { %v950_v42 = vpop.f32.mrb[4].mxu0  ;;  %v993_v44 = vpop.f32.mrb[4].mxu1 }
 0x159   :  { %v1099_v43 = vadd.f32 %v1074_v12, %v950_v42  ;;  %v952_v45 = vpop.f32.mrb[5].mxu0  ;;  %v1101_v46 = vadd.f32 %v1082_v13, %v993_v44  ;;  %v995_v48 = vpop.f32.mrb[5].mxu1 }
 0x15a   :  { %v1100_v47 = vadd.f32 %v1078_v14, %v952_v45  ;;  %v954_v49 = vpop.f32.mrb[6].mxu0  ;;  %v1102_v50 = vadd.f32 %v1086_v15, %v995_v48  ;;  %v997_v52 = vpop.f32.mrb[6].mxu1 }
 0x15b   :  { %v1107_v51 = vadd.f32 %v1074_v12, %v954_v49  ;;  %v956_v53 = vpop.f32.mrb[7].mxu0  ;;  %v1109_v55 = vadd.f32 %v1082_v13, %v997_v52  ;;  %v999_v58 = vpop.f32.mrb[7].mxu1 }
 0x15c   :  { %v1311_v54 = vpack.c.bf16 %v1100_v47, %v1099_v43  ;;  %v1108_v57 = vadd.f32 %v1078_v14, %v956_v53  ;;  %v1312_v59 = vpack.c.bf16 %v1102_v50, %v1101_v46  ;;  %v1110_v60 = vadd.f32 %v1086_v15, %v999_v58 }
 0x15e   :  { %1161 = vst [vmem:[%s1772_s3 + $0x10] sm:$0xff] %v1311_v54  ;;  %v1315_v61 = vpack.c.bf16 %v1108_v57, %v1107_v51  ;;  %1162 = vst [vmem:[%s1772_s3 + $0x18] sm:$0xff] %v1312_v59  ;;  %v1316_v62 = vpack.c.bf16 %v1110_v60, %v1109_v55 }
 0x160   :  { %1165 = vst [vmem:[%s1772_s3 + $0x30] sm:$0xff] %v1315_v61  ;;  %1166 = vst [vmem:[%s1772_s3 + $0x38] sm:$0xff] %v1316_v62 }

// kernel: fg_model_forward.33
= control target key start
LH: loop header
LB: loop body
LE: loop exit
PB: predicated region body
PF: predicated region fallthrough
CT: control target
= control target key end

     0   :  { %s335_s1 = inlined_call_operand.vmem [shape: bf16[128,128], index: 1, kind: input, shape index: {}]   ;;  %s336_s0 = inlined_call_operand.vmem [shape: bf16[32,128], index: 0, kind: input, shape index: {}]   ;;  %s337_s2 = inlined_call_operand.vmem [shape: f32[1,128], index: 2, kind: input, shape index: {}]   ;;  %s338_s3 = inlined_call_operand.vmem [shape: bf16[32,128], index: 3, kind: output, shape index: {}]  }
   0x1   :  { %v266_v0 = vld [vmem:[%s335_s1] sm:$0xff]   ;;  %v267_v1 = vld [vmem:[%s335_s1 + $0x8] sm:$0xff]   ;;  %v268_v2 = vld [vmem:[%s335_s1 + $0x10] sm:$0xff]  }
   0x2   :  { %246 = vmatprep.subr.bf16.mxu0 %v266_v0  ;;  %v269_v3 = vld [vmem:[%s335_s1 + $0x18] sm:$0xff]   ;;  %v274_v4 = vld [vmem:[%s336_s0] sm:$0xff]   ;;  %v271_v6 = vld [vmem:[%s335_s1 + $0x28] sm:$0xff]  }
   0x3   :  { %247 = vmatpush3.bf16.msra.mxu0 %v266_v0  ;;  %262 = vmatprep.mubr.bf16.mxu0 %v274_v4  ;;  %v270_v5 = vld [vmem:[%s335_s1 + $0x20] sm:$0xff]   ;;  %v272_v7 = vld [vmem:[%s335_s1 + $0x30] sm:$0xff]   ;;  %v273_v8 = vld [vmem:[%s335_s1 + $0x38] sm:$0xff]  }
   0x4   :  { %248 = vmatprep.subr.bf16.mxu0 %v267_v1  ;;  %v275_v9 = vld [vmem:[%s336_s0 + $0x8] sm:$0xff]   ;;  %v216_v11 = vld [vmem:[%s337_s2] ss:$0 sm:$0xff] }
   0x7   :  { %249 = vmatpush3.bf16.msra.mxu0 %v267_v1 }
   0x8   :  { %250 = vmatprep.subr.bf16.mxu0 %v268_v2 }
   0xb   :  { %251 = vmatpush3.bf16.msra.mxu0 %v268_v2 }
   0xc   :  { %252 = vmatprep.subr.bf16.mxu0 %v269_v3 }
   0xf   :  { %253 = vmatpush3.bf16.msra.mxu0 %v269_v3 }
  0x10   :  { %254 = vmatprep.subr.bf16.mxu0 %v270_v5 }
  0x13   :  { %255 = vmatpush3.bf16.msra.mxu0 %v270_v5 }
  0x14   :  { %256 = vmatprep.subr.bf16.mxu0 %v271_v6 }
  0x17   :  { %257 = vmatpush3.bf16.msra.mxu0 %v271_v6 }
  0x18   :  { %258 = vmatprep.subr.bf16.mxu0 %v272_v7 }
  0x1b   :  { %259 = vmatpush3.bf16.msra.mxu0 %v272_v7 }
  0x1c   :  { %260 = vmatprep.subr.bf16.mxu0 %v273_v8 }
  0x1f   :  { %261 = vmatpush3.bf16.msra.mxu0 %v273_v8 }
  0x22   :  { %263 = vmatmul.mubr.bf16.vlgmr.msra.gmra.mrb[0].mxu0 %v275_v9 }
  0xf5   :  { %v264_v10 = vpop.f32.mrb[0].mxu0 }
  0xf6   :  { %v141_v12 = vpop.f32.mrb[1].mxu0  ;;  %v180_v14 = vadd.f32 %v264_v10, %v216_v11 }
  0xf7   :  { %v265_v13 = vpop.f32.mrb[2].mxu0  ;;  %v178_v17 = vadd.f32 %v216_v11, %v141_v12 }
  0xf8   :  { %v181_v15 = vadd.f32 %v265_v13, %v216_v11  ;;  %v144_v16 = vpop.f32.mrb[3].mxu0 }
  0xf9   :  { %v179_v18 = vadd.f32 %v216_v11, %v144_v16 }
  0xfa   :  { %v233_v19 = vpack.c.bf16 %v181_v15, %v180_v14 }
  0xfb   :  { %v228_v20 = vpack.c.bf16 %v179_v18, %v178_v17 }
  0xfc   :  { %235 = vst [vmem:[%s338_s3 + $0x8] sm:$0xff] %v233_v19  }
  0xfd   :  { %229 = vst [vmem:[%s338_s3] sm:$0xff] %v228_v20  }

// kernel: fg_model_forward.27
= control target key start
LH: loop header
LB: loop body
LE: loop exit
PB: predicated region body
PF: predicated region fallthrough
CT: control target
= control target key end

     0   :  { %s997_s1 = inlined_call_operand.vmem [shape: bf16[768,128], index: 1, kind: input, shape index: {}]   ;;  %s998_s0 = inlined_call_operand.vmem [shape: bf16[16,768], index: 0, kind: input, shape index: {}]   ;;  %s999_s2 = inlined_call_operand.vmem [shape: f32[1,128], index: 2, kind: input, shape index: {}]   ;;  %s1000_s3 = inlined_call_operand.vmem [shape: bf16[16,128], index: 3, kind: output, shape index: {}]  }
   0x1   :  { %v744_v0 = vld [vmem:[%s997_s1 + $0x40] sm:$0xff]   ;;  %v748_v4 = vld [vmem:[%s997_s1 + $0x48] sm:$0xff]   ;;  %v752_v8 = vld [vmem:[%s997_s1 + $0x50] sm:$0xff]  }
   0x2   :  { %v745_v1 = vld [vmem:[%s997_s1 + $0xc0] sm:$0xff]   ;;  %678 = vmatprep.subr.bf16.mxu0 %v744_v0  ;;  %v749_v5 = vld [vmem:[%s997_s1 + $0xc8] sm:$0xff]   ;;  %v753_v9 = vld [vmem:[%s997_s1 + $0xd0] sm:$0xff]  }
   0x3   :  { %v746_v2 = vld [vmem:[%s997_s1] sm:$0xff]   ;;  %700 = vmatprep.subr.bf16.mxu1 %v745_v1  ;;  %v750_v6 = vld [vmem:[%s997_s1 + $0x8] sm:$0xff]   ;;  %v754_v10 = vld [vmem:[%s997_s1 + $0x10] sm:$0xff]  }
   0x4   :  { %v747_v3 = vld [vmem:[%s997_s1 + $0x80] sm:$0xff]   ;;  %679 = vmatpush3.bf16.msra.mxu0 %v746_v2  ;;  %v751_v7 = vld [vmem:[%s997_s1 + $0x88] sm:$0xff]   ;;  %v755_v11 = vld [vmem:[%s997_s1 + $0x90] sm:$0xff]  }
   0x5   :  { %701 = vmatpush3.bf16.msra.mxu1 %v747_v3  ;;  %680 = vmatprep.subr.bf16.mxu0 %v748_v4  ;;  %v756_v12 = vld [vmem:[%s997_s1 + $0x58] sm:$0xff]   ;;  %v760_v16 = vld [vmem:[%s997_s1 + $0x60] sm:$0xff]   ;;  %v764_v20 = vld [vmem:[%s997_s1 + $0x68] sm:$0xff]  }
   0x6   :  { %702 = vmatprep.subr.bf16.mxu1 %v749_v5  ;;  %v757_v13 = vld [vmem:[%s997_s1 + $0xd8] sm:$0xff]   ;;  %v761_v17 = vld [vmem:[%s997_s1 + $0xe0] sm:$0xff]   ;;  %v765_v21 = vld [vmem:[%s997_s1 + $0xe8] sm:$0xff]  }
   0x7   :  { %v758_v14 = vld [vmem:[%s997_s1 + $0x18] sm:$0xff]   ;;  %v762_v18 = vld [vmem:[%s997_s1 + $0x20] sm:$0xff]   ;;  %v766_v22 = vld [vmem:[%s997_s1 + $0x28] sm:$0xff]  }
   0x8   :  { %681 = vmatpush3.bf16.msra.mxu0 %v750_v6  ;;  %v759_v15 = vld [vmem:[%s997_s1 + $0x98] sm:$0xff]   ;;  %v763_v19 = vld [vmem:[%s997_s1 + $0xa0] sm:$0xff]   ;;  %v767_v23 = vld [vmem:[%s997_s1 + $0xa8] sm:$0xff]  }
   0x9   :  { %703 = vmatpush3.bf16.msra.mxu1 %v751_v7  ;;  %682 = vmatprep.subr.bf16.mxu0 %v752_v8  ;;  %v768_v24 = vld [vmem:[%s997_s1 + $0x70] sm:$0xff]   ;;  %v772_v28 = vld [vmem:[%s997_s1 + $0x78] sm:$0xff]   ;;  %v779_v34 = vld [vmem:[%s998_s0 + $0x8] ss:$24 sps:$4 sm:$0xff]  }
   0xa   :  { %704 = vmatprep.subr.bf16.mxu1 %v753_v9  ;;  %v769_v25 = vld [vmem:[%s997_s1 + $0xf0] sm:$0xff]   ;;  %v773_v29 = vld [vmem:[%s997_s1 + $0xf8] sm:$0xff]   ;;  %v781_v35 = vld [vmem:[%s998_s0 + $0xc] ss:$24 sps:$4 sm:$0xff]  }
   0xb   :  { %v770_v26 = vld [vmem:[%s997_s1 + $0x30] sm:$0xff]   ;;  %v774_v30 = vld [vmem:[%s997_s1 + $0x38] sm:$0xff]   ;;  %v782_v36 = vld [vmem:[%s997_s1 + $0x140] sm:$0xff]   ;;  %516 = vmatprep.mubr.bf16.mxu1 %v781_v35 }
   0xc   :  { %683 = vmatpush3.bf16.msra.mxu0 %v754_v10  ;;  %v771_v27 = vld [vmem:[%s997_s1 + $0xb0] sm:$0xff]   ;;  %v775_v31 = vld [vmem:[%s997_s1 + $0xb8] sm:$0xff]   ;;  %v783_v37 = vld [vmem:[%s997_s1 + $0x100] sm:$0xff]  }
   0xd   :  { %705 = vmatpush3.bf16.msra.mxu1 %v755_v11  ;;  %684 = vmatprep.subr.bf16.mxu0 %v756_v12  ;;  %v776_v32 = vld [vmem:[%s998_s0] ss:$24 sps:$4 sm:$0xff]   ;;  %v778_v33 = vld [vmem:[%s998_s0 + $0x4] ss:$24 sps:$4 sm:$0xff]   ;;  %v784_v38 = vld [vmem:[%s997_s1 + $0x148] sm:$0xff]  }
   0xe   :  { %706 = vmatprep.subr.bf16.mxu1 %v757_v13  ;;  %475 = vmatprep.mubr.bf16.mxu0 %v778_v33  ;;  %v785_v39 = vld [vmem:[%s997_s1 + $0x108] sm:$0xff]   ;;  %v786_v40 = vld [vmem:[%s997_s1 + $0x150] sm:$0xff]   ;;  %v788_v42 = vld [vmem:[%s997_s1 + $0x158] sm:$0xff]  }
   0xf   :  { %v787_v41 = vld [vmem:[%s997_s1 + $0x110] sm:$0xff]   ;;  %v789_v43 = vld [vmem:[%s997_s1 + $0x118] sm:$0xff]   ;;  %v790_v44 = vld [vmem:[%s997_s1 + $0x160] sm:$0xff]  }
  0x10   :  { %685 = vmatpush3.bf16.msra.mxu0 %v758_v14  ;;  %v791_v45 = vld [vmem:[%s997_s1 + $0x120] sm:$0xff]   ;;  %v792_v46 = vld [vmem:[%s997_s1 + $0x168] sm:$0xff]   ;;  %v794_v49 = vld [vmem:[%s997_s1 + $0x170] sm:$0xff]  }
  0x11   :  { %707 = vmatpush3.bf16.msra.mxu1 %v759_v15  ;;  %686 = vmatprep.subr.bf16.mxu0 %v760_v16  ;;  %v800_v47 = vld [vmem:[%s998_s0 + $0x14] ss:$24 sps:$4 sm:$0xff]   ;;  %v796_v51 = vld [vmem:[%s997_s1 + $0x178] sm:$0xff]   ;;  %v798_v53 = vld [vmem:[%s998_s0 + $0x10] ss:$24 sps:$4 sm:$0xff]  }
  0x12   :  { %708 = vmatprep.subr.bf16.mxu1 %v761_v17  ;;  %v793_v48 = vld [vmem:[%s997_s1 + $0x128] sm:$0xff]   ;;  %v795_v50 = vld [vmem:[%s997_s1 + $0x130] sm:$0xff]   ;;  %v797_v52 = vld [vmem:[%s997_s1 + $0x138] sm:$0xff]  }
  0x13   :  { %v666_v8 = vld [vmem:[%s999_s2] ss:$0 sm:$0xff] }
  0x14   :  { %687 = vmatpush3.bf16.msra.mxu0 %v762_v18 }
  0x15   :  { %709 = vmatpush3.bf16.msra.mxu1 %v763_v19  ;;  %688 = vmatprep.subr.bf16.mxu0 %v764_v20 }
  0x16   :  { %710 = vmatprep.subr.bf16.mxu1 %v765_v21 }
  0x18   :  { %689 = vmatpush3.bf16.msra.mxu0 %v766_v22 }
  0x19   :  { %711 = vmatpush3.bf16.msra.mxu1 %v767_v23  ;;  %690 = vmatprep.subr.bf16.mxu0 %v768_v24 }
  0x1a   :  { %712 = vmatprep.subr.bf16.mxu1 %v769_v25 }
  0x1c   :  { %691 = vmatpush3.bf16.msra.mxu0 %v770_v26 }
  0x1d   :  { %713 = vmatpush3.bf16.msra.mxu1 %v771_v27  ;;  %692 = vmatprep.subr.bf16.mxu0 %v772_v28 }
  0x1e   :  { %714 = vmatprep.subr.bf16.mxu1 %v773_v29 }
  0x20   :  { %693 = vmatpush3.bf16.msra.mxu0 %v774_v30 }
  0x21   :  { %715 = vmatpush3.bf16.msra.mxu1 %v775_v31  ;;  %722 = vmatprep.subr.bf16.mxu0 %v782_v36 }
  0x23   :  { %476 = vmatmul.mubr.bf16.vlgmr.msra.gmra.mrb[0].mxu0 %v776_v32 }
  0x24   :  { %517 = vmatmul.mubr.bf16.vlgmr.msra.gmra.mrb[0].mxu1 %v779_v34  ;;  %723 = vmatpush3.bf16.msra.mxu0 %v783_v37 }
  0x25   :  { %724 = vmatprep.subr.bf16.mxu0 %v784_v38  ;;  %557 = vmatprep.mubr.bf16.mxu0 %v800_v47 }
  0x28   :  { %725 = vmatpush3.bf16.msra.mxu0 %v785_v39 }
  0x29   :  { %726 = vmatprep.subr.bf16.mxu0 %v786_v40 }
  0x2c   :  { %727 = vmatpush3.bf16.msra.mxu0 %v787_v41 }
  0x2d   :  { %728 = vmatprep.subr.bf16.mxu0 %v788_v42 }
  0x30   :  { %729 = vmatpush3.bf16.msra.mxu0 %v789_v43 }
  0x31   :  { %730 = vmatprep.subr.bf16.mxu0 %v790_v44 }
  0x34   :  { %731 = vmatpush3.bf16.msra.mxu0 %v791_v45 }
  0x35   :  { %732 = vmatprep.subr.bf16.mxu0 %v792_v46 }
  0x38   :  { %733 = vmatpush3.bf16.msra.mxu0 %v793_v48 }
  0x39   :  { %734 = vmatprep.subr.bf16.mxu0 %v794_v49 }
  0x3c   :  { %735 = vmatpush3.bf16.msra.mxu0 %v795_v50 }
  0x3d   :  { %736 = vmatprep.subr.bf16.mxu0 %v796_v51 }
  0x40   :  { %737 = vmatpush3.bf16.msra.mxu0 %v797_v52 }
  0x43   :  { %558 = vmatmul.mubr.bf16.vlgmr.msra.gmra.mrb[4].mxu0 %v798_v53 }
  0xf6   :  { %v694_v54 = vpop.f32.mrb[0].mxu0 }
  0xf7   :  { %v716_v55 = vpop.f32.mrb[0].mxu1  ;;  %v695_v56 = vpop.f32.mrb[1].mxu0 }
  0xf8   :  { %v696_v57 = vadd.f32 %v695_v56, %v694_v54  ;;  %v717_v58 = vpop.f32.mrb[1].mxu1  ;;  %v697_v59 = vpop.f32.mrb[2].mxu0 }
  0xf9   :  { %v718_v60 = vadd.f32 %v717_v58, %v716_v55  ;;  %v719_v61 = vpop.f32.mrb[2].mxu1  ;;  %v698_v62 = vpop.f32.mrb[3].mxu0 }
  0xfa   :  { %v699_v63 = vadd.f32 %v698_v62, %v697_v59  ;;  %v720_v0 = vpop.f32.mrb[3].mxu1 }
  0xfb   :  { %v519_v1 = vadd.f32 %v718_v60, %v696_v57  ;;  %v721_v2 = vadd.f32 %v720_v0, %v719_v61 }
  0xfd   :  { %v522_v3 = vadd.f32 %v721_v2, %v699_v63 }
 0x116   :  { %v738_v4 = vpop.f32.mrb[4].mxu0 }
 0x117   :  { %v739_v5 = vpop.f32.mrb[5].mxu0 }
 0x118   :  { %v740_v6 = vadd.f32 %v739_v5, %v738_v4  ;;  %v741_v7 = vpop.f32.mrb[6].mxu0 }
 0x119   :  { %v742_v9 = vpop.f32.mrb[7].mxu0 }
 0x11a   :  { %v560_v10 = vadd.f32 %v740_v6, %v519_v1  ;;  %v743_v11 = vadd.f32 %v742_v9, %v741_v7 }
 0x11c   :  { %v582_v12 = vadd.f32 %v666_v8, %v560_v10  ;;  %v563_v13 = vadd.f32 %v743_v11, %v522_v3 }
 0x11e   :  { %v667_v14 = vmul.f32 -1.442695, %v582_v12  ;;  %v583_v15 = vadd.f32 %v666_v8, %v563_v13 }
 0x120   :  { %801 = vpow2.f32 %v667_v14  ;;  %v668_v16 = vmul.f32 -1.442695, %v583_v15 }
 0x122   :  { %803 = vpow2.f32 %v668_v16 }
 0x12a   :  { %v802_v17 = vpop.eup %801 }
 0x12b   :  { %v590_v18 = vadd.f32 1.0, %v802_v17 }
 0x12c   :  { %v804_v19 = vpop.eup %803 }
 0x12d   :  { %805 = vrcp.f32 %v590_v18  ;;  %v591_v20 = vadd.f32 1.0, %v804_v19 }
 0x12f   :  { %807 = vrcp.f32 %v591_v20 }
 0x137   :  { %v806_v21 = vpop.eup %805 }
 0x138   :  { %v596_v23 = vmul.f32 %v806_v21, %v582_v12 }
 0x139   :  { %v808_v22 = vpop.eup %807 }
 0x13a   :  { %v597_v24 = vmul.f32 %v808_v22, %v583_v15 }
 0x13c   :  { %v676_v25 = vpack.c.bf16 %v597_v24, %v596_v23 }
 0x13e   :  { %677 = vst [vmem:[%s1000_s3] sm:$0xff] %v676_v25  }

// kernel: fg_model_forward.36
= control target key start
LH: loop header
LB: loop body
LE: loop exit
PB: predicated region body
PF: predicated region fallthrough
CT: control target
= control target key end

     0   :  { %v305_v5 = vmov 0   ;;  %v306_v6 = vmov 0.0   ;;  %vm44_vm0 = vcmask 7168   ;;  %vm307_vm1 = vmmov 0   ;;  %s369_s0 = inlined_call_operand.vmem [shape: bf16[16,128], index: 0, kind: input, shape index: {}]   ;;  %s370_s1 = inlined_call_operand.vmem [shape: bf16[128,128], index: 1, kind: input, shape index: {}]   ;;  %s371_s3 = inlined_call_operand.vmem [shape: f32[1,128], index: 3, kind: input, shape index: {}]   ;;  %s372_s2 = inlined_call_operand.vmem [shape: f32[1,128], index: 2, kind: input, shape index: {}]   ;;  %s373_s4 = inlined_call_operand.vmem [shape: bf16[16,128], index: 4, kind: output, shape index: {}]  }
   0x1   :  { %v243_v0 = vld [vmem:[%s369_s0] sm:$0xff]   ;;  %283 = vset.pattern.permute.xlu1 %v305_v5  ;;  %284 = vset.pattern.permute.xlu0 %v305_v5  ;;  %v286_v8 = vld [vmem:[%s370_s1 + $0x8] sm:$0xff]   ;;  %v287_v9 = vld [vmem:[%s370_s1 + $0x10] sm:$0xff]  }
   0x2   :  { %v244_v1 = vunpack.c.l.bf16 %v243_v0  ;;  %v245_v2 = vunpack.c.h.bf16 %v243_v0  ;;  %260 = vmatprep.subr.bf16.mxu0 %v306_v6  ;;  %v285_v7 = vld [vmem:[%s370_s1] sm:$0xff]   ;;  %v288_v10 = vld [vmem:[%s370_s1 + $0x18] sm:$0xff]   ;;  %v290_v12 = vld [vmem:[%s370_s1 + $0x28] sm:$0xff]   ;;  %276 = vmatprep.mubr.msk.bf16.mxu0 %vm307_vm1, %v306_v6 }
   0x3   :  { %261 = vmatpush3.bf16.msra.mxu0 %v285_v7  ;;  %v289_v11 = vld [vmem:[%s370_s1 + $0x20] sm:$0xff]   ;;  %v291_v22 = vld [vmem:[%s370_s1 + $0x30] sm:$0xff]   ;;  %v292_v24 = vld [vmem:[%s370_s1 + $0x38] sm:$0xff]  }
   0x4   :  { %v32_v3 = vmul.f32 %v244_v1, %v244_v1  ;;  %v33_v4 = vmul.f32 %v245_v2, %v245_v2  ;;  %262 = vmatprep.subr.bf16.mxu0 %v306_v6  ;;  %v226_v27 = vld [vmem:[%s371_s3] ss:$0 sm:$0xff] }
   0x5   :  { %v235_v33 = vld [vmem:[%s372_s2] ss:$0 sm:$0xff] }
   0x6   :  { %34 = vadd.xlane.f32.xlu0 %v32_v3 }
   0x7   :  { %263 = vmatpush3.bf16.msra.mxu0 %v286_v8 }
   0x8   :  { %264 = vmatprep.subr.bf16.mxu0 %v306_v6 }
   0xa   :  { %36 = vadd.xlane.f32.xlu0 %v33_v4 }
   0xb   :  { %265 = vmatpush3.bf16.msra.mxu0 %v287_v9 }
   0xc   :  { %266 = vmatprep.subr.bf16.mxu0 %v306_v6 }
   0xf   :  { %267 = vmatpush3.bf16.msra.mxu0 %v288_v10 }
  0x10   :  { %268 = vmatprep.subr.bf16.mxu0 %v306_v6 }
  0x13   :  { %269 = vmatpush3.bf16.msra.mxu0 %v289_v11 }
  0x14   :  { %270 = vmatprep.subr.bf16.mxu0 %v306_v6 }
  0x17   :  { %271 = vmatpush3.bf16.msra.mxu0 %v290_v12 }
  0x18   :  { %272 = vmatprep.subr.bf16.mxu0 %v306_v6 }
  0x1b   :  { %273 = vmatpush3.bf16.msra.mxu0 %v291_v22 }
  0x1c   :  { %274 = vmatprep.subr.bf16.mxu0 %v306_v6 }
  0x1f   :  { %275 = vmatpush3.bf16.msra.mxu0 %v292_v24 }
  0x93   :  { %v35_v13 = vpop.xlane.xlu0 %34 }
  0x94   :  { %v38_v14 = vmul.f32 0.015625, %v35_v13 }
  0x96   :  { %v40_v15 = vadd.f32 1e-06, %v38_v14 }
  0x97   :  { %v37_v16 = vpop.xlane.xlu0 %36 }
  0x98   :  { %293 = vrsqrt.f32 %v40_v15  ;;  %v39_v17 = vmul.f32 0.015625, %v37_v16 }
  0x9a   :  { %v41_v18 = vadd.f32 1e-06, %v39_v17 }
  0x9c   :  { %295 = vrsqrt.f32 %v41_v18 }
  0xa2   :  { %v294_v19 = vpop.eup %293 }
  0xa3   :  { %45 = vst.msk [vmem:[#allocation3] sm:$0xff] %vm44_vm0, %v294_v19 }
  0xa6   :  { %v296_v20 = vpop.eup %295 }
  0xa7   :  { %46 = vst.msk [vmem:[#allocation3 + $0x8] sm:$0xff] %vm44_vm0, %v296_v20 }
  0xaa   :  { %v49_v21 = vld [vmem:[#allocation3] sm:$0xff] }
  0xab   :  { %53 = vperm.xlu1 %283, %v49_v21  }
  0xae   :  { %v50_v23 = vld [vmem:[#allocation3 + $0x8] sm:$0xff] }
  0xaf   :  { %58 = vperm.xlu1 %283, %v50_v23  }
 0x12a   :  { %v54_v25 = vpop.permute.xlu1 %53 }
 0x12b   :  { %v61_v26 = vmul.f32 %v244_v1, %v54_v25 }
 0x12d   :  { %v70_v30 = vmul.f32 %v226_v27, %v61_v26 }
 0x12e   :  { %v59_v28 = vpop.permute.xlu1 %58 }
 0x12f   :  { %v62_v29 = vmul.f32 %v245_v2, %v59_v28 }
 0x131   :  { %v71_v31 = vmul.f32 %v226_v27, %v62_v29 }
 0x133   :  { %v72_v32 = vpack.c.bf16 %v71_v31, %v70_v30 }
 0x135   :  { %277 = vmatmul.mubr.bf16.vlgmr.msra.gmra.mrb[0].mxu0 %v72_v32 }
 0x208   :  { %v173_v34 = vpop.f32.mrb[0].mxu0 }
 0x209   :  { %v196_v35 = vadd.f32 %v235_v33, %v173_v34  ;;  %v278_v36 = vpop.f32.mrb[1].mxu0 }
 0x20a   :  { %v176_v37 = vpop.f32.mrb[2].mxu0 }
 0x20b   :  { %v236_v38 = vmul.f32 -1.442695, %v196_v35  ;;  %v197_v39 = vadd.f32 %v235_v33, %v176_v37  ;;  %v279_v40 = vpop.f32.mrb[3].mxu0 }
 0x20d   :  { %297 = vpow2.f32 %v236_v38  ;;  %v237_v41 = vmul.f32 -1.442695, %v197_v39 }
 0x20f   :  { %299 = vpow2.f32 %v237_v41 }
 0x217   :  { %v298_v42 = vpop.eup %297 }
 0x218   :  { %v204_v43 = vadd.f32 1.0, %v298_v42 }
 0x219   :  { %v300_v44 = vpop.eup %299 }
 0x21a   :  { %301 = vrcp.f32 %v204_v43  ;;  %v205_v45 = vadd.f32 1.0, %v300_v44 }
 0x21c   :  { %303 = vrcp.f32 %v205_v45 }
 0x224   :  { %v302_v46 = vpop.eup %301 }
 0x225   :  { %v210_v48 = vmul.f32 %v302_v46, %v196_v35 }
 0x226   :  { %v304_v47 = vpop.eup %303 }
 0x227   :  { %v211_v49 = vmul.f32 %v304_v47, %v197_v39 }
 0x229   :  { %v249_v50 = vpack.c.bf16 %v211_v49, %v210_v48 }
 0x22b   :  { %250 = vst [vmem:[%s373_s4] sm:$0xff] %v249_v50  }

// kernel: fg_model_forward.34
= control target key start
LH: loop header
LB: loop body
LE: loop exit
PB: predicated region body
PF: predicated region fallthrough
CT: control target
= control target key end

     0   :  { %s1184_s12 = smov 0   ;;  %s1186_s13 = smov 0   ;;  %s1382_s0 = inlined_call_operand.vmem [shape: bf16[2,8,64], index: 0, kind: input, shape index: {}]   ;;  %s1383_s1 = inlined_call_operand.vmem [shape: bf16[2,15,128], index: 1, kind: input, shape index: {}]   ;;  %s1384_s2 = inlined_call_operand.vmem [shape: f32[2,1,15], index: 2, kind: input, shape index: {}]   ;;  %s1385_s3 = inlined_call_operand.vmem [shape: bf16[2,8,64], index: 3, kind: output, shape index: {}]  }
   0x1   :  { %s1188_s14 = smov 0  }
   0x2 LB: > { %s25_s15 = sadd.s32 1, %s1146_s13  ;;  %p983_p0 = scmp.ge.s32.totalorder %s1150_s14, 1  ;;  %s1150_s14 = sphi %s1188_s14, %s13_s14   ;;  %s1146_s13 = sphi %s1186_s13, %s1387_s13   ;;  %s1142_s12 = sphi %s1184_s12, %s1386_s12  }
   0x3   : > { %p27_p1 = scmp.ge.s32.totalorder %s25_s15, 2  ;;  %p178_p2 = scmp.lt.s32.totalorder %s1150_s14, 3 }
   0x5   : > { %s1389_s15 = smov (%p27_p1, %s25_s15), 0  ;;  %p179_p3 = pnand %p983_p0, %p178_p2 }
   0x6   : > { %p215_p4 = scmp.lt.s32.totalorder (!%p179_p3), %s1142_s12, 1  ;;  %vm253_vm0 = vcmask (!%p179_p3), 130048   ;;  %v1152_v0 = vmov (!%p179_p3), 0.0   ;;  %vm1153_vm1 = vmmov (!%p179_p3), 0   ;;  %v1154_v1 = vmov (!%p179_p3), 0   ;;  %s1156_s27 = smov (!%p179_p3), 64  }
   0x7   : > { %182 = sbr.rel (%p179_p3) target bundleno = 1471 (0x5bf), region = 32  ;;  %1017 = vmatprep.subr.bf16.mxu0 (!%p179_p3), %v1152_v0  ;;  %254 = vst.msk [vmem:[#allocation4] sm:$0xff] (!%p179_p3), %vm253_vm0, %v1152_v0  ;;  %255 = vst.msk [vmem:[#allocation4 + $0x8] sm:$0xff] (!%p179_p3), %vm253_vm0, %v1152_v0  ;;  %1019 = vmatprep.mubr.msk.bf16.mxu0 (!%p179_p3), %vm1153_vm1, %v1152_v0  ;;  %vm244_vm3 = vcmask (!%p179_p3), 7168   ;;  %v1155_v7 = vmov (!%p179_p3), -1e+30   ;;  %v264_v8 = vlaneseq (!%p179_p3) }
   0x8   : > { %256 = vst.msk [vmem:[#allocation4 + $0x10] sm:$0xff] (!%p179_p3), %vm253_vm0, %v1152_v0  ;;  %257 = vst.msk [vmem:[#allocation4 + $0x18] sm:$0xff] (!%p179_p3), %vm253_vm0, %v1152_v0  ;;  %1101 = vset.pattern.permute.xlu0 (!%p179_p3), %v1154_v1  ;;  %1023 = vmatprep.subr.bf16.mxu1 (!%p179_p3), %v1152_v0  ;;  %vm323_vm5 = vcmask (!%p179_p3), 121856   ;;  %s1157_s28 = smov (!%p179_p3), 112   ;;  %s1158_s29 = smov (!%p179_p3), 96   ;;  %vm361_vm6 = vcmask (!%p179_p3), 1046528  }
   0x9   : > { %1025 = vmatprep.mubr.msk.bf16.mxu1 (!%p179_p3), %vm1153_vm1, %v1152_v0  ;;  %1102 = vset.pattern.permute.xlu1 (!%p179_p3), %v1154_v1  ;;  %245 = vst.msk [vmem:[#allocation2] sm:$0xff] (!%p179_p3), %vm244_vm3, %v1155_v7  ;;  %246 = vst.msk [vmem:[#allocation2 + $0x8] sm:$0xff] (!%p179_p3), %vm244_vm3, %v1155_v7  ;;  %v265_v9 = vshrl.u32 (!%p179_p3), %v264_v8, 7  ;;  %s1159_s30 = smov (!%p179_p3), 80   ;;  %vm362_vm7 = vcmask (!%p179_p3), 1047552   ;;  %v1160_v24 = vmov (!%p179_p3), 65535  }
   0xa   : > { %247 = vst.msk [vmem:[#allocation2 + $0x10] sm:$0xff] (!%p179_p3), %vm244_vm3, %v1155_v7  ;;  %248 = vst.msk [vmem:[#allocation2 + $0x18] sm:$0xff] (!%p179_p3), %vm244_vm3, %v1155_v7  ;;  %v363_v25 = vsel (!%p179_p3), %vm361_vm6, 4294967295, %v1160_v24  ;;  %s1161_s4 = smov (!%p179_p3), 48   ;;  %s1162_s5 = smov (!%p179_p3), 32   ;;  %vm881_vm8 = vcmask (!%p179_p3), 261120  }
   0xb   : > { %249 = vst.msk [vmem:[#allocation3] sm:$0xff] (!%p179_p3), %vm244_vm3, %v1152_v0  ;;  %250 = vst.msk [vmem:[#allocation3 + $0x8] sm:$0xff] (!%p179_p3), %vm244_vm3, %v1152_v0  ;;  %v266_v10 = vsub.s32 (!%p179_p3), 0, %v265_v9  ;;  %v1272_v26 = vsel (!%p179_p3), %vm362_vm7, %v363_v25, 0  ;;  %s1163_s6 = smov (!%p179_p3), 16   ;;  %vm883_vm9 = vcmask (!%p179_p3), 392192  }
   0xc   : > { %251 = vst.msk [vmem:[#allocation3 + $0x10] sm:$0xff] (!%p179_p3), %vm244_vm3, %v1152_v0  ;;  %252 = vst.msk [vmem:[#allocation3 + $0x18] sm:$0xff] (!%p179_p3), %vm244_vm3, %v1152_v0  ;;  %vm886_vm10 = vcmask (!%p179_p3), 519168  }
   0xe   : > { %s1391_s12 = smov (!%p215_p4, %s1142_s12), 1 }
   0xf   : > { %s1000_s16 = sshll.u32 %s1391_s12, 3  ;;  %s234_s22 = scalar_lea.vmem %s1384_s2, %s1391_s12 }
  0x10   : > { %s227_s19 = scalar_lea.vmem %s1383_s1, %s1000_s16  ;;  %s984_s23 = sshll.u32 %s1391_s12, 2  ;;  %v261_v3 = vld [vmem:[%s234_s22] sm:$0x1] }
  0x11   : > { %v1222_v2 = vld [vmem:[%s227_s19] sm:$0xff]   ;;  %vm262_vm2 = vcmp.gt.f32.partialorder %v261_v3, 0.0  ;;  %s218_s26 = scalar_lea.vmem %s1382_s0, %s984_s23  ;;  %v1308_v3 = vld [vmem:[#allocation2 + $0x8] sm:$0xff]  ;;  %v603_v7 = vld [vmem:[#allocation2 + $0x10] sm:$0xff]  ;;  %s238_s9 = scalar_lea.vmem %s1385_s3, %s984_s23 }
  0x12   : > { %v279_v4 = vsel %vm253_vm0, %v1222_v2, 0  ;;  %v263_v5 = vsel %vm262_vm2, 1, %v1154_v1  ;;  %v258_v6 = vld [vmem:[%s218_s26] sm:$0xf]  ;;  %356 = vrot.lane.b32.xlu1 %v1222_v2, %s1156_s27 }
  0x13   : > { %1018 = vmatpush3.bf16.xpose.msra.mxu0 %v279_v4  ;;  %v1252_v11 = vrot.slane %v263_v5, %v266_v10  ;;  %v991_v18 = vcombine.low %v258_v6, %v258_v6  ;;  %v1262_v19 = vld [vmem:[#allocation2] sm:$0xff] }
  0x14   : > { %1035 = vmatprep.subr.bf16.mxu0 %v1152_v0 }
  0x15   : > { %vm268_vm4 = vcmp.eq.s32.totalorder %v1252_v11, 1 }
  0x16   : > { %416 = vrot.lane.b32.xlu1 %v1222_v2, %s1157_s28 }
  0x1a   : > { %1020 = vmatmul.mubr.msk.bf16.vlgmr.msra.gmra.mrb[0].mxu0 %vm253_vm0, %v258_v6  ;;  %414 = vrot.lane.b32.xlu1 %v991_v18, %s1157_s28 }
  0x1b   : > { %1037 = vmatprep.mubr.msk.bf16.mxu0 %vm1153_vm1, %v1152_v0 }
  0x1e   : > { %553 = vrot.lane.b32.xlu1 %v1222_v2, %s1158_s29 }
  0x22   : > { %551 = vrot.lane.b32.xlu1 %v991_v18, %s1158_s29 }
  0x26   : > { %690 = vrot.lane.b32.xlu1 %v1222_v2, %s1159_s30 }
  0x2a   : > { %688 = vrot.lane.b32.xlu1 %v991_v18, %s1159_s30 }
  0x84   : > { %v357_v23 = vpop.permute.xlu1 %356 }
  0x85   : > { %v366_v27 = vand.u32 %v1272_v26, %v357_v23 }
  0x87   : > { %1024 = vmatpush3.bf16.msra.mxu1 %v366_v27 }
  0x88   : > { %1029 = vmatprep.subr.bf16.mxu1 %v1152_v0  ;;  %v417_v31 = vpop.permute.xlu1 %416 }
  0x89   : > { %v422_v35 = vsel %vm253_vm0, %v417_v31, 0 }
  0x8c   : > { %v415_v32 = vpop.permute.xlu1 %414 }
  0x90   : > { %v554_v37 = vpop.permute.xlu1 %553 }
  0x91   : > { %v559_v39 = vsel %vm253_vm0, %v554_v37, 0 }
  0x94   : > { %v552_v38 = vpop.permute.xlu1 %551 }
  0x98   : > { %v691_v40 = vpop.permute.xlu1 %690 }
  0x99   : > { %v696_v41 = vsel %vm253_vm0, %v691_v40, 0 }
  0x9c   : > { %v689_v42 = vpop.permute.xlu1 %688 }
  0xed   : > { %v315_v12 = vpop.f32.mrb[0].mxu0 }
  0xee   : > { %v321_v13 = vsel %vm268_vm4, %v315_v12, -1e+30  ;;  %v1021_v14 = vpop.f32.mrb[1].mxu0  ;;  %v740_v12 = vld [vmem:[#allocation2 + $0x18] sm:$0xff] }
  0xef   : > { %v318_v15 = vpop.f32.mrb[2].mxu0  ;;  %v324_v16 = vsel %vm323_vm5, %v321_v13, -inf }
  0xf0   : > { %325 = vmax.xlane.f32.xlu0 %v324_v16  ;;  %v1022_v17 = vpop.f32.mrb[3].mxu0 }
 0x17d   : > { %v326_v20 = vpop.xlane.xlu0 %325 }
 0x17e   : > { %v1265_v21 = vmax.f32 %v1262_v19, %v326_v20 }
 0x180   : > { %v328_v22 = vsub.f32 %v1262_v19, %v1265_v21  ;;  %410 = vst.msk [vmem:[#allocation2] sm:$0xff] %vm244_vm3, %v1265_v21  ;;  %333 = vperm.xlu0 %1101, %v1265_v21  }
 0x1ff   : > { %v334_v28 = vpop.permute.xlu0 %333 }
 0x200   : > { %v336_v29 = vsub.f32 %v321_v13, %v334_v28 }
 0x202   : > { %v337_v30 = vmul.f32 1.442695, %v336_v29 }
 0x204   : > { %1104 = vpow2.f32 %v337_v30 }
 0x20e   : > { %v1105_v33 = vpop.eup %1104 }
 0x20f   : > { %v1278_v34 = vsel %vm268_vm4, %v1105_v33, 0.0 }
 0x210   : > { %v355_v36 = vpack.c.bf16 %v1278_v34, %v1278_v34  ;;  %v342_v16 = vsel %vm323_vm5, %v1278_v34, 0.0 }
 0x212   : > { %1026 = vmatmul.mubr.msk.bf16.vlgmr.msra.gmra.mrb[0].mxu1 %vm323_vm5, %v355_v36 }
 0x213   : > { %1030 = vmatpush3.bf16.xpose.msra.mxu1 %v422_v35  ;;  %1031 = vmatprep.mubr.msk.bf16.mxu1 %vm1153_vm1, %v1152_v0 }
 0x214   : > { %1041 = vmatprep.subr.bf16.mxu1 %v1152_v0 }
 0x21a   : > { %1032 = vmatmul.mubr.msk.bf16.vlgmr.msra.gmra.mrb[4].mxu1 %vm253_vm0, %v415_v32  ;;  %v329_v32 = vmul.f32 1.442695, %v328_v22 }
 0x21b   : > { %1042 = vmatpush3.bf16.xpose.msra.mxu1 %v559_v39  ;;  %1043 = vmatprep.mubr.msk.bf16.mxu1 %vm1153_vm1, %v1152_v0 }
 0x21c   : > { %1053 = vmatprep.subr.bf16.mxu1 %v1152_v0 }
 0x222   : > { %1044 = vmatmul.mubr.msk.bf16.vlgmr.msra.gmra.mrb[8].mxu1 %vm253_vm0, %v552_v38 }
 0x223   : > { %1054 = vmatpush3.bf16.xpose.msra.mxu1 %v696_v41  ;;  %1055 = vmatprep.mubr.msk.bf16.mxu1 %vm1153_vm1, %v1152_v0 }
 0x22a   : > { %1056 = vmatmul.mubr.msk.bf16.vlgmr.msra.gmra.mrb[12].mxu1 %vm253_vm0, %v689_v42 }
 0x2e5   : > { %v1297_v43 = vpop.f32.mrb[0].mxu1 }
 0x2e6   : > { %v1027_v44 = vpop.f32.mrb[1].mxu1 }
 0x2e7   : > { %v405_v45 = vpop.f32.mrb[2].mxu1 }
 0x2e8   : > { %v1028_v46 = vpop.f32.mrb[3].mxu1 }
 0x2ed   : > { %v458_v47 = vpop.f32.mrb[4].mxu1 }
 0x2ee   : > { %v464_v48 = vsel %vm268_vm4, %v458_v47, -1e+30  ;;  %v1033_v49 = vpop.f32.mrb[5].mxu1 }
 0x2ef   : > { %v461_v50 = vpop.f32.mrb[6].mxu1  ;;  %v467_v51 = vsel %vm323_vm5, %v464_v48, -inf }
 0x2f0   : > { %468 = vmax.xlane.f32.xlu1 %v467_v51  ;;  %v1034_v52 = vpop.f32.mrb[7].mxu1  ;;  %v340_v50 = vld [vmem:[#allocation3] sm:$0xff] }
 0x2f5   : > { %v595_v53 = vpop.f32.mrb[8].mxu1 }
 0x2f6   : > { %v601_v54 = vsel %vm268_vm4, %v595_v53, -1e+30  ;;  %v1045_v55 = vpop.f32.mrb[9].mxu1 }
 0x2f7   : > { %v598_v56 = vpop.f32.mrb[10].mxu1  ;;  %v604_v57 = vsel %vm323_vm5, %v601_v54, -inf }
 0x2f8   : > { %605 = vmax.xlane.f32.xlu0 %v604_v57  ;;  %v1046_v58 = vpop.f32.mrb[11].mxu1  ;;  %v484_v57 = vld [vmem:[#allocation3 + $0x8] sm:$0xff] }
 0x2fd   : > { %v732_v59 = vpop.f32.mrb[12].mxu1 }
 0x2fe   : > { %v738_v60 = vsel %vm268_vm4, %v732_v59, -1e+30  ;;  %v1057_v61 = vpop.f32.mrb[13].mxu1 }
 0x2ff   : > { %v735_v62 = vpop.f32.mrb[14].mxu1  ;;  %v741_v63 = vsel %vm323_vm5, %v738_v60, -inf  ;;  %v348_v61 = vld [vmem:[#allocation4] sm:$0xff] }
 0x300   : > { %742 = vmax.xlane.f32.xlu1 %v741_v63  ;;  %v1058_v1 = vpop.f32.mrb[15].mxu1  ;;  %v621_v63 = vld [vmem:[#allocation3 + $0x10] sm:$0xff] }
 0x37d   : > { %v469_v4 = vpop.xlane.xlu1 %468 }
 0x37e   : > { %v1311_v5 = vmax.f32 %v1308_v3, %v469_v4 }
 0x380   : > { %v471_v6 = vsub.f32 %v1308_v3, %v1311_v5  ;;  %550 = vst.msk [vmem:[#allocation2 + $0x8] sm:$0xff] %vm244_vm3, %v1311_v5  ;;  %476 = vperm.xlu1 %1102, %v1311_v5  }
 0x385   : > { %v606_v8 = vpop.xlane.xlu0 %605 }
 0x386   : > { %v607_v9 = vmax.f32 %v603_v7, %v606_v8 }
 0x388   : > { %v608_v10 = vsub.f32 %v603_v7, %v607_v9  ;;  %687 = vst.msk [vmem:[#allocation2 + $0x10] sm:$0xff] %vm244_vm3, %v607_v9  ;;  %613 = vperm.xlu0 %1101, %v607_v9   ;;  %v758_v9 = vld [vmem:[#allocation3 + $0x18] sm:$0xff] }
 0x38a   : > { %v609_v36 = vmul.f32 1.442695, %v608_v10 }
 0x38d   : > { %v743_v13 = vpop.xlane.xlu1 %742 }
 0x38e   : > { %v744_v14 = vmax.f32 %v740_v12, %v743_v13 }
 0x390   : > { %v745_v15 = vsub.f32 %v740_v12, %v744_v14  ;;  %824 = vst.msk [vmem:[#allocation2 + $0x18] sm:$0xff] %vm244_vm3, %v744_v14  ;;  %750 = vperm.xlu1 %1102, %v744_v14  }
 0x392   : > { %v746_v21 = vmul.f32 1.442695, %v745_v15 }
 0x394   : > { %500 = vrot.lane.b32.xlu1 %v1222_v2, %s1161_s4 }
 0x398   : > { %637 = vrot.lane.b32.xlu1 %v1222_v2, %s1162_s5 }
 0x39c   : > { %774 = vrot.lane.b32.xlu1 %v1222_v2, %s1163_s6 }
 0x3a7   : > { %343 = vadd.xlane.f32.xlu0 %v342_v16 }
 0x3ff   : > { %v477_v17 = vpop.permute.xlu1 %476 }
 0x400   : > { %v479_v18 = vsub.f32 %v464_v48, %v477_v17 }
 0x402   : > { %v480_v20 = vmul.f32 1.442695, %v479_v18 }
 0x404   : > { %1106 = vpow2.f32 %v480_v20 }
 0x407   : > { %v614_v23 = vpop.permute.xlu0 %613 }
 0x408   : > { %v616_v24 = vsub.f32 %v601_v54, %v614_v23  ;;  %v492_v23 = vld [vmem:[#allocation4 + $0x8] sm:$0xff] }
 0x40a   : > { %v617_v25 = vmul.f32 1.442695, %v616_v24 }
 0x40c   : > { %1108 = vpow2.f32 %v617_v25 }
 0x40e   : > { %v1107_v27 = vpop.eup %1106 }
 0x40f   : > { %v751_v28 = vpop.permute.xlu1 %750  ;;  %v482_v29 = vsel %vm268_vm4, %v1107_v27, 0.0 }
 0x410   : > { %v753_v30 = vsub.f32 %v738_v60, %v751_v28  ;;  %v486_v2 = vsel %vm323_vm5, %v482_v29, 0.0  ;;  %v499_v37 = vpack.c.bf16 %v482_v29, %v482_v29 }
 0x411   : > { %487 = vadd.xlane.f32.xlu1 %v486_v2 }
 0x412   : > { %v754_v31 = vmul.f32 1.442695, %v753_v30 }
 0x413   : > { %v501_v33 = vpop.permute.xlu1 %500 }
 0x414   : > { %1110 = vpow2.f32 %v754_v31  ;;  %v506_v34 = vand.u32 %v501_v33, %v1272_v26  ;;  %v629_v31 = vld [vmem:[#allocation4 + $0x10] sm:$0xff] }
 0x415   : > { %1112 = vpow2.f32 %v329_v32 }
 0x416   : > { %v1109_v35 = vpop.eup %1108  ;;  %1036 = vmatpush3.bf16.msra.mxu0 %v506_v34  ;;  %1114 = vpow2.f32 %v609_v36 }
 0x417   : > { %v619_v38 = vsel %vm268_vm4, %v1109_v35, 0.0  ;;  %v638_v39 = vpop.permute.xlu1 %637  ;;  %1047 = vmatprep.subr.bf16.mxu0 %v1152_v0  ;;  %1116 = vpow2.f32 %v746_v21 }
 0x418   : > { %v623_v40 = vsel %vm323_vm5, %v619_v38, 0.0  ;;  %v643_v19 = vand.u32 %v638_v39, %v1272_v26  ;;  %v636_v44 = vpack.c.bf16 %v619_v38, %v619_v38  ;;  %v766_v39 = vld [vmem:[#allocation4 + $0x18] sm:$0xff] }
 0x419   : > { %1038 = vmatmul.mubr.msk.bf16.vlgmr.msra.gmra.mrb[4].mxu0 %vm323_vm5, %v499_v37  ;;  %624 = vadd.xlane.f32.xlu0 %v623_v40 }
 0x41a   : > { %1048 = vmatpush3.bf16.msra.mxu0 %v643_v19  ;;  %1049 = vmatprep.mubr.msk.bf16.mxu0 %vm1153_vm1, %v1152_v0 }
 0x41b   : > { %v775_v22 = vpop.permute.xlu1 %774  ;;  %1059 = vmatprep.subr.bf16.mxu0 %v1152_v0 }
 0x41c   : > { %v780_v42 = vand.u32 %v775_v22, %v1272_v26  ;;  %v472_v26 = vmul.f32 1.442695, %v471_v6 }
 0x41e   : > { %v1111_v41 = vpop.eup %1110  ;;  %1118 = vpow2.f32 %v472_v26 }
 0x41f   : > { %v756_v45 = vsel %vm268_vm4, %v1111_v41, 0.0  ;;  %v1113_v47 = vpop.eup %1112 }
 0x420   : > { %v760_v46 = vsel %vm323_vm5, %v756_v45, 0.0  ;;  %v1115_v48 = vpop.eup %1114  ;;  %v773_v49 = vpack.c.bf16 %v756_v45, %v756_v45  ;;  %v341_v51 = vmul.f32 %v1113_v47, %v340_v50 }
 0x421   : > { %1050 = vmatmul.mubr.msk.bf16.vlgmr.msra.gmra.mrb[8].mxu0 %vm323_vm5, %v636_v44  ;;  %761 = vadd.xlane.f32.xlu0 %v760_v46  ;;  %v1117_v11 = vpop.eup %1116  ;;  %v622_v4 = vmul.f32 %v1115_v48, %v621_v63 }
 0x422   : > { %351 = vperm.xlu1 %1102, %v1113_v47   ;;  %1060 = vmatpush3.bf16.msra.mxu0 %v780_v42  ;;  %v759_v10 = vmul.f32 %v1117_v11, %v758_v9 }
 0x423   : > { %1061 = vmatprep.mubr.msk.bf16.mxu0 %vm1153_vm1, %v1152_v0 }
 0x426   : > { %632 = vperm.xlu1 %1102, %v1115_v48  }
 0x428   : > { %v1119_v54 = vpop.eup %1118 }
 0x429   : > { %1062 = vmatmul.mubr.msk.bf16.vlgmr.msra.gmra.mrb[12].mxu0 %vm323_vm5, %v773_v49  ;;  %v485_v58 = vmul.f32 %v1119_v54, %v484_v57 }
 0x42a   : > { %769 = vperm.xlu1 %1102, %v1117_v11  }
 0x434   : > { %v344_v52 = vpop.xlane.xlu0 %343 }
 0x435   : > { %v345_v53 = vadd.f32 %v344_v52, %v341_v51 }
 0x437   : > { %347 = vst.msk [vmem:[#allocation3] sm:$0xff] %vm244_vm3, %v345_v53  ;;  %495 = vperm.xlu0 %1101, %v1119_v54  }
 0x43e   : > { %v828_v0 = vld [vmem:[#allocation3] sm:$0xff] }
 0x43f   : > { %v829_v55 = vmax.f32 %v828_v0, 1e-30 }
 0x441   : > { %1120 = vrcp.f32 %v829_v55 }
 0x44b   : > { %v1121_v56 = vpop.eup %1120 }
 0x44c   : > { %834 = vperm.xlu0 %1101, %v1121_v56  }
 0x49e   : > { %v488_v59 = vpop.xlane.xlu1 %487 }
 0x49f   : > { %v489_v60 = vadd.f32 %v488_v59, %v485_v58 }
 0x4a1   : > { %490 = vst.msk [vmem:[#allocation3 + $0x8] sm:$0xff] %vm244_vm3, %v489_v60 }
 0x4a2   : > { %v352_v62 = vpop.permute.xlu1 %351 }
 0x4a3   : > { %v354_v1 = vmul.f32 %v352_v62, %v348_v61 }
 0x4a5   : > { %v408_v3 = vadd.f32 %v1297_v43, %v354_v1 }
 0x4a6   : > { %v625_v5 = vpop.xlane.xlu0 %624  ;;  %v633_v32 = vpop.permute.xlu1 %632 }
 0x4a7   : > { %409 = vst.msk [vmem:[#allocation4] sm:$0xff] %vm253_vm0, %v408_v3  ;;  %v626_v6 = vadd.f32 %v625_v5, %v622_v4  ;;  %v635_v33 = vmul.f32 %v633_v32, %v629_v31 }
 0x4a8   : > { %v838_v7 = vld [vmem:[#allocation3 + $0x8] sm:$0xff] }
 0x4a9   : > { %627 = vst.msk [vmem:[#allocation3 + $0x10] sm:$0xff] %vm244_vm3, %v626_v6  ;;  %v839_v8 = vmax.f32 %v838_v7, 1e-30 }
 0x4aa   : > { %v770_v40 = vpop.permute.xlu1 %769 }
 0x4ab   : > { %1122 = vrcp.f32 %v839_v8  ;;  %v772_v19 = vmul.f32 %v770_v40, %v766_v39 }
 0x4ae   : > { %v762_v12 = vpop.xlane.xlu0 %761  ;;  %v831_v53 = vld [vmem:[#allocation4] sm:$0xff] }
 0x4af   : > { %v763_v13 = vadd.f32 %v762_v12, %v759_v10 }
 0x4b0   : > { %v848_v14 = vld [vmem:[#allocation3 + $0x10] sm:$0xff] }
 0x4b1   : > { %764 = vst.msk [vmem:[#allocation3 + $0x18] sm:$0xff] %vm244_vm3, %v763_v13  ;;  %v849_v15 = vmax.f32 %v848_v14, 1e-30 }
 0x4b3   : > { %1124 = vrcp.f32 %v849_v15 }
 0x4b5   : > { %v1123_v43 = vpop.eup %1122 }
 0x4b6   : > { %844 = vperm.xlu1 %1102, %v1123_v43   ;;  %v496_v24 = vpop.permute.xlu0 %495 }
 0x4b7   : > { %v498_v25 = vmul.f32 %v496_v24, %v492_v23 }
 0x4b8   : > { %v858_v16 = vld [vmem:[#allocation3 + $0x18] sm:$0xff] }
 0x4b9   : > { %v859_v17 = vmax.f32 %v858_v16, 1e-30 }
 0x4bb   : > { %1126 = vrcp.f32 %v859_v17 }
 0x4bd   : > { %v1125_v18 = vpop.eup %1124 }
 0x4be   : > { %854 = vperm.xlu0 %1101, %v1125_v18  }
 0x4c5   : > { %v1127_v20 = vpop.eup %1126 }
 0x4c6   : > { %864 = vperm.xlu1 %1102, %v1127_v20  }
 0x4cb   : > { %v835_v48 = vpop.permute.xlu0 %834 }
 0x4cc   : > { %v837_v0 = vmul.f32 %v835_v48, %v831_v53 }
 0x4ec   : > { %v542_v27 = vpop.f32.mrb[4].mxu0 }
 0x4ed   : > { %v548_v28 = vadd.f32 %v542_v27, %v498_v25  ;;  %v1039_v29 = vpop.f32.mrb[5].mxu0 }
 0x4ee   : > { %v545_v30 = vpop.f32.mrb[6].mxu0 }
 0x4ef   : > { %549 = vst.msk [vmem:[#allocation4 + $0x8] sm:$0xff] %vm253_vm0, %v548_v28  ;;  %v1040_v2 = vpop.f32.mrb[7].mxu0 }
 0x4f4   : > { %v679_v34 = vpop.f32.mrb[8].mxu0 }
 0x4f5   : > { %v685_v35 = vadd.f32 %v679_v34, %v635_v33  ;;  %v1051_v36 = vpop.f32.mrb[9].mxu0 }
 0x4f6   : > { %v682_v37 = vpop.f32.mrb[10].mxu0  ;;  %v841_v46 = vld [vmem:[#allocation4 + $0x8] sm:$0xff] }
 0x4f7   : > { %686 = vst.msk [vmem:[#allocation4 + $0x10] sm:$0xff] %vm253_vm0, %v685_v35  ;;  %v1052_v38 = vpop.f32.mrb[11].mxu0 }
 0x4fc   : > { %v816_v21 = vpop.f32.mrb[12].mxu0 }
 0x4fd   : > { %v822_v22 = vadd.f32 %v816_v21, %v772_v19  ;;  %v1063_v41 = vpop.f32.mrb[13].mxu0 }
 0x4fe   : > { %v819_v42 = vpop.f32.mrb[14].mxu0  ;;  %v851_v26 = vld [vmem:[#allocation4 + $0x10] sm:$0xff] }
 0x4ff   : > { %823 = vst.msk [vmem:[#allocation4 + $0x18] sm:$0xff] %vm253_vm0, %v822_v22  ;;  %v1064_v44 = vpop.f32.mrb[15].mxu0 }
 0x506   : > { %v861_v51 = vld [vmem:[#allocation4 + $0x18] sm:$0xff] }
 0x535   : > { %v845_v45 = vpop.permute.xlu1 %844 }
 0x536   : > { %v847_v47 = vmul.f32 %v845_v45, %v841_v46 }
 0x538   : > { %869 = vrot.lane.b32.xlu0 %v847_v47, %s1163_s6 }
 0x53d   : > { %v855_v49 = vpop.permute.xlu0 %854 }
 0x53e   : > { %v857_v11 = vmul.f32 %v855_v49, %v851_v26 }
 0x540   : > { %873 = vrot.lane.b32.xlu1 %v857_v11, %s1162_s5 }
 0x545   : > { %v865_v50 = vpop.permute.xlu1 %864 }
 0x546   : > { %v867_v52 = vmul.f32 %v865_v50, %v861_v51 }
 0x548   : > { %877 = vrot.lane.b32.xlu0 %v867_v52, %s1161_s4 }
 0x5aa   : > { %v870_v54 = vpop.permute.xlu0 %869 }
 0x5ab   : > { %v880_v56 = vsel %vm253_vm0, %v837_v0, %v870_v54 }
 0x5b2   : > { %v874_v55 = vpop.permute.xlu1 %873 }
 0x5b3   : > { %v882_v57 = vsel %vm881_vm8, %v880_v56, %v874_v55 }
 0x5ba   : > { %v878_v58 = vpop.permute.xlu0 %877 }
 0x5bb   : > { %v884_v59 = vsel %vm883_vm9, %v882_v57, %v878_v58 }
 0x5bc   : > { %v885_v60 = vpack.c.bf16 %v884_v59, %v884_v59 }
 0x5be   : > { %887 = vst.msk [vmem:[%s238_s9] sm:$0xf] %vm886_vm10, %v885_v60 }
 0x5bf PF: > { %s13_s14 = sadd.s32 1, %s1150_s14   ;;  %s1386_s12 = smov %s1146_s13 }
 0x5c0   : > { %p10_p5 = scmp.ge.s32.totalorder %s13_s14, 4   ;;  %s1387_s13 = smov %s1389_s15 }
 0x5c2   :  { %12 = sbr.rel (!%p10_p5) target bundleno = 2 (0x2), region = 85 }

// kernel: fg_model_forward.47
= control target key start
LH: loop header
LB: loop body
LE: loop exit
PB: predicated region body
PF: predicated region fallthrough
CT: control target
= control target key end

     0   :  { %s380_s0 = inlined_call_operand.vmem [shape: bf16[16,128], index: 0, kind: input, shape index: {}]   ;;  %s381_s1 = inlined_call_operand.vmem [shape: bf16[128,128], index: 1, kind: input, shape index: {}]   ;;  %s382_s2 = inlined_call_operand.vmem [shape: f32[1,128], index: 2, kind: input, shape index: {}]   ;;  %s383_s3 = inlined_call_operand.vmem [shape: f32[1,128], index: 3, kind: input, shape index: {}]   ;;  %s384_s4 = inlined_call_operand.hbm [shape: f32[16,128], index: 4, kind: output, shape index: {}]  }
   0x1   :  { %v228_v0 = vld [vmem:[%s380_s0] sm:$0xff]  }
   0x2   :  { %v229_v1 = vunpack.c.l.bf16 %v228_v0  ;;  %v230_v2 = vunpack.c.h.bf16 %v228_v0 }
   0x4   :  { %v33_v3 = vmul.f32 %v229_v1, %v229_v1  ;;  %v34_v4 = vmul.f32 %v230_v2, %v230_v2 }
   0x6   :  { %35 = vadd.xlane.f32.xlu0 %v33_v3 }
   0x7   :  { %9 = vsyncpa [#allocation5], 0  ;;  %v304_v5 = vmov 0   ;;  %v268_v6 = vld [vmem:[%s381_s1] sm:$0xff]   ;;  %v305_v7 = vmov 0.0   ;;  %v269_v8 = vld [vmem:[%s381_s1 + $0x8] sm:$0xff]  }
   0x8   :  { %266 = vset.pattern.permute.xlu1 %v304_v5  ;;  %267 = vset.pattern.permute.xlu0 %v304_v5  ;;  %v270_v9 = vld [vmem:[%s381_s1 + $0x10] sm:$0xff]   ;;  %v271_v10 = vld [vmem:[%s381_s1 + $0x18] sm:$0xff]   ;;  %v272_v11 = vld [vmem:[%s381_s1 + $0x20] sm:$0xff]   ;;  %vm45_vm0 = vcmask 7168   ;;  %vm306_vm1 = vmmov 0  }
   0x9   :  { %240 = vmatprep.subr.bf16.mxu0 %v305_v7  ;;  %v273_v12 = vld [vmem:[%s381_s1 + $0x28] sm:$0xff]   ;;  %v274_v22 = vld [vmem:[%s381_s1 + $0x30] sm:$0xff]   ;;  %v275_v24 = vld [vmem:[%s381_s1 + $0x38] sm:$0xff]   ;;  %256 = vmatprep.mubr.msk.bf16.mxu0 %vm306_vm1, %v305_v7  ;;  %s307_s1 = smov [#allocation4]  }
   0xa   :  { %37 = vadd.xlane.f32.xlu0 %v34_v4  ;;  %241 = vmatpush3.bf16.msra.mxu0 %v268_v6  ;;  %v217_v27 = vld [vmem:[%s383_s3] ss:$0 sm:$0xff]  ;;  %s206_s10 = sshll.u32 %s307_s1, 4  ;;  %s207_s10 = int_to_ptr.vmem [resolvable:$true] %s206_s10 }
   0xb   :  { %242 = vmatprep.subr.bf16.mxu0 %v305_v7  ;;  %v226_v33 = vld [vmem:[%s382_s2] ss:$0 sm:$0xff]  ;;  %s280_s3 = scalar_lea.vmem %s207_s10, 256  ;;  %p285_p1 = scmp.lt.s32.totalorder %s207_s10, %s207_s10 }
   0xc   :  { %p281_p0 = scmp.ne.s32.totalorder %s207_s10, %s280_s3  ;;  %p286_p2 = scmp.lt.s32.totalorder %s280_s3, %s280_s3 }
   0xe   :  { %243 = vmatpush3.bf16.msra.mxu0 %v269_v8  ;;  %p287_p3 = por %p286_p2, %p285_p1 }
   0xf   :  { %244 = vmatprep.subr.bf16.mxu0 %v305_v7 }
  0x10   :  { %p288_p4 = pnand %p287_p3, %p281_p0 }
  0x12   :  { %245 = vmatpush3.bf16.msra.mxu0 %v270_v9 }
  0x13   :  { %246 = vmatprep.subr.bf16.mxu0 %v305_v7 }
  0x16   :  { %247 = vmatpush3.bf16.msra.mxu0 %v271_v10 }
  0x17   :  { %248 = vmatprep.subr.bf16.mxu0 %v305_v7 }
  0x1a   :  { %249 = vmatpush3.bf16.msra.mxu0 %v272_v11 }
  0x1b   :  { %250 = vmatprep.subr.bf16.mxu0 %v305_v7 }
  0x1e   :  { %251 = vmatpush3.bf16.msra.mxu0 %v273_v12 }
  0x1f   :  { %252 = vmatprep.subr.bf16.mxu0 %v305_v7 }
  0x22   :  { %253 = vmatpush3.bf16.msra.mxu0 %v274_v22 }
  0x23   :  { %254 = vmatprep.subr.bf16.mxu0 %v305_v7 }
  0x26   :  { %255 = vmatpush3.bf16.msra.mxu0 %v275_v24 }
  0x93   :  { %v36_v13 = vpop.xlane.xlu0 %35 }
  0x94   :  { %v39_v14 = vmul.f32 0.015625, %v36_v13 }
  0x96   :  { %v41_v15 = vadd.f32 1e-06, %v39_v14 }
  0x97   :  { %v38_v16 = vpop.xlane.xlu0 %37 }
  0x98   :  { %276 = vrsqrt.f32 %v41_v15  ;;  %v40_v17 = vmul.f32 0.015625, %v38_v16 }
  0x9a   :  { %v42_v18 = vadd.f32 1e-06, %v40_v17 }
  0x9c   :  { %278 = vrsqrt.f32 %v42_v18 }
  0xa2   :  { %v277_v19 = vpop.eup %276 }
  0xa3   :  { %46 = vst.msk [vmem:[#allocation3] sm:$0xff] %vm45_vm0, %v277_v19 }
  0xa6   :  { %v279_v20 = vpop.eup %278 }
  0xa7   :  { %47 = vst.msk [vmem:[#allocation3 + $0x8] sm:$0xff] %vm45_vm0, %v279_v20 }
  0xaa   :  { %v50_v21 = vld [vmem:[#allocation3] sm:$0xff] }
  0xab   :  { %54 = vperm.xlu1 %266, %v50_v21  }
  0xae   :  { %v51_v23 = vld [vmem:[#allocation3 + $0x8] sm:$0xff] }
  0xaf   :  { %59 = vperm.xlu1 %266, %v51_v23  }
 0x12a   :  { %v55_v25 = vpop.permute.xlu1 %54 }
 0x12b   :  { %v62_v26 = vmul.f32 %v229_v1, %v55_v25 }
 0x12d   :  { %v71_v30 = vmul.f32 %v217_v27, %v62_v26 }
 0x12e   :  { %v60_v28 = vpop.permute.xlu1 %59 }
 0x12f   :  { %v63_v29 = vmul.f32 %v230_v2, %v60_v28 }
 0x131   :  { %v72_v31 = vmul.f32 %v217_v27, %v63_v29 }
 0x133   :  { %v73_v32 = vpack.c.bf16 %v72_v31, %v71_v30 }
 0x135   :  { %257 = vmatmul.mubr.bf16.vlgmr.msra.gmra.mrb[0].mxu0 %v73_v32 }
 0x208   :  { %v174_v34 = vpop.f32.mrb[0].mxu0 }
 0x209   :  { %v197_v35 = vadd.f32 %v226_v33, %v174_v34  ;;  %v258_v36 = vpop.f32.mrb[1].mxu0 }
 0x20a   :  { %v177_v37 = vpop.f32.mrb[2].mxu0 }
 0x20b   :  { %199 = vst [vmem:[#allocation4] sm:$0xff] %v197_v35  ;;  %v198_v38 = vadd.f32 %v226_v33, %v177_v37  ;;  %v259_v39 = vpop.f32.mrb[3].mxu0 }
 0x20d   :  { %200 = vst [vmem:[#allocation4 + $0x8] sm:$0xff] %v198_v38 }
 0x20e   :  { %291 = shalt.err (!%p288_p4)
}
 0x20f   :  { %s292_s12 = scalar_lea.hbm %s384_s4, 256 }
 0x210   :  { %p293_p5 = scmp.ne.s32.totalorder %s384_s4, %s292_s12  ;;  %p296_p6 = scmp.lt.u32.totalorder %s292_s12, %s384_s4 }
 0x212   :  { %p298_p7 = pnand %p296_p6, %p293_p5 }
 0x214   :  { %301 = shalt.err (!%p298_p7)
}
 0x215   :  { %s308_s17 = smov 128   ;;  %s309_s18 = smov 8  }
 0x216   :  { %212 = dma.vmem_to_hbm [thread:$0]  %s207_s10, 256, %s384_s4, [#allocation5], %s308_s17, %s308_s17, %s309_s18  }
 0x217   :  { %302 = dma.done.wait [#allocation5], 256  }
 0x218   :  { %303 = vsyncadd [#allocation5], 4294967040 }
 0x219   :  { %216 = vsyncpa [#allocation5], 1 }

</bundles_post_ra>
